<compile_context>
chip_gen: v7x
topology: tpu7x:2x2x1
jax: 0.10.0
libtpu: 0.0.40
codegen_flags: <defaults>
</compile_context>

<pallas_src>
import functools

import jax
import jax.numpy as jnp
from jax import lax
from jax.experimental import pallas as pl
from jax.experimental.pallas import tpu as pltpu


def _round_up(x, m):
    return (x + m - 1) // m * m


# ----------------------------------------------------------------------------
# Fused RPN kernel.  One program handles TM pixels of one image:
#   feats  = relu(x_col @ w1 + b1)                       (TM, FP)
#   heads  = feats @ w_heads + b_heads                   (TM, 2*SLAB)
#            cols [0, 4K)         : box transforms, ordered 4*a + d
#            cols [SLAB, SLAB+2K) : scores,         ordered 2*a + d
#            remaining cols       : exact zeros (zero-padded weights/bias)
#   anchors / boxes computed on full (TM, SLAB) vreg slabs (iota + where + exp),
#   then stored as two 128-lane-aligned slab writes (no per-anchor scatter).
# ----------------------------------------------------------------------------
def _rpn_fused_kernel(x_ref, w1_ref, b1_ref, wh_ref, bh_ref, awh_ref, swh_ref,
                      out_ref, act_ref, *, tm, img_w, slab, x0, y0, sx, sy):
    t = pl.program_id(1)                      # hw-tile index within this image

    # --- 3x3 conv as GEMM (+bias, ReLU); f32 MXU, f32 accumulation ----------
    feats = jnp.dot(x_ref[0], w1_ref[...],
                    preferred_element_type=jnp.float32,
                    precision=lax.Precision.HIGHEST)
    feats = jnp.maximum(feats + b1_ref[...], 0.0)                    # (TM, FP)

    # --- fused box+score heads: one lane-dense (TM, 2*SLAB) matmul ----------
    heads = jnp.dot(feats, wh_ref[...],
                    preferred_element_type=jnp.float32,
                    precision=lax.Precision.HIGHEST) + bh_ref[...]
    tslab = heads[:, :slab]            # (TM, SLAB) box transforms (pad cols 0)

    # --- act_reg partial: sublane-only reduction, lane-dense (1, SLAB) store.
    #     Padded columns are exactly zero, so this is sum(bfeats**2) here. ----
    act_ref[...] = jnp.sum(tslab * tslab, axis=0, keepdims=True)

    # --- MakeAnchors on the full slab: col 4a+d holds (xc, yc, wa_a, ha_a)[d]
    hw = lax.broadcasted_iota(jnp.int32, (tm, slab), 0) + t * tm
    col = lax.broadcasted_iota(jnp.int32, (tm, slab), 1)
    d = col & 3                                       # component index 0..3
    if (img_w & (img_w - 1)) == 0:                    # power-of-2 fast path
        wi = hw & (img_w - 1)
        hi = hw >> (img_w.bit_length() - 1)
    else:
        wi = hw % img_w
        hi = hw // img_w
    xc = x0 + sx * wi.astype(jnp.float32)
    yc = y0 + sy * hi.astype(jnp.float32)
    # awh_ref row = (0, 0, wa, ha) per anchor; swh_ref row = (wa, ha, wa, ha).
    # (1, SLAB) rows broadcast implicitly — no materialized broadcast vregs.
    aslab = jnp.where(d == 0, xc, jnp.where(d == 1, yc, 0.0)) + awh_ref[...]

    # --- ApplyBoxTransform, full-vreg: one select, one exp, one mul/add -----
    #   d<2 : xa + t*wa / ya + t*ha        d>=2 : wa*exp(tw) / ha*exp(th)
    swh = swh_ref[...]
    bslab = jnp.where(d < 2, aslab + tslab * swh, swh * jnp.exp(tslab))

    # --- lane-dense epilogue: two 128-aligned unmasked slab stores -----------
    out_ref[0, :, :slab] = bslab           # boxes  -> cols [0, SLAB)
    out_ref[0, :, slab:] = heads           # [trans | scores] -> [SLAB, 3*SLAB)


# ----------------------------------------------------------------------------
# Wrapper: im2col + weight packing (glue) -> single pallas_call -> XLA permute
# ----------------------------------------------------------------------------
def rpn_forward(x_nchw, params, anchors_wh, field_centers, box_reg_decay):
    w_conv, b_conv, w_box, b_box, w_rpn, b_rpn = params
    N, C, H, W = x_nchw.shape
    F = w_conv.shape[-1]
    K = anchors_wh.shape[1]
    HW = H * W
    x0, y0, sx, sy = (float(v) for v in field_centers)

    SLAB = _round_up(4 * K, 128)     # 128 : boxes / trans slab width
    HPAD = 2 * SLAB                  # 256 : fused head width ([trans | scores])
    CIN = _round_up(9 * C, 128)      # lane-dense conv-as-GEMM contraction dim
    FP = _round_up(F, 128)           # lane-dense hidden width

    # Row tile: 256 fills the 256-wide v6e/v7x MXU and halves grid steps;
    # output blocks stay well under 1 MiB of VMEM either way.
    TM = HW
    for cand in (256, 128, 64, 32, 16, 8):
        if HW % cand == 0:
            TM = cand
            break
    T_cnt = HW // TM

    # ---- im2col (pure index plumbing) ---------------------------------------
    x_nhwc = jnp.transpose(x_nchw, (0, 2, 3, 1)).astype(jnp.float32)
    x_pad = jnp.pad(x_nhwc, ((0, 0), (1, 1), (1, 1), (0, 0)))
    patches = jnp.concatenate(
        [x_pad[:, dy:dy + H, dx:dx + W, :] for dy in range(3) for dx in range(3)],
        axis=-1)                                              # (N, H, W, 9*C)
    x_col = patches.reshape(N, HW, 9 * C)
    x_col = jnp.pad(x_col, ((0, 0), (0, 0), (0, CIN - 9 * C)))

    # ---- weight packing: conv-as-GEMM + fused, zero-padded head matmul ------
    w1 = jnp.zeros((CIN, FP), jnp.float32).at[:9 * C, :F].set(
        w_conv.reshape(9 * C, F))
    b1 = jnp.zeros((1, FP), jnp.float32).at[0, :F].set(b_conv)
    w_heads = (jnp.zeros((FP, HPAD), jnp.float32)
               .at[:F, :4 * K].set(w_box)
               .at[:F, SLAB:SLAB + 2 * K].set(w_rpn))
    b_heads = (jnp.zeros((1, HPAD), jnp.float32)
               .at[0, :4 * K].set(b_box)
               .at[0, SLAB:SLAB + 2 * K].set(b_rpn))

    # ---- tiny per-anchor rows consumed by the in-kernel anchor generator ----
    idx = jnp.arange(K) * 4
    awh_row = (jnp.zeros((1, SLAB), jnp.float32)
               .at[0, idx + 2].set(anchors_wh[0])
               .at[0, idx + 3].set(anchors_wh[1]))
    swh_row = (jnp.zeros((1, SLAB), jnp.float32)
               .at[0, idx + 0].set(anchors_wh[0])
               .at[0, idx + 2].set(anchors_wh[0])
               .at[0, idx + 1].set(anchors_wh[1])
               .at[0, idx + 3].set(anchors_wh[1]))

    kernel = functools.partial(
        _rpn_fused_kernel, tm=TM, img_w=W, slab=SLAB,
        x0=x0, y0=y0, sx=sx, sy=sy)

    out_slab, act_part = pl.pallas_call(
        kernel,
        out_shape=(
            jax.ShapeDtypeStruct((N, HW, 3 * SLAB), jnp.float32),   # fused slab
            jax.ShapeDtypeStruct((1, N * T_cnt * SLAB), jnp.float32),  # act_reg
        ),
        grid_spec=pltpu.PrefetchScalarGridSpec(
            num_scalar_prefetch=0,
            grid=(N, T_cnt),
            in_specs=[
                pl.BlockSpec((1, TM, CIN), lambda n, t: (n, t, 0)),
                pl.BlockSpec((CIN, FP), lambda n, t: (0, 0)),
                pl.BlockSpec((1, FP), lambda n, t: (0, 0)),
                pl.BlockSpec((FP, HPAD), lambda n, t: (0, 0)),
                pl.BlockSpec((1, HPAD), lambda n, t: (0, 0)),
                pl.BlockSpec((1, SLAB), lambda n, t: (0, 0)),
                pl.BlockSpec((1, SLAB), lambda n, t: (0, 0)),
            ],
            out_specs=[
                pl.BlockSpec((1, TM, 3 * SLAB), lambda n, t: (n, t, 0)),
                pl.BlockSpec((1, SLAB), lambda n, t: (0, n * T_cnt + t)),
            ],
        ),
        compiler_params=pltpu.CompilerParams(
            dimension_semantics=("parallel", "parallel")),
    )(x_col, w1, b1, w_heads, b_heads, awh_row, swh_row)

    # ---- wrapper-side post-processing (cheap XLA copies) --------------------
    def to_rbf(s, d):                         # (N, HW, K*d) -> (N, K*HW, d)
        return (s.reshape(N, HW, K, d)
                 .transpose(0, 2, 1, 3).reshape(N, K * HW, d))

    boxes = to_rbf(out_slab[:, :, :4 * K], 4)
    trans = to_rbf(out_slab[:, :, SLAB:SLAB + 4 * K], 4)
    scores = to_rbf(out_slab[:, :, 2 * SLAB:2 * SLAB + 2 * K], 2)

    # Anchors are input independent: pure-JAX iota math, no kernel output.
    xc = x0 + sx * jnp.arange(W, dtype=jnp.float32)
    yc = y0 + sy * jnp.arange(H, dtype=jnp.float32)
    anch = jnp.stack([
        jnp.broadcast_to(xc[None, None, :], (K, H, W)),
        jnp.broadcast_to(yc[None, :, None], (K, H, W)),
        jnp.broadcast_to(anchors_wh[0][:, None, None], (K, H, W)),
        jnp.broadcast_to(anchors_wh[1][:, None, None], (K, H, W)),
    ], axis=-1).reshape(1, K * HW, 4)
    anchors = jnp.broadcast_to(anch, (N, K * HW, 4))

    act_reg = 0.5 * box_reg_decay * jnp.sum(act_part)
    return (boxes, anchors, trans, scores), act_reg


# ----------------------------------------------------------------------------
# Pure-JAX reference (mirrors the PyTorch forward, NCHW) for validation.
# ----------------------------------------------------------------------------
def rpn_reference(x_nchw, params, anchors_wh, field_centers, box_reg_decay):
    w_conv, b_conv, w_box, b_box, w_rpn, b_rpn = params
    N, C, H, W = x_nchw.shape
    K = anchors_wh.shape[1]
    hi = lax.Precision.HIGHEST

    feats = lax.conv_general_dilated(
        x_nchw, w_conv, (1, 1), ((1, 1), (1, 1)),
        dimension_numbers=('NCHW', 'HWIO', 'NCHW'), precision=hi)
    feats = jax.nn.relu(feats + b_conv[None, :, None, None])

    bfeats = lax.conv_general_dilated(
        feats, w_box[None, None], (1, 1), 'VALID',
        dimension_numbers=('NCHW', 'HWIO', 'NCHW'),
        precision=hi) + b_box[None, :, None, None]
    act_reg = 0.5 * box_reg_decay * jnp.sum(bfeats ** 2)

    x0, y0, sx, sy = field_centers
    xc = x0 + sx * jnp.arange(W, dtype=jnp.float32)
    yc = y0 + sy * jnp.arange(H, dtype=jnp.float32)
    xc_g = jnp.broadcast_to(xc[None, None, :], (K, H, W))
    yc_g = jnp.broadcast_to(yc[None, :, None], (K, H, W))
    wa_g = jnp.broadcast_to(anchors_wh[0][:, None, None], (K, H, W))
    ha_g = jnp.broadcast_to(anchors_wh[1][:, None, None], (K, H, W))
    anch_nchw = jnp.stack([xc_g, yc_g, wa_g, ha_g], axis=1).reshape(4 * K, H, W)
    anch_nchw = jnp.broadcast_to(anch_nchw[None], (N, 4 * K, H, W))

    def rbf(t, k):
        n, c, h, w = t.shape
        d = c // k
        return t.reshape(n, k, d, h, w).transpose(0, 1, 3, 4, 2).reshape(n, k * h * w, d)

    anchors = rbf(anch_nchw, K)
    trans = rbf(bfeats, K)
    xa, ya, wa, ha = (anchors[..., i] for i in range(4))
    tx, ty, tw, th = (trans[..., i] for i in range(4))
    boxes = jnp.stack(
        [xa + tx * wa, ya + ty * ha, wa * jnp.exp(tw), ha * jnp.exp(th)], axis=-1)

    scores_m = lax.conv_general_dilated(
        feats, w_rpn[None, None], (1, 1), 'VALID',
        dimension_numbers=('NCHW', 'HWIO', 'NCHW'),
        precision=hi) + b_rpn[None, :, None, None]
    scores = rbf(scores_m, K)
    return (boxes, anchors, trans, scores), act_reg


# ----------------------------------------------------------------------------
if __name__ == "__main__":
    # Module configuration (small, consistent with the PyTorch forward)
    N, C, H, W = 2, 4, 16, 16             # feats: (N, input_dim, H, W)
    F = 32                                # rpn_num_filters
    anchor_scale = 1.0
    field_centers = (0.0, 0.0, 8.0, 8.0)  # x0, y0, sx, sy
    box_reg_decay = 5e-5
    std = 0.01

    ANCHORS_ORIGINAL = [[30, 30], [60, 60], [80, 80], [100, 100], [120, 120],
                        [30, 45], [60, 90], [80, 120], [100, 150], [120, 180],
                        [30, 20], [60, 20], [90, 60], [105, 70], [120, 80]]
    anchors_wh = jnp.asarray(ANCHORS_ORIGINAL, dtype=jnp.float32).T * anchor_scale
    K = anchors_wh.shape[1]               # 15

    # Deterministic parameter init (init_weights with zero_box_conv=False so the
    # box-transform / exp path is exercised; biases zero as in the module).
    key = jax.random.PRNGKey(0)
    kc, kb, kr, kx = jax.random.split(key, 4)
    w_conv = std * jax.random.normal(kc, (3, 3, C, F), jnp.float32)   # HWIO
    b_conv = jnp.zeros((F,), jnp.float32)
    w_box = std * jax.random.normal(kb, (F, 4 * K), jnp.float32)
    b_box = jnp.zeros((4 * K,), jnp.float32)
    w_rpn = std * jax.random.normal(kr, (F, 2 * K), jnp.float32)
    b_rpn = jnp.zeros((2 * K,), jnp.float32)
    params = (w_conv, b_conv, w_box, b_box, w_rpn, b_rpn)

    x = jax.random.normal(kx, (N, C, H, W), jnp.float32)

    fwd = jax.jit(rpn_forward, static_argnames=("field_centers", "box_reg_decay"))
    out = fwd(x, params, anchors_wh,
              field_centers=field_centers, box_reg_decay=box_reg_decay)
    out = jax.block_until_ready(out)
    (boxes, anchors, trans, scores), act_reg = out

    # Validate against a pure-JAX f32 reference of the PyTorch forward.
    (boxes_r, anchors_r, trans_r, scores_r), act_reg_r = rpn_reference(
        x, params, anchors_wh, field_centers, box_reg_decay)
    for name, a, b in [("boxes", boxes, boxes_r),
                       ("anchors", anchors, anchors_r),
                       ("trans", trans, trans_r),
                       ("scores", scores, scores_r)]:
        assert a.shape == b.shape, (name, a.shape, b.shape)
        assert jnp.allclose(a, b, rtol=1e-2, atol=1e-3), name
    assert jnp.allclose(act_reg, act_reg_r, rtol=1e-2, atol=1e-8), "act_reg"

    print("KERNEL_OK")
</pallas_src>

<mosaic_0001>
module attributes {stable_mosaic.version = 11 : i64} {
  func.func @_rpn_fused_kernel(%arg0: i32, %arg1: i32, %arg2: memref<1x256x128xf32, #tpu.memory_space<vmem>>, %arg3: memref<128x128xf32, #tpu.memory_space<vmem>>, %arg4: memref<1x128xf32, #tpu.memory_space<vmem>>, %arg5: memref<128x256xf32, #tpu.memory_space<vmem>>, %arg6: memref<1x256xf32, #tpu.memory_space<vmem>>, %arg7: memref<1x128xf32, #tpu.memory_space<vmem>>, %arg8: memref<1x128xf32, #tpu.memory_space<vmem>>, %arg9: memref<1x256x384xf32, #tpu.memory_space<vmem>>, %arg10: memref<1x128xf32, #tpu.memory_space<vmem>>) attributes {dimension_semantics = [#tpu.dimension_semantics<parallel>, #tpu.dimension_semantics<parallel>], iteration_bounds = array<i64: 2, 1>, scalar_prefetch = 0 : i64, scratch_operands = 0 : i64, tpu.core_type = #tpu.core_type<tc>, window_params = [{transform_indices = @transform_0, window_bounds = array<i64: 1, 256, 128>}, {pipeline_mode = #tpu.pipeline_mode<synchronous>, transform_indices = @transform_1, window_bounds = array<i64: 128, 128>}, {pipeline_mode = #tpu.pipeline_mode<synchronous>, transform_indices = @transform_2, window_bounds = array<i64: 1, 128>}, {pipeline_mode = #tpu.pipeline_mode<synchronous>, transform_indices = @transform_3, window_bounds = array<i64: 128, 256>}, {pipeline_mode = #tpu.pipeline_mode<synchronous>, transform_indices = @transform_4, window_bounds = array<i64: 1, 256>}, {pipeline_mode = #tpu.pipeline_mode<synchronous>, transform_indices = @transform_5, window_bounds = array<i64: 1, 128>}, {pipeline_mode = #tpu.pipeline_mode<synchronous>, transform_indices = @transform_6, window_bounds = array<i64: 1, 128>}, {transform_indices = @transform_7, window_bounds = array<i64: 1, 256, 384>}, {transform_indices = @transform_8, window_bounds = array<i64: 1, 128>}]} {
    %c0 = arith.constant 0 : index
    %c0_0 = arith.constant 0 : index
    %c0_1 = arith.constant 0 : index
    %0 = vector.load %arg2[%c0, %c0_0, %c0_1] : memref<1x256x128xf32, #tpu.memory_space<vmem>>, vector<1x256x128xf32>
    %1 = vector.shape_cast %0 : vector<1x256x128xf32> to vector<256x128xf32>
    %c0_2 = arith.constant 0 : index
    %c0_3 = arith.constant 0 : index
    %2 = vector.load %arg3[%c0_2, %c0_3] : memref<128x128xf32, #tpu.memory_space<vmem>>, vector<128x128xf32>
    %cst = arith.constant dense<0.000000e+00> : vector<256x128xf32>
    %3 = tpu.matmul %1, %2, %cst {dimension_numbers = #tpu.dot_dimension_numbers<[1], [0], [0], [1], [0, 0, 1, 1], [], []>, precision = #tpu.contract_precision<fp32>} : vector<256x128xf32>, vector<128x128xf32>, vector<256x128xf32> -> vector<256x128xf32>
    %c0_4 = arith.constant 0 : index
    %c0_5 = arith.constant 0 : index
    %4 = vector.load %arg4[%c0_4, %c0_5] : memref<1x128xf32, #tpu.memory_space<vmem>>, vector<1x128xf32>
    %5 = vector.broadcast %4 : vector<1x128xf32> to vector<256x128xf32>
    %6 = arith.addf %3, %5 : vector<256x128xf32>
    %cst_6 = arith.constant 0.000000e+00 : f32
    %7 = vector.broadcast %cst_6 : f32 to vector<256x128xf32>
    %8 = arith.maximumf %6, %7 : vector<256x128xf32>
    %c0_7 = arith.constant 0 : index
    %c0_8 = arith.constant 0 : index
    %9 = vector.load %arg5[%c0_7, %c0_8] : memref<128x256xf32, #tpu.memory_space<vmem>>, vector<128x256xf32>
    %cst_9 = arith.constant dense<0.000000e+00> : vector<256x256xf32>
    %10 = tpu.matmul %8, %9, %cst_9 {dimension_numbers = #tpu.dot_dimension_numbers<[1], [0], [0], [1], [0, 0, 1, 1], [], []>, precision = #tpu.contract_precision<fp32>} : vector<256x128xf32>, vector<128x256xf32>, vector<256x256xf32> -> vector<256x256xf32>
    %c0_10 = arith.constant 0 : index
    %c0_11 = arith.constant 0 : index
    %11 = vector.load %arg6[%c0_10, %c0_11] : memref<1x256xf32, #tpu.memory_space<vmem>>, vector<1x256xf32>
    %12 = vector.broadcast %11 : vector<1x256xf32> to vector<256x256xf32>
    %13 = arith.addf %10, %12 : vector<256x256xf32>
    %14 = vector.extract_strided_slice %13 {offsets = [0, 0], sizes = [256, 128], strides = [1, 1]} : vector<256x256xf32> to vector<256x128xf32>
    %15 = arith.mulf %14, %14 : vector<256x128xf32>
    %cst_12 = arith.constant dense<0.000000e+00> : vector<128xf32>
    %16 = vector.multi_reduction <add>, %15, %cst_12 [0] : vector<256x128xf32> to vector<128xf32>
    %17 = vector.shape_cast %16 : vector<128xf32> to vector<1x128xf32>
    %c0_13 = arith.constant 0 : index
    %c0_14 = arith.constant 0 : index
    %18 = vector.load %arg10[%c0_13, %c0_14] : memref<1x128xf32, #tpu.memory_space<vmem>>, vector<1x128xf32>
    tpu.vector_store %arg10[%c0_13, %c0_14], %17 {strides = array<i32>} : memref<1x128xf32, #tpu.memory_space<vmem>>, vector<1x128xf32>,
    %19 = tpu.iota {dimensions = array<i32: 0>} : vector<256x128xi32>
    %c256_i32 = arith.constant 256 : i32
    %20 = arith.muli %arg1, %c256_i32 : i32
    %21 = vector.broadcast %20 : i32 to vector<256x128xi32>
    %22 = arith.addi %19, %21 : vector<256x128xi32>
    %23 = tpu.iota {dimensions = array<i32: 1>} : vector<256x128xi32>
    %c3_i32 = arith.constant 3 : i32
    %24 = vector.broadcast %c3_i32 : i32 to vector<256x128xi32>
    %25 = arith.andi %23, %24 : vector<256x128xi32>
    %c15_i32 = arith.constant 15 : i32
    %26 = vector.broadcast %c15_i32 : i32 to vector<256x128xi32>
    %27 = arith.andi %22, %26 : vector<256x128xi32>
    %c4_i32 = arith.constant 4 : i32
    %28 = vector.broadcast %c4_i32 : i32 to vector<256x128xi32>
    %29 = arith.shrsi %22, %28 : vector<256x128xi32>
    %30 = arith.sitofp %27 : vector<256x128xi32> to vector<256x128xf32>
    %cst_15 = arith.constant 8.000000e+00 : f32
    %31 = vector.broadcast %cst_15 : f32 to vector<256x128xf32>
    %32 = arith.mulf %31, %30 : vector<256x128xf32>
    %cst_16 = arith.constant 0.000000e+00 : f32
    %33 = vector.broadcast %cst_16 : f32 to vector<256x128xf32>
    %34 = arith.addf %33, %32 : vector<256x128xf32>
    %35 = arith.sitofp %29 : vector<256x128xi32> to vector<256x128xf32>
    %cst_17 = arith.constant 8.000000e+00 : f32
    %36 = vector.broadcast %cst_17 : f32 to vector<256x128xf32>
    %37 = arith.mulf %36, %35 : vector<256x128xf32>
    %cst_18 = arith.constant 0.000000e+00 : f32
    %38 = vector.broadcast %cst_18 : f32 to vector<256x128xf32>
    %39 = arith.addf %38, %37 : vector<256x128xf32>
    %c0_i32 = arith.constant 0 : i32
    %40 = vector.broadcast %c0_i32 : i32 to vector<256x128xi32>
    %41 = arith.cmpi eq, %25, %40 : vector<256x128xi32>
    %c1_i32 = arith.constant 1 : i32
    %42 = vector.broadcast %c1_i32 : i32 to vector<256x128xi32>
    %43 = arith.cmpi eq, %25, %42 : vector<256x128xi32>
    %cst_19 = arith.constant 0.000000e+00 : f32
    %44 = vector.broadcast %cst_19 : f32 to vector<256x128xf32>
    %45 = arith.select %43, %39, %44 : vector<256x128xi1>, vector<256x128xf32>
    %46 = arith.select %41, %34, %45 : vector<256x128xi1>, vector<256x128xf32>
    %c0_20 = arith.constant 0 : index
    %c0_21 = arith.constant 0 : index
    %47 = vector.load %arg7[%c0_20, %c0_21] : memref<1x128xf32, #tpu.memory_space<vmem>>, vector<1x128xf32>
    %48 = vector.broadcast %47 : vector<1x128xf32> to vector<256x128xf32>
    %49 = arith.addf %46, %48 : vector<256x128xf32>
    %c0_22 = arith.constant 0 : index
    %c0_23 = arith.constant 0 : index
    %50 = vector.load %arg8[%c0_22, %c0_23] : memref<1x128xf32, #tpu.memory_space<vmem>>, vector<1x128xf32>
    %c2_i32 = arith.constant 2 : i32
    %51 = vector.broadcast %c2_i32 : i32 to vector<256x128xi32>
    %52 = arith.cmpi slt, %25, %51 : vector<256x128xi32>
    %53 = vector.broadcast %50 : vector<1x128xf32> to vector<256x128xf32>
    %54 = arith.mulf %14, %53 : vector<256x128xf32>
    %55 = arith.addf %49, %54 : vector<256x128xf32>
    %56 = math.exp %14 : vector<256x128xf32>
    %57 = vector.broadcast %50 : vector<1x128xf32> to vector<256x128xf32>
    %58 = arith.mulf %57, %56 : vector<256x128xf32>
    %59 = arith.select %52, %55, %58 : vector<256x128xi1>, vector<256x128xf32>
    %c0_24 = arith.constant 0 : index
    %c0_25 = arith.constant 0 : index
    %c0_26 = arith.constant 0 : index
    %60 = vector.load %arg9[%c0_24, %c0_25, %c0_26] : memref<1x256x384xf32, #tpu.memory_space<vmem>>, vector<1x256x128xf32>
    %61 = vector.shape_cast %60 : vector<1x256x128xf32> to vector<256x128xf32>
    %62 = vector.shape_cast %59 : vector<256x128xf32> to vector<1x256x128xf32>
    tpu.vector_store %arg9[%c0_24, %c0_25, %c0_26], %62 {strides = array<i32>} : memref<1x256x384xf32, #tpu.memory_space<vmem>>, vector<1x256x128xf32>,
    %c0_27 = arith.constant 0 : index
    %c0_28 = arith.constant 0 : index
    %c128 = arith.constant 128 : index
    %63 = vector.load %arg9[%c0_27, %c0_28, %c128] : memref<1x256x384xf32, #tpu.memory_space<vmem>>, vector<1x256x256xf32>
    %64 = vector.shape_cast %63 : vector<1x256x256xf32> to vector<256x256xf32>
    %65 = vector.shape_cast %13 : vector<256x256xf32> to vector<1x256x256xf32>
    tpu.vector_store %arg9[%c0_27, %c0_28, %c128], %65 {strides = array<i32>} : memref<1x256x384xf32, #tpu.memory_space<vmem>>, vector<1x256x256xf32>,
    return
  }
  func.func @transform_0(%arg0: i32, %arg1: i32) -> (i32, i32, i32) {
    %c0_i32 = arith.constant 0 : i32
    %c0_i32_0 = arith.constant 0 : i32
    return %arg0, %arg1, %c0_i32 : i32, i32, i32
  }
  func.func @transform_1(%arg0: i32, %arg1: i32) -> (i32, i32) {
    %c0_i32 = arith.constant 0 : i32
    %c0_i32_0 = arith.constant 0 : i32
    %c0_i32_1 = arith.constant 0 : i32
    return %c0_i32, %c0_i32_0 : i32, i32
  }
  func.func @transform_2(%arg0: i32, %arg1: i32) -> (i32, i32) {
    %c0_i32 = arith.constant 0 : i32
    %c0_i32_0 = arith.constant 0 : i32
    %c0_i32_1 = arith.constant 0 : i32
    return %c0_i32, %c0_i32_0 : i32, i32
  }
  func.func @transform_3(%arg0: i32, %arg1: i32) -> (i32, i32) {
    %c0_i32 = arith.constant 0 : i32
    %c0_i32_0 = arith.constant 0 : i32
    %c0_i32_1 = arith.constant 0 : i32
    return %c0_i32, %c0_i32_0 : i32, i32
  }
  func.func @transform_4(%arg0: i32, %arg1: i32) -> (i32, i32) {
    %c0_i32 = arith.constant 0 : i32
    %c0_i32_0 = arith.constant 0 : i32
    %c0_i32_1 = arith.constant 0 : i32
    return %c0_i32, %c0_i32_0 : i32, i32
  }
  func.func @transform_5(%arg0: i32, %arg1: i32) -> (i32, i32) {
    %c0_i32 = arith.constant 0 : i32
    %c0_i32_0 = arith.constant 0 : i32
    %c0_i32_1 = arith.constant 0 : i32
    return %c0_i32, %c0_i32_0 : i32, i32
  }
  func.func @transform_6(%arg0: i32, %arg1: i32) -> (i32, i32) {
    %c0_i32 = arith.constant 0 : i32
    %c0_i32_0 = arith.constant 0 : i32
    %c0_i32_1 = arith.constant 0 : i32
    return %c0_i32, %c0_i32_0 : i32, i32
  }
  func.func @transform_7(%arg0: i32, %arg1: i32) -> (i32, i32, i32) {
    %c0_i32 = arith.constant 0 : i32
    %c0_i32_0 = arith.constant 0 : i32
    return %arg0, %arg1, %c0_i32 : i32, i32, i32
  }
  func.func @transform_8(%arg0: i32, %arg1: i32) -> (i32, i32) {
    %c1_i32 = arith.constant 1 : i32
    %0 = arith.muli %arg0, %c1_i32 : i32
    %1 = arith.addi %0, %arg1 : i32
    %c0_i32 = arith.constant 0 : i32
    %c0_i32_0 = arith.constant 0 : i32
    return %c0_i32, %1 : i32, i32
  }
}

</mosaic_0001>

<bundles_post_ra>
// kernel: rpn_forward.1
= control target key start
LH: loop header
LB: loop body
LE: loop exit
PB: predicated region body
PF: predicated region fallthrough
CT: control target
= control target key end

     0   :  { %s7678_s27 = smov 0   ;;  %s7680_s28 = smov 0   ;;  %s11222_s0 = inlined_call_operand.vmem [shape: f32[2,256,128], index: 0, kind: input, shape index: {}]   ;;  %s11223_s1 = inlined_call_operand.vmem [shape: f32[128,128], index: 1, kind: input, shape index: {}]   ;;  %s11224_s2 = inlined_call_operand.vmem [shape: f32[1,128], index: 2, kind: input, shape index: {}]   ;;  %s11225_s3 = inlined_call_operand.vmem [shape: f32[128,256], index: 3, kind: input, shape index: {}]   ;;  %s11226_s4 = inlined_call_operand.vmem [shape: f32[1,256], index: 4, kind: input, shape index: {}]   ;;  %s11227_s5 = inlined_call_operand.vmem [shape: f32[1,128], index: 5, kind: input, shape index: {}]   ;;  %s11228_s6 = inlined_call_operand.vmem [shape: f32[1,128], index: 6, kind: input, shape index: {}]   ;;  %s11229_s7 = inlined_call_operand.vmem [shape: f32[2,256,384], index: 7, kind: output, shape index: {0}]   ;;  %s11230_s8 = inlined_call_operand.vmem [shape: f32[1,256], index: 8, kind: output, shape index: {1}]  }
   0x1   :  { %s7682_s29 = smov 0  }
   0x2 LB: > { %s31_s30 = sadd.s32 1, %s7626_s28  ;;  %p5762_p0 = scmp.ge.s32.totalorder %s7630_s29, 1  ;;  %s7630_s29 = sphi %s7682_s29, %s19_s29   ;;  %s7626_s28 = sphi %s7680_s28, %s12231_s28   ;;  %s7622_s27 = sphi %s7678_s27, %s12230_s27  }
   0x3   : > { %p33_p1 = scmp.ge.s32.totalorder %s31_s30, 2  ;;  %p288_p2 = scmp.lt.s32.totalorder %s7630_s29, 3 }
   0x5   : > { %s12233_s30 = smov (%p33_p1, %s31_s30), 0  ;;  %p289_p3 = pnand %p5762_p0, %p288_p2 }
   0x7   : > { %292 = sbr.rel (%p289_p3) target bundleno = 1425 (0x591), region = 48 }
   0xe   : > { %v393_v0 = vld [vmem:[%s11223_s1] sm:$0xff]  ;;  %v394_v1 = vld [vmem:[%s11223_s1 + $0x8] sm:$0xff]  ;;  %v7705_v2 = vld [vmem:[%s11223_s1 + $0x10] sm:$0xff]  ;;  %p336_p4 = scmp.lt.s32.totalorder %s7622_s27, 1 }
   0xf   : > { %v417_v3 = vand.u32 4294901760, %v393_v0  ;;  %v420_v4 = vand.u32 4294901760, %v394_v1  ;;  %v396_v5 = vld [vmem:[%s11223_s1 + $0x18] sm:$0xff]  ;;  %v423_v6 = vand.u32 4294901760, %v7705_v2  ;;  %v7714_v7 = vld [vmem:[%s11223_s1 + $0x20] sm:$0xff]  ;;  %v7719_v8 = vld [vmem:[%s11223_s1 + $0x28] sm:$0xff] }
  0x10   : > { %v426_v9 = vand.u32 4294901760, %v396_v5  ;;  %v429_v11 = vand.u32 4294901760, %v7714_v7  ;;  %v432_v12 = vand.u32 4294901760, %v7719_v8  ;;  %v7730_v14 = vld [vmem:[%s11223_s1 + $0x30] sm:$0xff]  ;;  %v7735_v15 = vld [vmem:[%s11223_s1 + $0x38] sm:$0xff]  ;;  %s12235_s27 = smov (!%p336_p4, %s7622_s27), 1 }
  0x11   : > { %v7721_v10 = vpack.c.bf16 %v420_v4, %v417_v3  ;;  %s5771_s25 = sshll.u32 %s12235_s27, 8  ;;  %v435_v17 = vand.u32 4294901760, %v7730_v14  ;;  %v438_v18 = vand.u32 4294901760, %v7735_v15  ;;  %v7760_v19 = vld [vmem:[%s11223_s1 + $0x40] sm:$0xff]  ;;  %v7765_v20 = vld [vmem:[%s11223_s1 + $0x48] sm:$0xff]  ;;  %v7783_v26 = vld [vmem:[%s11223_s1 + $0x50] sm:$0xff]  ;;  %v7794_v30 = vsub.f32 %v393_v0, %v417_v3  ;;  %s359_s19 = scalar_lea.vmem %s11230_s8, %s12235_s27 }
  0x12   : > { %v7725_v13 = vpack.c.bf16 %v426_v9, %v423_v6  ;;  %v7748_v16 = vpack.c.bf16 %v432_v12, %v429_v11  ;;  %s7755_s10 = scalar_lea.vmem %s11222_s0, %s5771_s25  ;;  %v11246_v24 = vand.u32 4294901760, %v7760_v19  ;;  %v11244_v25 = vand.u32 4294901760, %v7765_v20  ;;  %v7791_v28 = vld [vmem:[%s11223_s1 + $0x58] sm:$0xff]  ;;  %v7805_v35 = vld [vmem:[%s11223_s1 + $0x60] sm:$0xff]  ;;  %v7810_v36 = vld [vmem:[%s11223_s1 + $0x68] sm:$0xff]  ;;  %s7516_s25 = smul.u32 768, %s12235_s27 }
  0x13   : > { %6541 = vmatprep.subr.bf16.mxu0 %v7721_v10  ;;  %v361_v21 = vld [vmem:[%s7755_s10] sm:$0xff]  ;;  %v7776_v23 = vpack.c.bf16 %v438_v18, %v435_v17  ;;  %v362_v29 = vld [vmem:[%s7755_s10 + $0x8] sm:$0xff]  ;;  %v7796_v31 = vsub.f32 %v394_v1, %v420_v4  ;;  %v363_v33 = vld [vmem:[%s7755_s10 + $0x10] sm:$0xff]  ;;  %v11242_v34 = vand.u32 4294901760, %v7783_v26  ;;  %v11240_v38 = vand.u32 4294901760, %v7791_v28 }
  0x14   : > { %11579 = vst [vmem:[#allocation2_spill] sm:$0xff] %v7725_v13  ;;  %6543 = vmatpush3.bf16.msra.mxu0 %v7721_v10  ;;  %11580 = vst [vmem:[#allocation3_spill] sm:$0xff] %v7748_v16  ;;  %v7768_v22 = vand.u32 4294901760, %v361_v21  ;;  %v7817_v37 = vpack.c.bf16 %v11244_v25, %v11246_v24  ;;  %v7823_v40 = vand.u32 4294901760, %v362_v29  ;;  %v364_v41 = vld [vmem:[%s7755_s10 + $0x18] sm:$0xff]  ;;  %v365_v42 = vld [vmem:[%s7755_s10 + $0x20] sm:$0xff]  ;;  %v7849_v53 = vsub.f32 %v7705_v2, %v423_v6 }
  0x15   : > { %6545 = vmatprep.subr.bf16.mxu0 %v7725_v13  ;;  %11581 = vst [vmem:[#allocation4_spill] sm:$0xff] %v7776_v23  ;;  %v11233_v43 = vand.u32 4294901760, %v7794_v30  ;;  %v11232_v44 = vand.u32 4294901760, %v7796_v31  ;;  %v7829_v45 = vand.u32 4294901760, %v363_v33  ;;  %v11237_v46 = vand.u32 4294901760, %v7805_v35  ;;  %v7837_v49 = vld [vmem:[%s11223_s1 + $0x70] sm:$0xff] }
  0x16   : > { %v7786_v27 = vsub.f32 %v361_v21, %v7768_v22  ;;  %11583 = vst [vmem:[#allocation6_spill] sm:$0xff] %v7817_v37  ;;  %v11236_v47 = vand.u32 4294901760, %v7810_v36  ;;  %v7842_v50 = vld [vmem:[%s11223_s1 + $0x78] sm:$0xff]  ;;  %v7844_v51 = vand.u32 4294901760, %v364_v41  ;;  %v7846_v52 = vand.u32 4294901760, %v365_v42  ;;  %11584 = vst [vmem:[#allocation7_spill] sm:$0xff] %v7849_v53 }
  0x17   : > { %v7851_v54 = vsub.f32 %v396_v5, %v426_v9  ;;  %v7858_v55 = vpack.c.bf16 %v11240_v38, %v11242_v34  ;;  %v7861_v56 = vsub.f32 %v362_v29, %v7823_v40  ;;  %v821_v57 = vsub.f32 %v7794_v30, %v11233_v43  ;;  %v366_v60 = vld [vmem:[%s7755_s10 + $0x28] sm:$0xff]  ;;  %v367_v4 = vld [vmem:[%s7755_s10 + $0x30] sm:$0xff]  ;;  %v368_v5 = vld [vmem:[%s7755_s10 + $0x38] sm:$0xff] }
  0x18   : > { %6547 = vmatpush3.bf16.msra.mxu0 %v7725_v13  ;;  %11582 = vst [vmem:[#allocation5_spill] sm:$0xff] %v7786_v27  ;;  %v11231_v32 = vand.u32 4294901760, %v7786_v27  ;;  %v828_v58 = vsub.f32 %v7796_v31, %v11232_v44  ;;  %v7870_v59 = vsub.f32 %v363_v33, %v7829_v45  ;;  %v7877_v61 = vpack.c.bf16 %v11236_v47, %v11237_v46  ;;  %v371_v47 = vld [vmem:[%s7755_s10 + $0x50] sm:$0xff] }
  0x19   : > { %6549 = vmatprep.subr.bf16.mxu0 %v7748_v16  ;;  %11585 = vst [vmem:[#allocation8_spill] sm:$0xff] %v7851_v54  ;;  %11586 = vst [vmem:[#allocation9_spill] sm:$0xff] %v7858_v55  ;;  %v11235_v62 = vand.u32 4294901760, %v7837_v49  ;;  %v11234_v63 = vand.u32 4294901760, %v7842_v50  ;;  %v7883_v0 = vsub.f32 %v364_v41, %v7844_v51  ;;  %v7886_v1 = vsub.f32 %v365_v42, %v7846_v52 }
  0x1a   : > { %v500_v39 = vsub.f32 %v7786_v27, %v11231_v32  ;;  %11587 = vst [vmem:[#allocation10_spill] sm:$0xff] %v7861_v56  ;;  %11588 = vst [vmem:[#allocation11_spill] sm:$0xff] %v7870_v59  ;;  %v11239_v2 = vand.u32 4294901760, %v7849_v53  ;;  %v11238_v3 = vand.u32 4294901760, %v7851_v54  ;;  %v11241_v6 = vand.u32 4294901760, %v7861_v56  ;;  %v370_v32 = vld [vmem:[%s7755_s10 + $0x48] sm:$0xff] }
  0x1b   : > { %11589 = vst [vmem:[#allocation12_spill] sm:$0xff] %v7877_v61  ;;  %11590 = vst [vmem:[#allocation13_spill] sm:$0xff] %v7883_v0  ;;  %v7894_v9 = vand.u32 4294901760, %v366_v60  ;;  %v7899_v21 = vsub.f32 %v7714_v7, %v429_v11  ;;  %v7904_v29 = vsub.f32 %v7719_v8, %v432_v12  ;;  %v822_v33 = vand.u32 4294901760, %v821_v57  ;;  %v369_v11 = vld [vmem:[%s7755_s10 + $0x40] sm:$0xff]  ;;  %v383_v27 = vld [vmem:[%s7755_s10 + $0xb0] sm:$0xff] }
  0x1c   : > { %6551 = vmatpush3.bf16.msra.mxu0 %v7748_v16  ;;  %v501_v48 = vand.u32 4294901760, %v500_v39  ;;  %11591 = vst [vmem:[#allocation14_spill] sm:$0xff] %v7886_v1  ;;  %v829_v39 = vand.u32 4294901760, %v828_v58  ;;  %v11243_v41 = vand.u32 4294901760, %v7870_v59  ;;  %v7911_v42 = vpack.c.bf16 %v11234_v63, %v11235_v62 }
  0x1d   : > { %6553 = vmatprep.subr.bf16.mxu0 %v7776_v23  ;;  %11592 = vst [vmem:[#allocation15_spill] sm:$0xff] %v7899_v21  ;;  %11593 = vst [vmem:[#allocation16_spill] sm:$0xff] %v7904_v29  ;;  %v7915_v7 = vand.u32 4294901760, %v368_v5  ;;  %v11245_v8 = vand.u32 4294901760, %v7883_v0  ;;  %v11253_v12 = vand.u32 4294901760, %v7886_v1  ;;  %v835_v57 = vsub.f32 %v7849_v53, %v11239_v2 }
  0x1e   : > { %6092 = vmatprep.mubr.f32.mxu0 %v501_v48  ;;  %11594 = vst [vmem:[#allocation17_spill] sm:$0xff] %v7911_v42  ;;  %v7913_v48 = vand.u32 4294901760, %v367_v4  ;;  %v842_v58 = vsub.f32 %v7851_v54, %v11238_v3  ;;  %v510_v44 = vsub.f32 %v7861_v56, %v11241_v6  ;;  %v7933_v43 = vsub.f32 %v366_v60, %v7894_v9 }
  0x1f   : > { %v11247_v63 = vand.u32 4294901760, %v7899_v21  ;;  %v11250_v62 = vand.u32 4294901760, %v7904_v29  ;;  %v6572_v46 = vpack.c.bf16 %v829_v39, %v822_v33  ;;  %v520_v3 = vsub.f32 %v7870_v59, %v11243_v41 }
  0x20   : > { %6555 = vmatpush3.bf16.msra.mxu0 %v7776_v23  ;;  %11595 = vst [vmem:[#allocation18_spill] sm:$0xff] %v7933_v43  ;;  %v7941_v2 = vand.u32 4294901760, %v369_v11  ;;  %v7943_v38 = vand.u32 4294901760, %v370_v32  ;;  %v7946_v6 = vsub.f32 %v367_v4, %v7913_v48  ;;  %v7949_v60 = vsub.f32 %v368_v5, %v7915_v7 }
  0x21   : > { %6557 = vmatprep.subr.bf16.mxu0 %v7817_v37  ;;  %v7954_v34 = vsub.f32 %v7730_v14, %v435_v17  ;;  %v7959_v33 = vsub.f32 %v7735_v15, %v438_v18  ;;  %v530_v4 = vsub.f32 %v7883_v0, %v11245_v8  ;;  %v836_v39 = vand.u32 4294901760, %v835_v57  ;;  %v372_v17 = vld [vmem:[%s7755_s10 + $0x58] sm:$0xff] }
  0x22   : > { %11596 = vst [vmem:[#allocation19_spill] sm:$0xff] %v7946_v6  ;;  %11597 = vst [vmem:[#allocation20_spill] sm:$0xff] %v7949_v60  ;;  %v843_v41 = vand.u32 4294901760, %v842_v58  ;;  %v7965_v5 = vand.u32 4294901760, %v371_v47  ;;  %v849_v14 = vsub.f32 %v7899_v21, %v11247_v63  ;;  %v856_v15 = vsub.f32 %v7904_v29, %v11250_v62  ;;  %v373_v58 = vld [vmem:[%s7755_s10 + $0x60] sm:$0xff] }
  0x23   : > { %11598 = vst [vmem:[#allocation21_spill] sm:$0xff] %v7954_v34  ;;  %11599 = vst [vmem:[#allocation22_spill] sm:$0xff] %v7959_v33  ;;  %v511_v8 = vand.u32 4294901760, %v510_v44  ;;  %v540_v57 = vsub.f32 %v7886_v1, %v11253_v12  ;;  %v7982_v24 = vsub.f32 %v369_v11, %v7941_v2  ;;  %v521_v63 = vand.u32 4294901760, %v520_v3 }
  0x24   : > { %6559 = vmatpush3.bf16.msra.mxu0 %v7817_v37  ;;  %v7987_v18 = vsub.f32 %v370_v32, %v7943_v38  ;;  %v531_v44 = vand.u32 4294901760, %v530_v4  ;;  %v6576_v25 = vpack.c.bf16 %v843_v41, %v836_v39  ;;  %v7993_v12 = vand.u32 4294901760, %v372_v17 }
  0x25   : > { %6561 = vmatprep.subr.bf16.mxu0 %v7858_v55  ;;  %11600 = vst [vmem:[#allocation23_spill] sm:$0xff] %v7982_v24  ;;  %v850_v11 = vand.u32 4294901760, %v849_v14  ;;  %v857_v3 = vand.u32 4294901760, %v856_v15  ;;  %v11604_v32 = vand.u32 4294901760, %v7959_v33  ;;  %v541_v41 = vand.u32 4294901760, %v540_v57 }
  0x26   : > { %11601 = vst [vmem:[#allocation24_spill] sm:$0xff] %v7987_v18  ;;  %v11606_v14 = vand.u32 4294901760, %v7760_v19  ;;  %v11610_v39 = vand.u32 4294901760, %v7765_v20  ;;  %v11624_v13 = vand.u32 4294901760, %v7791_v28 }
  0x27   : > { %v6580_v23 = vpack.c.bf16 %v857_v3, %v850_v11  ;;  %v376_v3 = vld [vmem:[%s7755_s10 + $0x78] sm:$0xff] }
  0x28   : > { %6563 = vmatpush3.bf16.msra.mxu0 %v7858_v55  ;;  %v7991_v55 = vsub.f32 %v371_v47, %v7965_v5  ;;  %v11605_v47 = vand.u32 4294901760, %v7933_v43  ;;  %v8009_v15 = vsub.f32 %v7760_v19, %v11606_v14  ;;  %v8030_v14 = vand.u32 4294901760, %v373_v58 }
  0x29   : > { %6565 = vmatprep.subr.bf16.mxu0 %v7877_v61  ;;  %v8081_v59 = vsub.f32 %v7791_v28, %v11624_v13 }
  0x2a   : > { %11602 = vst [vmem:[#allocation25_spill] sm:$0xff] %v7991_v55  ;;  %v550_v4 = vsub.f32 %v7933_v43, %v11605_v47  ;;  %11607 = vst [vmem:[#allocation26_spill] sm:$0xff] %v8009_v15  ;;  %v374_v47 = vld [vmem:[%s7755_s10 + $0x68] sm:$0xff]  ;;  %v8024_v43 = vsub.f32 %v7765_v20, %v11610_v39 }
  0x2b   : > { %11613 = vst [vmem:[#allocation29_spill] sm:$0xff] %v8030_v14  ;;  %v8038_v39 = vand.u32 4294901760, %v374_v47  ;;  %11625 = vst [vmem:[#allocation36_spill] sm:$0xff] %v8081_v59  ;;  %v11286_v28 = vand.u32 4294901760, %v8081_v59 }
  0x2c   : > { %6567 = vmatpush3.bf16.msra.mxu0 %v7877_v61  ;;  %v11603_v61 = vand.u32 4294901760, %v7954_v34  ;;  %11611 = vst [vmem:[#allocation27_spill] sm:$0xff] %v8024_v43  ;;  %v11275_v20 = vand.u32 4294901760, %v8024_v43 }
  0x2d   : > { %6569 = vmatprep.subr.bf16.mxu0 %v7911_v42  ;;  %11615 = vst [vmem:[#allocation30_spill] sm:$0xff] %v8038_v39  ;;  %v8072_v0 = vsub.f32 %v374_v47, %v8038_v39 }
  0x2e   : > { %v863_v62 = vsub.f32 %v7954_v34, %v11603_v61  ;;  %v11608_v61 = vand.u32 4294901760, %v7946_v6 }
  0x2f   : > { %11622 = vst [vmem:[#allocation34_spill] sm:$0xff] %v8072_v0 }
  0x30   : > { %6571 = vmatpush3.bf16.msra.mxu0 %v7911_v42  ;;  %v870_v42 = vsub.f32 %v7959_v33, %v11604_v32  ;;  %v560_v37 = vsub.f32 %v7946_v6, %v11608_v61  ;;  %v11609_v32 = vand.u32 4294901760, %v7949_v60  ;;  %v375_v61 = vld [vmem:[%s7755_s10 + $0x70] sm:$0xff] }
  0x31   : > { %6573 = vmatprep.subr.bf16.mxu0 %v6572_v46  ;;  %v8048_v11 = vand.u32 4294901760, %v375_v61 }
  0x32   : > { %v8017_v57 = vsub.f32 %v7949_v60, %v11609_v32  ;;  %v11268_v32 = vand.u32 4294901760, %v8009_v15  ;;  %v864_v60 = vand.u32 4294901760, %v863_v62  ;;  %v871_v6 = vand.u32 4294901760, %v870_v42 }
  0x33   : > { %6093 = vmatmul.mubr.f32.vlgmr.msra.gmra.mrb[0].mxu0 %v511_v8  ;;  %v8028_v8 = vsub.f32 %v372_v17, %v7993_v12  ;;  %v561_v16 = vand.u32 4294901760, %v560_v37  ;;  %v11616_v62 = vand.u32 4294901760, %v7987_v18  ;;  %11617 = vst [vmem:[#allocation31_spill] sm:$0xff] %v8048_v11 }
  0x34   : > { %6575 = vmatpush3.bf16.msra.mxu0 %v6572_v46  ;;  %6095 = vmatprep.mubr.f32.mxu0 %v521_v63  ;;  %v551_v46 = vand.u32 4294901760, %v550_v4  ;;  %v11614_v63 = vand.u32 4294901760, %v7982_v24  ;;  %v877_v19 = vsub.f32 %v8009_v15, %v11268_v32  ;;  %v884_v4 = vsub.f32 %v8024_v43, %v11275_v20  ;;  %v377_v32 = vld [vmem:[%s7755_s10 + $0x80] sm:$0xff] }
  0x35   : > { %11612 = vst [vmem:[#allocation28_spill] sm:$0xff] %v8028_v8  ;;  %6577 = vmatprep.subr.bf16.mxu0 %v6576_v25  ;;  %v8046_v42 = vsub.f32 %v7987_v18, %v11616_v62  ;;  %v8061_v62 = vsub.f32 %v373_v58, %v8030_v14  ;;  %v378_v18 = vld [vmem:[%s7755_s10 + $0x88] sm:$0xff]  ;;  %v379_v58 = vld [vmem:[%s7755_s10 + $0x90] sm:$0xff] }
  0x36   : > { %v580_v17 = vsub.f32 %v7982_v24, %v11614_v63  ;;  %v571_v63 = vand.u32 4294901760, %v8017_v57  ;;  %v11620_v24 = vand.u32 4294901760, %v7783_v26  ;;  %v878_v57 = vand.u32 4294901760, %v877_v19  ;;  %v381_v19 = vld [vmem:[%s7755_s10 + $0xa0] sm:$0xff] }
  0x37   : > { %6096 = vmatmul.mubr.f32.gmra.mrb[2].mxu0 %v531_v44  ;;  %v11618_v44 = vand.u32 4294901760, %v7991_v55  ;;  %11619 = vst [vmem:[#allocation32_spill] sm:$0xff] %v8061_v62  ;;  %v885_v20 = vand.u32 4294901760, %v884_v4  ;;  %v591_v47 = vand.u32 4294901760, %v8046_v42  ;;  %v380_v42 = vld [vmem:[%s7755_s10 + $0x98] sm:$0xff] }
  0x38   : > { %6098 = vmatprep.mubr.f32.mxu0 %v541_v41  ;;  %6579 = vmatpush3.bf16.msra.mxu0 %v6576_v25  ;;  %v8068_v1 = vsub.f32 %v7783_v26, %v11620_v24  ;;  %v11285_v25 = vand.u32 4294901760, %v8028_v8  ;;  %v6584_v41 = vpack.c.bf16 %v871_v6, %v864_v60  ;;  %v581_v24 = vand.u32 4294901760, %v580_v17 }
  0x39   : > { %v8058_v37 = vsub.f32 %v7991_v55, %v11618_v44  ;;  %6581 = vmatprep.subr.bf16.mxu0 %v6580_v23  ;;  %v8074_v44 = vand.u32 4294901760, %v376_v3  ;;  %v8084_v26 = vsub.f32 %v375_v61, %v8048_v11  ;;  %v8086_v6 = vand.u32 4294901760, %v377_v32 }
  0x3a   : > { %11621 = vst [vmem:[#allocation33_spill] sm:$0xff] %v8068_v1  ;;  %v11284_v55 = vand.u32 4294901760, %v8068_v1  ;;  %v8088_v60 = vand.u32 4294901760, %v378_v18  ;;  %v6588_v17 = vpack.c.bf16 %v885_v20, %v878_v57 }
  0x3b   : > { %11623 = vst [vmem:[#allocation35_spill] sm:$0xff] %v8074_v44  ;;  %6099 = vmatmul.mubr.f32.gmra.mrb[4].mxu0 %v551_v46  ;;  %11626 = vst [vmem:[#allocation37_spill] sm:$0xff] %v8084_v26  ;;  %v601_v61 = vand.u32 4294901760, %v8058_v37  ;;  %v610_v46 = vsub.f32 %v8028_v8, %v11285_v25  ;;  %v8105_v4 = vsub.f32 %v376_v3, %v8074_v44 }
  0x3c   : > { %11627 = vst [vmem:[#allocation38_spill] sm:$0xff] %v8086_v6  ;;  %11628 = vst [vmem:[#allocation39_spill] sm:$0xff] %v8088_v60  ;;  %6101 = vmatprep.mubr.f32.mxu0 %v561_v16  ;;  %6583 = vmatpush3.bf16.msra.mxu0 %v6580_v23  ;;  %v891_v13 = vsub.f32 %v8068_v1, %v11284_v55  ;;  %v8100_v16 = vand.u32 4294901760, %v379_v58  ;;  %v898_v37 = vsub.f32 %v8081_v59, %v11286_v28 }
  0x3d   : > { %6585 = vmatprep.subr.bf16.mxu0 %v6584_v41  ;;  %v8113_v20 = vsub.f32 %v377_v32, %v8086_v6  ;;  %v8116_v57 = vsub.f32 %v378_v18, %v8088_v60  ;;  %v11631_v23 = vand.u32 4294901760, %v7805_v35  ;;  %v11635_v32 = vand.u32 4294901760, %v7810_v36 }
  0x3e   : > { %11629 = vst [vmem:[#allocation40_spill] sm:$0xff] %v8100_v16  ;;  %v892_v55 = vand.u32 4294901760, %v891_v13  ;;  %v11633_v13 = vand.u32 4294901760, %v8061_v62  ;;  %v899_v25 = vand.u32 4294901760, %v898_v37  ;;  %v611_v8 = vand.u32 4294901760, %v610_v46 }
  0x3f   : > { %6102 = vmatmul.mubr.f32.gmra.mrb[6].mxu0 %v571_v63  ;;  %11630 = vst [vmem:[#allocation41_spill] sm:$0xff] %v8116_v57  ;;  %v8121_v3 = vsub.f32 %v7805_v35, %v11631_v23  ;;  %v8126_v63 = vand.u32 4294901760, %v380_v42  ;;  %v8131_v18 = vsub.f32 %v7810_v36, %v11635_v32  ;;  %v8134_v35 = vsub.f32 %v379_v58, %v8100_v16 }
  0x40   : > { %6104 = vmatprep.mubr.f32.mxu0 %v581_v24  ;;  %v620_v28 = vsub.f32 %v8061_v62, %v11633_v13  ;;  %6587 = vmatpush3.bf16.msra.mxu0 %v6584_v41  ;;  %v8136_v23 = vand.u32 4294901760, %v381_v19  ;;  %v382_v24 = vld [vmem:[%s7755_s10 + $0xa8] sm:$0xff]  ;;  %v11639_v41 = vand.u32 4294901760, %v8072_v0  ;;  %v11307_v37 = vand.u32 4294901760, %v8105_v4 }
  0x41   : > { %11632 = vst [vmem:[#allocation42_spill] sm:$0xff] %v8121_v3  ;;  %11634 = vst [vmem:[#allocation43_spill] sm:$0xff] %v8126_v63  ;;  %6589 = vmatprep.subr.bf16.mxu0 %v6588_v17  ;;  %v11299_v56 = vand.u32 4294901760, %v8121_v3  ;;  %v6592_v62 = vpack.c.bf16 %v899_v25, %v892_v55  ;;  %v11300_v36 = vand.u32 4294901760, %v8131_v18  ;;  %v11640_v46 = vand.u32 4294901760, %v8084_v26 }
  0x42   : > { %11636 = vst [vmem:[#allocation44_spill] sm:$0xff] %v8131_v18  ;;  %11637 = vst [vmem:[#allocation45_spill] sm:$0xff] %v8134_v35  ;;  %v630_v13 = vsub.f32 %v8072_v0, %v11639_v41  ;;  %v621_v41 = vand.u32 4294901760, %v620_v28  ;;  %v8155_v55 = vsub.f32 %v380_v42, %v8126_v63  ;;  %v8157_v25 = vand.u32 4294901760, %v382_v24  ;;  %v384_v0 = vld [vmem:[%s7755_s10 + $0xb8] sm:$0xff] }
  0x43   : > { %11638 = vst [vmem:[#allocation46_spill] sm:$0xff] %v8136_v23  ;;  %6105 = vmatmul.mubr.f32.gmra.mrb[8].mxu0 %v591_v47  ;;  %v640_v58 = vsub.f32 %v8084_v26, %v11640_v46  ;;  %v905_v60 = vsub.f32 %v8121_v3, %v11299_v56  ;;  %v912_v47 = vsub.f32 %v8131_v18, %v11300_v36  ;;  %v11644_v36 = vand.u32 4294901760, %v8113_v20 }
  0x44   : > { %6107 = vmatprep.mubr.f32.mxu0 %v601_v61  ;;  %6591 = vmatpush3.bf16.msra.mxu0 %v6588_v17  ;;  %11641 = vst [vmem:[#allocation47_spill] sm:$0xff] %v8155_v55  ;;  %11642 = vst [vmem:[#allocation48_spill] sm:$0xff] %v8157_v25  ;;  %v8164_v16 = vsub.f32 %v381_v19, %v8136_v23  ;;  %v8166_v61 = vand.u32 4294901760, %v383_v27  ;;  %v631_v17 = vand.u32 4294901760, %v630_v13  ;;  %v11645_v19 = vand.u32 4294901760, %v8116_v57 }
  0x45   : > { %6593 = vmatprep.subr.bf16.mxu0 %v6592_v62  ;;  %v906_v28 = vand.u32 4294901760, %v905_v60  ;;  %v650_v42 = vsub.f32 %v8105_v4, %v11307_v37  ;;  %v913_v56 = vand.u32 4294901760, %v912_v47  ;;  %v641_v32 = vand.u32 4294901760, %v640_v58  ;;  %v385_v58 = vld [vmem:[%s7755_s10 + $0xc0] sm:$0xff] }
  0x46   : > { %11643 = vst [vmem:[#allocation49_spill] sm:$0xff] %v8166_v61  ;;  %v660_v46 = vsub.f32 %v8113_v20, %v11644_v36  ;;  %v670_v26 = vsub.f32 %v8116_v57, %v11645_v19  ;;  %v11646_v23 = vand.u32 4294901760, %v7837_v49  ;;  %v11311_v13 = vand.u32 4294901760, %v8155_v55 }
  0x47   : > { %6108 = vmatmul.mubr.f32.gmra.mrb[10].mxu0 %v611_v8  ;;  %v8185_v8 = vsub.f32 %v382_v24, %v8157_v25  ;;  %v6596_v47 = vpack.c.bf16 %v913_v56, %v906_v28  ;;  %v11648_v36 = vand.u32 4294901760, %v7842_v50  ;;  %v11650_v19 = vand.u32 4294901760, %v8134_v35 }
  0x48   : > { %v8181_v60 = vsub.f32 %v7837_v49, %v11646_v23  ;;  %6110 = vmatprep.mubr.f32.mxu0 %v621_v41  ;;  %6595 = vmatpush3.bf16.msra.mxu0 %v6592_v62  ;;  %v8198_v23 = vsub.f32 %v383_v27, %v8166_v61  ;;  %v651_v62 = vand.u32 4294901760, %v650_v42  ;;  %v8201_v41 = vand.u32 4294901760, %v384_v0  ;;  %v386_v49 = vld [vmem:[%s7755_s10 + $0xc8] sm:$0xff] }
  0x49   : > { %v8191_v37 = vsub.f32 %v7842_v50, %v11648_v36  ;;  %v680_v57 = vsub.f32 %v8134_v35, %v11650_v19  ;;  %6597 = vmatprep.subr.bf16.mxu0 %v6596_v47  ;;  %v661_v50 = vand.u32 4294901760, %v660_v46  ;;  %v671_v28 = vand.u32 4294901760, %v670_v26 }
  0x4a   : > { %11647 = vst [vmem:[#allocation50_spill] sm:$0xff] %v8181_v60  ;;  %v11310_v24 = vand.u32 4294901760, %v8181_v60  ;;  %11651 = vst [vmem:[#allocation52_spill] sm:$0xff] %v8201_v41  ;;  %v8204_v36 = vand.u32 4294901760, %v385_v58  ;;  %v690_v27 = vsub.f32 %v8155_v55, %v11311_v13  ;;  %v8219_v26 = vpack.c.bf16 %v7851_v54, %v7849_v53  ;;  %v387_v55 = vld [vmem:[%s7755_s10 + $0xd0] sm:$0xff] }
  0x4b   : > { %11649 = vst [vmem:[#allocation51_spill] sm:$0xff] %v8191_v37  ;;  %v11316_v56 = vand.u32 4294901760, %v8191_v37  ;;  %6111 = vmatmul.mubr.f32.gmra.mrb[12].mxu0 %v631_v17  ;;  %v681_v17 = vand.u32 4294901760, %v680_v57  ;;  %v8235_v57 = vpack.c.bf16 %v7959_v33, %v7954_v34  ;;  %v8240_v13 = vand.u32 4294901760, %v386_v49 }
  0x4c   : > { %11652 = vst [vmem:[#allocation53_spill] sm:$0xff] %v8204_v36  ;;  %v919_v19 = vsub.f32 %v8181_v60, %v11310_v24  ;;  %6113 = vmatprep.mubr.f32.mxu0 %v641_v32  ;;  %6599 = vmatpush3.bf16.msra.mxu0 %v6596_v47  ;;  %v11653_v24 = vand.u32 4294901760, %v8164_v16  ;;  %v8227_v47 = vsub.f32 %v384_v0, %v8201_v41 }
  0x4d   : > { %v926_v46 = vsub.f32 %v8191_v37, %v11316_v56  ;;  %v8231_v56 = vpack.c.bf16 %v7904_v29, %v7899_v21  ;;  %11656 = vst [vmem:[#allocation56_spill] sm:$0xff] %v8240_v13  ;;  %v8248_v0 = vpack.c.bf16 %v8081_v59, %v8068_v1  ;;  %v388_v29 = vld [vmem:[%s7755_s10 + $0xd8] sm:$0xff] }
  0x4e   : > { %v700_v32 = vsub.f32 %v8164_v16, %v11653_v24  ;;  %v920_v42 = vand.u32 4294901760, %v919_v19  ;;  %11654 = vst [vmem:[#allocation54_spill] sm:$0xff] %v8227_v47  ;;  %v8238_v24 = vsub.f32 %v385_v58, %v8204_v36  ;;  %v8244_v19 = vpack.c.bf16 %v8024_v43, %v8009_v15  ;;  %v389_v43 = vld [vmem:[%s7755_s10 + $0xe0] sm:$0xff] }
  0x4f   : > { %v927_v35 = vand.u32 4294901760, %v926_v46  ;;  %6114 = vmatmul.mubr.f32.gmra.mrb[14].mxu0 %v651_v62  ;;  %v8250_v46 = vand.u32 4294901760, %v387_v55  ;;  %v8255_v62 = vpack.c.bf16 %v8131_v18, %v8121_v3  ;;  %v8259_v58 = vpack.c.bf16 %v8191_v37, %v8181_v60 }
  0x50   : > { %11655 = vst [vmem:[#allocation55_spill] sm:$0xff] %v8238_v24  ;;  %6116 = vmatprep.mubr.f32.mxu0 %v661_v50  ;;  %v8264_v15 = vpack.c.bf16 %v7796_v31, %v7794_v30  ;;  %v11658_v50 = vand.u32 4294901760, %v8185_v8  ;;  %v11659_v18 = vand.u32 4294901760, %v8198_v23  ;;  %v8274_v60 = vsub.f32 %v386_v49, %v8240_v13 }
  0x51   : > { %11657 = vst [vmem:[#allocation57_spill] sm:$0xff] %v8250_v46  ;;  %v6600_v33 = vpack.c.bf16 %v927_v35, %v920_v42  ;;  %v691_v42 = vand.u32 4294901760, %v690_v27  ;;  %v8276_v3 = vand.u32 4294901760, %v388_v29  ;;  %v701_v1 = vand.u32 4294901760, %v700_v32  ;;  %v391_v27 = vld [vmem:[%s7755_s10 + $0xf0] sm:$0xff] }
  0x52   : > { %v710_v59 = vsub.f32 %v8185_v8, %v11658_v50  ;;  %v720_v37 = vsub.f32 %v8198_v23, %v11659_v18  ;;  %11660 = vst [vmem:[#allocation58_spill] sm:$0xff] %v8274_v60  ;;  %v8280_v50 = vsub.f32 %v387_v55, %v8250_v46  ;;  %v8282_v35 = vand.u32 4294901760, %v389_v43 }
  0x53   : > { %6601 = vmatprep.subr.bf16.mxu0 %v6600_v33  ;;  %6117 = vmatmul.mubr.f32.gmra.mrb[16].mxu0 %v671_v28  ;;  %11661 = vst [vmem:[#allocation59_spill] sm:$0xff] %v8276_v3  ;;  %v390_v28 = vld [vmem:[%s7755_s10 + $0xe8] sm:$0xff]  ;;  %v11663_v49 = vand.u32 4294901760, %v8227_v47  ;;  %v11335_v32 = vand.u32 4294901760, %v8274_v60  ;;  %v8292_v55 = vsub.f32 %v388_v29, %v8276_v3 }
  0x54   : > { %6119 = vmatprep.mubr.f32.mxu0 %v681_v17  ;;  %11662 = vst [vmem:[#allocation60_spill] sm:$0xff] %v8282_v35  ;;  %6603 = vmatpush3.bf16.msra.mxu0 %v6600_v33  ;;  %v711_v18 = vand.u32 4294901760, %v710_v59  ;;  %v721_v17 = vand.u32 4294901760, %v720_v37  ;;  %v8294_v34 = vand.u32 4294901760, %v390_v28  ;;  %v11666_v33 = vand.u32 4294901760, %v8238_v24  ;;  %v392_v37 = vld [vmem:[%s7755_s10 + $0xf8] sm:$0xff]  ;;  %s10690_s10 = scalar_lea.vmem %s11229_s7, %s7516_s25 }
  0x55   : > { %6605 = vmatprep.subr.bf16.mxu0 %v8264_v15  ;;  %v730_v21 = vsub.f32 %v8227_v47, %v11663_v49  ;;  %11664 = vst [vmem:[#allocation61_spill] sm:$0xff] %v8292_v55  ;;  %v8301_v53 = vsub.f32 %v389_v43, %v8282_v35  ;;  %v8303_v49 = vand.u32 4294901760, %v391_v27  ;;  %v750_v29 = vsub.f32 %v8274_v60, %v11335_v32 }
  0x56   : > { %11665 = vst [vmem:[#allocation62_spill] sm:$0xff] %v8294_v34  ;;  %v740_v54 = vsub.f32 %v8238_v24, %v11666_v33  ;;  %v8311_v47 = vsub.f32 %v390_v28, %v8294_v34  ;;  %v8313_v33 = vand.u32 4294901760, %v392_v37  ;;  %v11669_v43 = vand.u32 4294901760, %v8280_v50 }
  0x57   : > { %6120 = vmatmul.mubr.f32.gmra.mrb[18].mxu0 %v691_v42  ;;  %11667 = vst [vmem:[#allocation63_spill] sm:$0xff] %v8303_v49  ;;  %v731_v42 = vand.u32 4294901760, %v730_v21  ;;  %v11344_v21 = vand.u32 4294901760, %v8301_v53  ;;  %v751_v32 = vand.u32 4294901760, %v750_v29 }
  0x58   : > { %6122 = vmatprep.mubr.f32.mxu0 %v701_v1  ;;  %v11338_v1 = vand.u32 4294901760, %v8292_v55  ;;  %11668 = vst [vmem:[#allocation64_spill] sm:$0xff] %v8313_v33  ;;  %v741_v59 = vand.u32 4294901760, %v740_v54  ;;  %v760_v24 = vsub.f32 %v8280_v50, %v11669_v43  ;;  %v11343_v60 = vand.u32 4294901760, %v8311_v47 }
  0x59   : > { %v780_v43 = vsub.f32 %v8301_v53, %v11344_v21  ;;  %v11691_v21 = vld [vmem:[#allocation12_spill] sm:$0xff] }
  0x5a   : > { %v770_v28 = vsub.f32 %v8292_v55, %v11338_v1  ;;  %v761_v54 = vand.u32 4294901760, %v760_v24  ;;  %v790_v29 = vsub.f32 %v8311_v47, %v11343_v60  ;;  %v11690_v60 = vld [vmem:[#allocation32_spill] sm:$0xff] }
  0x5b   : > { %6123 = vmatmul.mubr.f32.gmra.mrb[20].mxu0 %v711_v18  ;;  %v8320_v18 = vsub.f32 %v391_v27, %v8303_v49  ;;  %v781_v55 = vand.u32 4294901760, %v780_v43  ;;  %v11680_v43 = vld [vmem:[#allocation18_spill] sm:$0xff] }
  0x5c   : > { %6125 = vmatprep.mubr.f32.mxu0 %v721_v17  ;;  %v8327_v17 = vsub.f32 %v392_v37, %v8313_v33 }
  0x5d   : > { %v11342_v27 = vand.u32 4294901760, %v8320_v18 }
  0x5e   : > { %v11341_v1 = vand.u32 4294901760, %v8327_v17 }
  0x5f   : > { %6126 = vmatmul.mubr.f32.gmra.mrb[22].mxu0 %v731_v42  ;;  %v771_v42 = vand.u32 4294901760, %v770_v28  ;;  %v800_v24 = vsub.f32 %v8320_v18, %v11342_v27  ;;  %v11689_v27 = vld [vmem:[#allocation28_spill] sm:$0xff] }
  0x60   : > { %6128 = vmatprep.mubr.f32.mxu0 %v741_v59  ;;  %v791_v59 = vand.u32 4294901760, %v790_v29  ;;  %v810_v37 = vsub.f32 %v8327_v17, %v11341_v1  ;;  %v11682_v29 = vld [vmem:[#allocation4_spill] sm:$0xff]  ;;  %v11688_v1 = vld [vmem:[#allocation9_spill] sm:$0xff] }
  0x62   : > { %v811_v28 = vand.u32 4294901760, %v810_v37  ;;  %v11685_v37 = vld [vmem:[#allocation6_spill] sm:$0xff] }
  0x63   : > { %6129 = vmatmul.mubr.f32.gmra.mrb[24].mxu0 %v751_v32  ;;  %v801_v32 = vand.u32 4294901760, %v800_v24  ;;  %v11683_v24 = vld [vmem:[#allocation20_spill] sm:$0xff] }
  0x64   : > { %6131 = vmatprep.mubr.f32.mxu0 %v761_v54  ;;  %v11679_v54 = vld [vmem:[#allocation3_spill] sm:$0xff] }
  0x67   : > { %6132 = vmatmul.mubr.f32.gmra.mrb[26].mxu0 %v771_v42  ;;  %v11681_v42 = vld [vmem:[#allocation19_spill] sm:$0xff] }
  0x68   : > { %6134 = vmatprep.mubr.f32.mxu0 %v781_v55  ;;  %v11678_v55 = vld [vmem:[#allocation14_spill] sm:$0xff] }
  0x6b   : > { %6135 = vmatmul.mubr.f32.gmra.mrb[28].mxu0 %v791_v59  ;;  %v11684_v59 = vld [vmem:[#allocation23_spill] sm:$0xff] }
  0x6c   : > { %6137 = vmatprep.mubr.f32.mxu0 %v801_v32  ;;  %v11686_v32 = vld [vmem:[#allocation24_spill] sm:$0xff] }
  0x6f   : > { %6138 = vmatmul.mubr.f32.gmra.mrb[30].mxu0 %v811_v28  ;;  %v11687_v28 = vld [vmem:[#allocation25_spill] sm:$0xff] }
  0x70   : > { %6172 = vmatprep.mubr.f32.mxu0 %v7768_v22 }
  0x73   : > { %6173 = vmatmul.mubr.f32.vlgmr.msra.gmra.mrb[0].mxu0 %v7823_v40 }
  0x74   : > { %6607 = vmatpush3.bf16.msra.mxu0 %v8264_v15  ;;  %6175 = vmatprep.mubr.f32.mxu0 %v7829_v45  ;;  %v11670_v15 = vld [vmem:[#allocation39_spill] sm:$0xff] }
  0x75   : > { %6609 = vmatprep.subr.bf16.mxu0 %v8219_v26 }
  0x77   : > { %6176 = vmatmul.mubr.f32.gmra.mrb[2].mxu0 %v7844_v51 }
  0x78   : > { %6178 = vmatprep.mubr.f32.mxu0 %v7846_v52  ;;  %6611 = vmatpush3.bf16.msra.mxu0 %v8219_v26  ;;  %v11672_v26 = vld [vmem:[#allocation46_spill] sm:$0xff] }
  0x79   : > { %6613 = vmatprep.subr.bf16.mxu0 %v8231_v56 }
  0x7b   : > { %6179 = vmatmul.mubr.f32.gmra.mrb[4].mxu0 %v7894_v9 }
  0x7c   : > { %6181 = vmatprep.mubr.f32.mxu0 %v7913_v48  ;;  %6615 = vmatpush3.bf16.msra.mxu0 %v8231_v56  ;;  %v11671_v56 = vld [vmem:[#allocation40_spill] sm:$0xff] }
  0x7d   : > { %6617 = vmatprep.subr.bf16.mxu0 %v8235_v57 }
  0x7f   : > { %6182 = vmatmul.mubr.f32.gmra.mrb[6].mxu0 %v7915_v7 }
  0x80   : > { %6184 = vmatprep.mubr.f32.mxu0 %v7941_v2  ;;  %6619 = vmatpush3.bf16.msra.mxu0 %v8235_v57  ;;  %v11673_v57 = vld [vmem:[#allocation5_spill] sm:$0xff] }
  0x81   : > { %6621 = vmatprep.subr.bf16.mxu0 %v8244_v19 }
  0x83   : > { %6185 = vmatmul.mubr.f32.gmra.mrb[8].mxu0 %v7943_v38 }
  0x84   : > { %6187 = vmatprep.mubr.f32.mxu0 %v7965_v5  ;;  %6623 = vmatpush3.bf16.msra.mxu0 %v8244_v19  ;;  %v11674_v19 = vld [vmem:[#allocation10_spill] sm:$0xff] }
  0x85   : > { %6625 = vmatprep.subr.bf16.mxu0 %v8248_v0 }
  0x87   : > { %6188 = vmatmul.mubr.f32.gmra.mrb[10].mxu0 %v7993_v12 }
  0x88   : > { %6190 = vmatprep.mubr.f32.mxu0 %v8030_v14  ;;  %6627 = vmatpush3.bf16.msra.mxu0 %v8248_v0  ;;  %v11675_v0 = vld [vmem:[#allocation11_spill] sm:$0xff] }
  0x89   : > { %6629 = vmatprep.subr.bf16.mxu0 %v8255_v62 }
  0x8b   : > { %6191 = vmatmul.mubr.f32.gmra.mrb[12].mxu0 %v8038_v39  ;;  %v11713_v39 = vld [vmem:[#allocation16_spill] sm:$0xff] }
  0x8c   : > { %6193 = vmatprep.mubr.f32.mxu0 %v8048_v11  ;;  %6631 = vmatpush3.bf16.msra.mxu0 %v8255_v62  ;;  %v11676_v62 = vld [vmem:[#allocation2_spill] sm:$0xff] }
  0x8d   : > { %6633 = vmatprep.subr.bf16.mxu0 %v8259_v58 }
  0x8f   : > { %6194 = vmatmul.mubr.f32.gmra.mrb[14].mxu0 %v8074_v44  ;;  %v11710_v44 = vand.u32 4294901760, %v11675_v0 }
  0x90   : > { %6196 = vmatprep.mubr.f32.mxu0 %v8086_v6  ;;  %6635 = vmatpush3.bf16.msra.mxu0 %v8259_v58  ;;  %v11677_v58 = vld [vmem:[#allocation13_spill] sm:$0xff]  ;;  %v11709_v6 = vand.u32 4294901760, %v11674_v19 }
  0x91   : > { %6637 = vmatprep.subr.bf16.mxu0 %v7721_v10 }
  0x93   : > { %6197 = vmatmul.mubr.f32.gmra.mrb[16].mxu0 %v11670_v15 }
  0x94   : > { %6199 = vmatprep.mubr.f32.mxu0 %v11671_v56 }
  0x97   : > { %6200 = vmatmul.mubr.f32.gmra.mrb[18].mxu0 %v8126_v63  ;;  %v11707_v63 = vld [vmem:[#allocation8_spill] sm:$0xff] }
  0x98   : > { %6202 = vmatprep.mubr.f32.mxu0 %v11672_v26  ;;  %v11708_v56 = vand.u32 4294901760, %v11707_v63  ;;  %v11717_v63 = vld [vmem:[#allocation21_spill] sm:$0xff] }
  0x9b   : > { %6203 = vmatmul.mubr.f32.gmra.mrb[20].mxu0 %v8157_v25  ;;  %v11705_v25 = vld [vmem:[#allocation7_spill] sm:$0xff] }
  0x9c   : > { %6205 = vmatprep.mubr.f32.mxu0 %v8166_v61  ;;  %v11704_v61 = vand.u32 4294901760, %v11673_v57  ;;  %v11706_v26 = vand.u32 4294901760, %v11705_v25  ;;  %v11716_v25 = vand.u32 4294901760, %v11678_v55 }
  0x9e   : > { %v6672_v15 = vpack.c.bf16 %v11708_v56, %v11706_v26 }
  0x9f   : > { %6206 = vmatmul.mubr.f32.gmra.mrb[22].mxu0 %v8201_v41  ;;  %v11699_v41 = vld [vmem:[#allocation47_spill] sm:$0xff] }
  0xa0   : > { %6208 = vmatprep.mubr.f32.mxu0 %v8204_v36  ;;  %v11698_v36 = vld [vmem:[#allocation45_spill] sm:$0xff] }
  0xa3   : > { %6209 = vmatmul.mubr.f32.gmra.mrb[24].mxu0 %v8240_v13  ;;  %v11697_v13 = vld [vmem:[#allocation41_spill] sm:$0xff] }
  0xa4   : > { %6211 = vmatprep.mubr.f32.mxu0 %v8250_v46 }
  0xa7   : > { %6212 = vmatmul.mubr.f32.gmra.mrb[26].mxu0 %v8276_v3  ;;  %v11696_v3 = vand.u32 4294901760, %v7796_v31  ;;  %v11701_v31 = vld [vmem:[#allocation55_spill] sm:$0xff] }
  0xa8   : > { %6214 = vmatprep.mubr.f32.mxu0 %v8282_v35  ;;  %v11695_v35 = vand.u32 4294901760, %v7794_v30  ;;  %v11700_v30 = vld [vmem:[#allocation54_spill] sm:$0xff] }
  0xaa   : > { %v6668_v46 = vpack.c.bf16 %v11696_v3, %v11695_v35  ;;  %v11702_v3 = vld [vmem:[#allocation58_spill] sm:$0xff]  ;;  %v11703_v35 = vld [vmem:[#allocation61_spill] sm:$0xff] }
  0xab   : > { %6215 = vmatmul.mubr.f32.gmra.mrb[28].mxu0 %v8294_v34  ;;  %v11694_v34 = vld [vmem:[#allocation17_spill] sm:$0xff] }
  0xac   : > { %6217 = vmatprep.mubr.f32.mxu0 %v8303_v49  ;;  %v11693_v49 = vld [vmem:[#allocation37_spill] sm:$0xff] }
  0xaf   : > { %6218 = vmatmul.mubr.f32.gmra.mrb[30].mxu0 %v8313_v33  ;;  %v11692_v33 = vld [vmem:[#allocation34_spill] sm:$0xff] }
  0xb0   : > { %6252 = vmatprep.mubr.f32.mxu0 %v11673_v57 }
  0xb3   : > { %6253 = vmatmul.mubr.f32.vlgmr.msra.gmra.mrb[0].mxu0 %v11674_v19 }
  0xb4   : > { %6639 = vmatpush3.bf16.msra.mxu0 %v7721_v10  ;;  %6255 = vmatprep.mubr.f32.mxu0 %v11675_v0  ;;  %v11728_v0 = vand.u32 4294901760, %v11684_v59 }
  0xb5   : > { %6641 = vmatprep.subr.bf16.mxu0 %v11676_v62 }
  0xb7   : > { %6256 = vmatmul.mubr.f32.gmra.mrb[2].mxu0 %v11677_v58 }
  0xb8   : > { %6258 = vmatprep.mubr.f32.mxu0 %v11678_v55  ;;  %6643 = vmatpush3.bf16.msra.mxu0 %v11676_v62 }
  0xb9   : > { %6645 = vmatprep.subr.bf16.mxu0 %v11679_v54 }
  0xbb   : > { %6259 = vmatmul.mubr.f32.gmra.mrb[4].mxu0 %v11680_v43 }
  0xbc   : > { %6261 = vmatprep.mubr.f32.mxu0 %v11681_v42  ;;  %6647 = vmatpush3.bf16.msra.mxu0 %v11679_v54 }
  0xbd   : > { %6649 = vmatprep.subr.bf16.mxu0 %v11682_v29 }
  0xbf   : > { %6262 = vmatmul.mubr.f32.gmra.mrb[6].mxu0 %v11683_v24 }
  0xc0   : > { %6264 = vmatprep.mubr.f32.mxu0 %v11684_v59  ;;  %6651 = vmatpush3.bf16.msra.mxu0 %v11682_v29 }
  0xc1   : > { %6653 = vmatprep.subr.bf16.mxu0 %v11685_v37 }
  0xc3   : > { %6265 = vmatmul.mubr.f32.gmra.mrb[8].mxu0 %v11686_v32 }
  0xc4   : > { %6267 = vmatprep.mubr.f32.mxu0 %v11687_v28  ;;  %6655 = vmatpush3.bf16.msra.mxu0 %v11685_v37 }
  0xc5   : > { %6657 = vmatprep.subr.bf16.mxu0 %v11688_v1 }
  0xc7   : > { %6268 = vmatmul.mubr.f32.gmra.mrb[10].mxu0 %v11689_v27 }
  0xc8   : > { %6270 = vmatprep.mubr.f32.mxu0 %v11690_v60  ;;  %6659 = vmatpush3.bf16.msra.mxu0 %v11688_v1 }
  0xc9   : > { %6661 = vmatprep.subr.bf16.mxu0 %v11691_v21 }
  0xcb   : > { %6271 = vmatmul.mubr.f32.gmra.mrb[12].mxu0 %v11692_v33 }
  0xcc   : > { %6273 = vmatprep.mubr.f32.mxu0 %v11693_v49  ;;  %6663 = vmatpush3.bf16.msra.mxu0 %v11691_v21  ;;  %v11714_v21 = vand.u32 4294901760, %v11713_v39  ;;  %v11723_v39 = vld [vmem:[#allocation26_spill] sm:$0xff] }
  0xcd   : > { %6665 = vmatprep.subr.bf16.mxu0 %v11694_v34 }
  0xcf   : > { %6274 = vmatmul.mubr.f32.gmra.mrb[14].mxu0 %v8105_v4 }
  0xd0   : > { %6276 = vmatprep.mubr.f32.mxu0 %v8113_v20  ;;  %6667 = vmatpush3.bf16.msra.mxu0 %v11694_v34  ;;  %v11711_v34 = vld [vmem:[#allocation15_spill] sm:$0xff] }
  0xd1   : > { %6669 = vmatprep.subr.bf16.mxu0 %v6668_v46  ;;  %v11712_v11 = vand.u32 4294901760, %v11711_v34  ;;  %v11722_v34 = vand.u32 4294901760, %v11681_v42 }
  0xd3   : > { %6277 = vmatmul.mubr.f32.gmra.mrb[16].mxu0 %v11697_v13  ;;  %v6676_v14 = vpack.c.bf16 %v11714_v21, %v11712_v11  ;;  %v11724_v11 = vand.u32 4294901760, %v11723_v39  ;;  %v11725_v21 = vld [vmem:[#allocation27_spill] sm:$0xff] }
  0xd4   : > { %6279 = vmatprep.mubr.f32.mxu0 %v11698_v36  ;;  %v11726_v57 = vand.u32 4294901760, %v11725_v21  ;;  %v11746_v21 = vand.u32 4294901760, %v11693_v49  ;;  %v11751_v49 = vand.u32 4294901760, %v11699_v41 }
  0xd6   : > { %v6684_v19 = vpack.c.bf16 %v11726_v57, %v11724_v11  ;;  %v11745_v11 = vand.u32 4294901760, %v11692_v33  ;;  %v11749_v57 = vand.u32 4294901760, %v11697_v13  ;;  %v11750_v33 = vand.u32 4294901760, %v11698_v36 }
  0xd7   : > { %6280 = vmatmul.mubr.f32.gmra.mrb[18].mxu0 %v11699_v41  ;;  %v11756_v13 = vand.u32 4294901760, %v11701_v31  ;;  %v11757_v36 = vand.u32 4294901760, %v11702_v3  ;;  %v11758_v41 = vand.u32 4294901760, %v8280_v50 }
  0xd8   : > { %6282 = vmatprep.mubr.f32.mxu0 %v8164_v16 }
  0xdb   : > { %6283 = vmatmul.mubr.f32.gmra.mrb[20].mxu0 %v8185_v8 }
  0xdc   : > { %6285 = vmatprep.mubr.f32.mxu0 %v8198_v23 }
  0xdf   : > { %6286 = vmatmul.mubr.f32.gmra.mrb[22].mxu0 %v11700_v30 }
  0xe0   : > { %6288 = vmatprep.mubr.f32.mxu0 %v11701_v31  ;;  %v11763_v31 = vand.u32 4294901760, %v8327_v17 }
  0xe3   : > { %6289 = vmatmul.mubr.f32.gmra.mrb[24].mxu0 %v11702_v3  ;;  %v2425_v3 = vld [vmem:[%s11225_s3 + $0x18] sm:$0xff] }
  0xe4   : > { %6291 = vmatprep.mubr.f32.mxu0 %v8280_v50  ;;  %v2423_v50 = vld [vmem:[%s11225_s3 + $0x8] sm:$0xff] }
  0xe7   : > { %6292 = vmatmul.mubr.f32.gmra.mrb[26].mxu0 %v11703_v35 }
  0xe8   : > { %6294 = vmatprep.mubr.f32.mxu0 %v8301_v53 }
  0xeb   : > { %6295 = vmatmul.mubr.f32.gmra.mrb[28].mxu0 %v8311_v47 }
  0xec   : > { %6297 = vmatprep.mubr.f32.mxu0 %v8320_v18 }
  0xef   : > { %6298 = vmatmul.mubr.f32.gmra.mrb[30].mxu0 %v8327_v17 }
  0xf0   : > { %6332 = vmatprep.mubr.f32.mxu0 %v11704_v61  ;;  %v11715_v61 = vand.u32 4294901760, %v11677_v58  ;;  %v11729_v58 = vld [vmem:[#allocation33_spill] sm:$0xff] }
  0xf1   : > { %v11730_v55 = vand.u32 4294901760, %v11729_v58  ;;  %v8557_v58 = vld [vmem:[%s11225_s3 + $0x48] sm:$0xff] }
  0xf3   : > { %6333 = vmatmul.mubr.f32.vlgmr.msra.gmra.mrb[0].mxu0 %v11709_v6  ;;  %v11718_v6 = vand.u32 4294901760, %v11717_v63 }
  0xf4   : > { %6671 = vmatpush3.bf16.msra.mxu0 %v6668_v46  ;;  %6335 = vmatprep.mubr.f32.mxu0 %v11710_v44  ;;  %v11719_v46 = vld [vmem:[#allocation22_spill] sm:$0xff]  ;;  %v11721_v44 = vand.u32 4294901760, %v11680_v43  ;;  %v11731_v43 = vld [vmem:[#allocation36_spill] sm:$0xff] }
  0xf5   : > { %6673 = vmatprep.subr.bf16.mxu0 %v6672_v15  ;;  %v11720_v56 = vand.u32 4294901760, %v11719_v46  ;;  %v11732_v42 = vand.u32 4294901760, %v11731_v43 }
  0xf7   : > { %6336 = vmatmul.mubr.f32.gmra.mrb[2].mxu0 %v11715_v61  ;;  %v6680_v26 = vpack.c.bf16 %v11720_v56, %v11718_v6  ;;  %v6688_v61 = vpack.c.bf16 %v11732_v42, %v11730_v55  ;;  %v11737_v6 = vld [vmem:[#allocation44_spill] sm:$0xff]  ;;  %v11739_v56 = vand.u32 4294901760, %v11689_v27  ;;  %v11747_v27 = vand.u32 4294901760, %v8105_v4  ;;  %v8566_v42 = vld [vmem:[%s11225_s3 + $0x58] sm:$0xff] }
  0xf8   : > { %6338 = vmatprep.mubr.f32.mxu0 %v11716_v25  ;;  %6675 = vmatpush3.bf16.msra.mxu0 %v6672_v15  ;;  %v11727_v15 = vand.u32 4294901760, %v11683_v24  ;;  %v11734_v25 = vand.u32 4294901760, %v11687_v28  ;;  %v11735_v24 = vld [vmem:[#allocation42_spill] sm:$0xff]  ;;  %v11738_v59 = vand.u32 4294901760, %v11737_v6  ;;  %v11753_v4 = vand.u32 4294901760, %v8185_v8 }
  0xf9   : > { %6677 = vmatprep.subr.bf16.mxu0 %v6676_v14  ;;  %v11736_v63 = vand.u32 4294901760, %v11735_v24  ;;  %v11760_v8 = vand.u32 4294901760, %v8301_v53  ;;  %v2466_v53 = vand.u32 4294901760, %v2423_v50  ;;  %v8587_v24 = vld [vmem:[%s11225_s3 + $0x78] sm:$0xff]  ;;  %v2486_v6 = vand.u32 4294901760, %v8566_v42 }
  0xfb   : > { %6339 = vmatmul.mubr.f32.gmra.mrb[4].mxu0 %v11721_v44  ;;  %v6692_v46 = vpack.c.bf16 %v11738_v59, %v11736_v63  ;;  %v8559_v55 = vsub.f32 %v2423_v50, %v2466_v53  ;;  %v2482_v63 = vand.u32 4294901760, %v8557_v58  ;;  %v11794_v50 = vld [vmem:[#allocation64_spill] sm:$0xff] }
  0xfc   : > { %6341 = vmatprep.mubr.f32.mxu0 %v11722_v34  ;;  %6679 = vmatpush3.bf16.msra.mxu0 %v6676_v14  ;;  %v11733_v14 = vand.u32 4294901760, %v11686_v32  ;;  %v11741_v32 = vld [vmem:[#allocation50_spill] sm:$0xff]  ;;  %v11743_v34 = vld [vmem:[#allocation51_spill] sm:$0xff] }
  0xfd   : > { %6681 = vmatprep.subr.bf16.mxu0 %v6680_v26  ;;  %v11742_v44 = vand.u32 4294901760, %v11741_v32  ;;  %v11744_v28 = vand.u32 4294901760, %v11743_v34  ;;  %11764 = vst [vmem:[#allocation5_spill] sm:$0xff] %v8559_v55  ;;  %v11776_v34 = vld [vmem:[#allocation17_spill] sm:$0xff] }
  0xff   : > { %6342 = vmatmul.mubr.f32.gmra.mrb[6].mxu0 %v11727_v15  ;;  %v6696_v39 = vpack.c.bf16 %v11744_v28, %v11742_v44  ;;  %v11755_v15 = vand.u32 4294901760, %v11700_v30  ;;  %v11762_v30 = vand.u32 4294901760, %v8320_v18  ;;  %v8550_v18 = vld [vmem:[%s11225_s3 + $0x38] sm:$0xff]  ;;  %v11774_v44 = vld [vmem:[#allocation30_spill] sm:$0xff] }
 0x100   : > { %6344 = vmatprep.mubr.f32.mxu0 %v11728_v0  ;;  %6683 = vmatpush3.bf16.msra.mxu0 %v6680_v26  ;;  %v11740_v26 = vand.u32 4294901760, %v11690_v60  ;;  %v11748_v60 = vand.u32 4294901760, %v8113_v20  ;;  %v11754_v20 = vand.u32 4294901760, %v8198_v23  ;;  %v11761_v23 = vand.u32 4294901760, %v8311_v47  ;;  %v8545_v47 = vld [vmem:[%s11225_s3 + $0x28] sm:$0xff] }
 0x101   : > { %6685 = vmatprep.subr.bf16.mxu0 %v6684_v19  ;;  %v2474_v17 = vand.u32 4294901760, %v8545_v47  ;;  %v2478_v0 = vand.u32 4294901760, %v8550_v18 }
 0x103   : > { %6345 = vmatmul.mubr.f32.gmra.mrb[8].mxu0 %v11733_v14  ;;  %v8577_v14 = vsub.f32 %v8550_v18, %v2478_v0 }
 0x104   : > { %6347 = vmatprep.mubr.f32.mxu0 %v11734_v25  ;;  %6687 = vmatpush3.bf16.msra.mxu0 %v6684_v19  ;;  %v11752_v19 = vand.u32 4294901760, %v8164_v16  ;;  %v11759_v16 = vand.u32 4294901760, %v11703_v35  ;;  %v2470_v35 = vand.u32 4294901760, %v2425_v3  ;;  %v8582_v25 = vld [vmem:[%s11225_s3 + $0x68] sm:$0xff] }
 0x105   : > { %6689 = vmatprep.subr.bf16.mxu0 %v6688_v61  ;;  %11767 = vst [vmem:[#allocation2_spill] sm:$0xff] %v8577_v14  ;;  %v2490_v59 = vand.u32 4294901760, %v8582_v25 }
 0x106   : > { %v8561_v43 = vsub.f32 %v2425_v3, %v2470_v35  ;;  %v8640_v28 = vpack.c.bf16 %v2470_v35, %v2466_v53 }
 0x107   : > { %6348 = vmatmul.mubr.f32.gmra.mrb[10].mxu0 %v11739_v56  ;;  %v8599_v56 = vsub.f32 %v8557_v58, %v2482_v63 }
 0x108   : > { %6350 = vmatprep.mubr.f32.mxu0 %v11740_v26  ;;  %6691 = vmatpush3.bf16.msra.mxu0 %v6688_v61  ;;  %11765 = vst [vmem:[#allocation10_spill] sm:$0xff] %v8561_v43  ;;  %v8572_v61 = vsub.f32 %v8545_v47, %v2474_v17  ;;  %v8610_v26 = vsub.f32 %v8582_v25, %v2490_v59  ;;  %11777 = vst [vmem:[#allocation19_spill] sm:$0xff] %v8640_v28 }
 0x109   : > { %6693 = vmatprep.subr.bf16.mxu0 %v6692_v46  ;;  %11768 = vst [vmem:[#allocation13_spill] sm:$0xff] %v8599_v56 }
 0x10a   : > { %11766 = vst [vmem:[#allocation11_spill] sm:$0xff] %v8572_v61  ;;  %11770 = vst [vmem:[#allocation3_spill] sm:$0xff] %v8610_v26 }
 0x10b   : > { %6351 = vmatmul.mubr.f32.gmra.mrb[12].mxu0 %v11745_v11  ;;  %v11781_v11 = vld [vmem:[#allocation40_spill] sm:$0xff] }
 0x10c   : > { %6353 = vmatprep.mubr.f32.mxu0 %v11746_v21  ;;  %6695 = vmatpush3.bf16.msra.mxu0 %v6692_v46  ;;  %v2494_v46 = vand.u32 4294901760, %v8587_v24  ;;  %v11782_v21 = vld [vmem:[#allocation43_spill] sm:$0xff] }
 0x10d   : > { %6697 = vmatprep.subr.bf16.mxu0 %v6696_v39 }
 0x10e   : > { %v8615_v32 = vsub.f32 %v8587_v24, %v2494_v46 }
 0x10f   : > { %6354 = vmatmul.mubr.f32.gmra.mrb[14].mxu0 %v11747_v27  ;;  %v11783_v27 = vld [vmem:[#allocation46_spill] sm:$0xff] }
 0x110   : > { %6356 = vmatprep.mubr.f32.mxu0 %v11748_v60  ;;  %6699 = vmatpush3.bf16.msra.mxu0 %v6696_v39  ;;  %11771 = vst [vmem:[#allocation18_spill] sm:$0xff] %v8615_v32  ;;  %v11779_v39 = vld [vmem:[#allocation38_spill] sm:$0xff]  ;;  %v11784_v60 = vld [vmem:[#allocation48_spill] sm:$0xff] }
 0x111   : > { %6701 = vmatprep.subr.bf16.mxu0 %v7721_v10 }
 0x113   : > { %6357 = vmatmul.mubr.f32.gmra.mrb[16].mxu0 %v11749_v57  ;;  %v11785_v57 = vld [vmem:[#allocation49_spill] sm:$0xff] }
 0x114   : > { %6359 = vmatprep.mubr.f32.mxu0 %v11750_v33  ;;  %v11786_v33 = vld [vmem:[#allocation52_spill] sm:$0xff] }
 0x117   : > { %6360 = vmatmul.mubr.f32.gmra.mrb[18].mxu0 %v11751_v49  ;;  %v11787_v49 = vld [vmem:[#allocation53_spill] sm:$0xff] }
 0x118   : > { %6362 = vmatprep.mubr.f32.mxu0 %v11752_v19  ;;  %v11788_v19 = vld [vmem:[#allocation56_spill] sm:$0xff] }
 0x11b   : > { %6363 = vmatmul.mubr.f32.gmra.mrb[20].mxu0 %v11753_v4  ;;  %v11789_v4 = vld [vmem:[#allocation57_spill] sm:$0xff] }
 0x11c   : > { %6365 = vmatprep.mubr.f32.mxu0 %v11754_v20  ;;  %v11790_v20 = vld [vmem:[#allocation59_spill] sm:$0xff] }
 0x11f   : > { %6366 = vmatmul.mubr.f32.gmra.mrb[22].mxu0 %v11755_v15  ;;  %v11791_v15 = vld [vmem:[#allocation60_spill] sm:$0xff] }
 0x120   : > { %6368 = vmatprep.mubr.f32.mxu0 %v11756_v13  ;;  %v8661_v13 = vld [vmem:[%s11225_s3] sm:$0xff] }
 0x123   : > { %6369 = vmatmul.mubr.f32.gmra.mrb[24].mxu0 %v11757_v36  ;;  %v8666_v36 = vld [vmem:[%s11225_s3 + $0x10] sm:$0xff] }
 0x124   : > { %6371 = vmatprep.mubr.f32.mxu0 %v11758_v41  ;;  %v11792_v41 = vld [vmem:[#allocation62_spill] sm:$0xff] }
 0x127   : > { %6372 = vmatmul.mubr.f32.gmra.mrb[26].mxu0 %v11759_v16  ;;  %v11793_v16 = vld [vmem:[#allocation63_spill] sm:$0xff] }
 0x128   : > { %6374 = vmatprep.mubr.f32.mxu0 %v11760_v8  ;;  %v2468_v8 = vand.u32 4294901760, %v8661_v13 }
 0x12b   : > { %6375 = vmatmul.mubr.f32.gmra.mrb[28].mxu0 %v11761_v23  ;;  %v2472_v23 = vand.u32 4294901760, %v8666_v36 }
 0x12c   : > { %6377 = vmatprep.mubr.f32.mxu0 %v11762_v30  ;;  %v8675_v30 = vld [vmem:[%s11225_s3 + $0x20] sm:$0xff] }
 0x12d   : > { %v8688_v3 = vpack.c.bf16 %v2472_v23, %v2468_v8  ;;  %v2476_v53 = vand.u32 4294901760, %v8675_v30 }
 0x12f   : > { %6378 = vmatmul.mubr.f32.gmra.mrb[30].mxu0 %v11763_v31  ;;  %v8680_v31 = vld [vmem:[%s11225_s3 + $0x30] sm:$0xff]  ;;  %11795 = vst [vmem:[#allocation4_spill] sm:$0xff] %v8688_v3 }
 0x130   : > { %6412 = vmatprep.mubr.f32.mxu0 %v7768_v22  ;;  %v2480_v35 = vand.u32 4294901760, %v8680_v31 }
 0x132   : > { %v8715_v47 = vpack.c.bf16 %v2480_v35, %v2476_v53 }
 0x133   : > { %6413 = vmatmul.mubr.f32.vlgmr.msra.gmra.mrb[0].mxu0 %v7823_v40 }
 0x134   : > { %6703 = vmatpush3.bf16.msra.mxu0 %v7721_v10  ;;  %6415 = vmatprep.mubr.f32.mxu0 %v7829_v45  ;;  %v8604_v10 = vsub.f32 %v8566_v42, %v2486_v6  ;;  %11797 = vst [vmem:[#allocation23_spill] sm:$0xff] %v8715_v47 }
 0x135   : > { %6705 = vmatprep.subr.bf16.mxu0 %v11676_v62 }
 0x136   : > { %11769 = vst [vmem:[#allocation14_spill] sm:$0xff] %v8604_v10 }
 0x137   : > { %6416 = vmatmul.mubr.f32.gmra.mrb[2].mxu0 %v7844_v51 }
 0x138   : > { %6418 = vmatprep.mubr.f32.mxu0 %v7846_v52  ;;  %6707 = vmatpush3.bf16.msra.mxu0 %v11676_v62  ;;  %v11772_v62 = vld [vmem:[#allocation29_spill] sm:$0xff] }
 0x139   : > { %6709 = vmatprep.subr.bf16.mxu0 %v11679_v54 }
 0x13b   : > { %6419 = vmatmul.mubr.f32.gmra.mrb[4].mxu0 %v7894_v9 }
 0x13c   : > { %6421 = vmatprep.mubr.f32.mxu0 %v7913_v48  ;;  %6711 = vmatpush3.bf16.msra.mxu0 %v11679_v54  ;;  %v11773_v54 = vld [vmem:[#allocation12_spill] sm:$0xff] }
 0x13d   : > { %6713 = vmatprep.subr.bf16.mxu0 %v11682_v29 }
 0x13f   : > { %6422 = vmatmul.mubr.f32.gmra.mrb[6].mxu0 %v7915_v7 }
 0x140   : > { %6424 = vmatprep.mubr.f32.mxu0 %v7941_v2  ;;  %6715 = vmatpush3.bf16.msra.mxu0 %v11682_v29  ;;  %v11775_v29 = vld [vmem:[#allocation31_spill] sm:$0xff] }
 0x141   : > { %6717 = vmatprep.subr.bf16.mxu0 %v11685_v37 }
 0x143   : > { %6425 = vmatmul.mubr.f32.gmra.mrb[8].mxu0 %v7943_v38 }
 0x144   : > { %6427 = vmatprep.mubr.f32.mxu0 %v7965_v5  ;;  %6719 = vmatpush3.bf16.msra.mxu0 %v11685_v37  ;;  %v11778_v37 = vld [vmem:[#allocation35_spill] sm:$0xff] }
 0x145   : > { %6721 = vmatprep.subr.bf16.mxu0 %v11688_v1 }
 0x147   : > { %6428 = vmatmul.mubr.f32.gmra.mrb[10].mxu0 %v7993_v12 }
 0x148   : > { %6430 = vmatprep.mubr.f32.mxu0 %v11772_v62  ;;  %6723 = vmatpush3.bf16.msra.mxu0 %v11688_v1  ;;  %v11780_v1 = vld [vmem:[#allocation39_spill] sm:$0xff] }
 0x149   : > { %6725 = vmatprep.subr.bf16.mxu0 %v11773_v54 }
 0x14b   : > { %6431 = vmatmul.mubr.f32.gmra.mrb[12].mxu0 %v11774_v44 }
 0x14c   : > { %6433 = vmatprep.mubr.f32.mxu0 %v11775_v29  ;;  %6727 = vmatpush3.bf16.msra.mxu0 %v11773_v54  ;;  %v8696_v54 = vpack.c.bf16 %v2478_v0, %v2474_v17  ;;  %v8734_v0 = vld [vmem:[%s11225_s3 + $0x70] sm:$0xff] }
 0x14d   : > { %6729 = vmatprep.subr.bf16.mxu0 %v11776_v34 }
 0x14e   : > { %11796 = vst [vmem:[#allocation20_spill] sm:$0xff] %v8696_v54 }
 0x14f   : > { %6434 = vmatmul.mubr.f32.gmra.mrb[14].mxu0 %v11778_v37 }
 0x150   : > { %6436 = vmatprep.mubr.f32.mxu0 %v11779_v39  ;;  %6731 = vmatpush3.bf16.msra.mxu0 %v11776_v34  ;;  %v8706_v34 = vld [vmem:[%s11225_s3 + $0x50] sm:$0xff] }
 0x151   : > { %6733 = vmatprep.subr.bf16.mxu0 %v8640_v28  ;;  %v11397_v17 = vand.u32 4294901760, %v8706_v34 }
 0x153   : > { %6437 = vmatmul.mubr.f32.gmra.mrb[16].mxu0 %v11780_v1 }
 0x154   : > { %6439 = vmatprep.mubr.f32.mxu0 %v11781_v11 }
 0x157   : > { %6440 = vmatmul.mubr.f32.gmra.mrb[18].mxu0 %v11782_v21 }
 0x158   : > { %6442 = vmatprep.mubr.f32.mxu0 %v11783_v27 }
 0x15b   : > { %6443 = vmatmul.mubr.f32.gmra.mrb[20].mxu0 %v11784_v60 }
 0x15c   : > { %6445 = vmatprep.mubr.f32.mxu0 %v11785_v57 }
 0x15f   : > { %6446 = vmatmul.mubr.f32.gmra.mrb[22].mxu0 %v11786_v33 }
 0x160   : > { %6448 = vmatprep.mubr.f32.mxu0 %v11787_v49 }
 0x163   : > { %6449 = vmatmul.mubr.f32.gmra.mrb[24].mxu0 %v11788_v19 }
 0x164   : > { %6451 = vmatprep.mubr.f32.mxu0 %v11789_v4 }
 0x167   : > { %6452 = vmatmul.mubr.f32.gmra.mrb[26].mxu0 %v11790_v20 }
 0x168   : > { %6454 = vmatprep.mubr.f32.mxu0 %v11791_v15 }
 0x16b   : > { %6455 = vmatmul.mubr.f32.gmra.mrb[28].mxu0 %v11792_v41 }
 0x16c   : > { %6457 = vmatprep.mubr.f32.mxu0 %v11793_v16 }
 0x16f   : > { %6458 = vmatmul.mubr.f32.gmra.mrb[30].mxu0 %v11794_v50 }
 0x170   : > { %6492 = vmatprep.mubr.f32.mxu0 %v7768_v22  ;;  %v8701_v22 = vld [vmem:[%s11225_s3 + $0x40] sm:$0xff] }
 0x171   : > { %v11398_v18 = vand.u32 4294901760, %v8701_v22 }
 0x173   : > { %6493 = vmatmul.mubr.f32.vlgmr.msra.gmra.mrb[0].mxu0 %v7823_v40  ;;  %v8724_v40 = vpack.c.bf16 %v2486_v6, %v2482_v63  ;;  %v8743_v58 = vpack.c.bf16 %v11397_v17, %v11398_v18  ;;  %v11389_v63 = vand.u32 4294901760, %v8734_v0  ;;  %v11406_v17 = vand.u32 4294901760, %v8599_v56 }
 0x174   : > { %6495 = vmatprep.mubr.f32.mxu0 %v7829_v45  ;;  %6735 = vmatpush1.bf16.msra.mxu0 %v8688_v3  ;;  %v8729_v45 = vld [vmem:[%s11225_s3 + $0x60] sm:$0xff] }
 0x175   : > { %6737 = vmatprep.subr.bf16.mxu0 %v8696_v54  ;;  %11798 = vst [vmem:[#allocation6_spill] sm:$0xff] %v8724_v40  ;;  %11799 = vst [vmem:[#allocation24_spill] sm:$0xff] %v8743_v58  ;;  %v11390_v42 = vand.u32 4294901760, %v8729_v45 }
 0x177   : > { %6496 = vmatmul.mubr.f32.gmra.mrb[2].mxu0 %v7844_v51  ;;  %v8752_v51 = vpack.c.bf16 %v2494_v46, %v2490_v59  ;;  %v8819_v59 = vld [vmem:[%s11225_s3 + $0xa8] sm:$0xff]  ;;  %v8824_v46 = vld [vmem:[%s11225_s3 + $0xb8] sm:$0xff] }
 0x178   : > { %6498 = vmatprep.mubr.f32.mxu0 %v7846_v52  ;;  %6739 = vmatpush1.bf16.msra.mxu0 %v8715_v47  ;;  %v8761_v52 = vpack.c.bf16 %v11389_v63, %v11390_v42 }
 0x179   : > { %6741 = vmatprep.subr.bf16.mxu0 %v8724_v40  ;;  %11800 = vst [vmem:[#allocation25_spill] sm:$0xff] %v8752_v51 }
 0x17a   : > { %11801 = vst [vmem:[#allocation9_spill] sm:$0xff] %v8761_v52 }
 0x17b   : > { %6499 = vmatmul.mubr.f32.gmra.mrb[4].mxu0 %v7894_v9 }
 0x17c   : > { %6501 = vmatprep.mubr.f32.mxu0 %v7913_v48  ;;  %6743 = vmatpush1.bf16.msra.mxu0 %v8743_v58 }
 0x17d   : > { %6745 = vmatprep.subr.bf16.mxu0 %v8752_v51 }
 0x17f   : > { %6502 = vmatmul.mubr.f32.gmra.mrb[6].mxu0 %v7915_v7  ;;  %v8799_v7 = vld [vmem:[%s11225_s3 + $0x80] sm:$0xff] }
 0x180   : > { %6504 = vmatprep.mubr.f32.mxu0 %v7941_v2  ;;  %6747 = vmatpush1.bf16.msra.mxu0 %v8761_v52  ;;  %v2441_v2 = vld [vmem:[%s11225_s3 + $0x98] sm:$0xff] }
 0x181   : > { %v2502_v48 = vand.u32 4294901760, %v2441_v2 }
 0x183   : > { %6505 = vmatmul.mubr.f32.gmra.mrb[8].mxu0 %v7943_v38  ;;  %v2439_v38 = vld [vmem:[%s11225_s3 + $0x88] sm:$0xff]  ;;  %v8917_v63 = vsub.f32 %v2441_v2, %v2502_v48 }
 0x184   : > { %6507 = vmatprep.mubr.f32.mxu0 %v7965_v5  ;;  %v2498_v9 = vand.u32 4294901760, %v2439_v38  ;;  %v11388_v5 = vand.u32 4294901760, %v8799_v7 }
 0x185   : > { %11810 = vst [vmem:[#allocation55_spill] sm:$0xff] %v8917_v63 }
 0x186   : > { %v8808_v24 = vpack.c.bf16 %v2502_v48, %v2498_v9 }
 0x187   : > { %6508 = vmatmul.mubr.f32.gmra.mrb[10].mxu0 %v7993_v12  ;;  %v8804_v12 = vld [vmem:[%s11225_s3 + $0x90] sm:$0xff] }
 0x188   : > { %6510 = vmatprep.mubr.f32.mxu0 %v11772_v62  ;;  %v11387_v25 = vand.u32 4294901760, %v8804_v12  ;;  %11802 = vst [vmem:[#allocation28_spill] sm:$0xff] %v8808_v24  ;;  %v8829_v62 = vsub.f32 %v8661_v13, %v2468_v8  ;;  %6749 = vmatprep.subr.bf16.mxu0 %v8808_v24  ;;  %v8882_v13 = vld [vmem:[%s11225_s3 + $0xd8] sm:$0xff] }
 0x18a   : > { %v8814_v6 = vpack.c.bf16 %v11387_v25, %v11388_v5  ;;  %11804 = vst [vmem:[#allocation34_spill] sm:$0xff] %v8829_v62  ;;  %v11392_v25 = vand.u32 4294901760, %v8577_v14  ;;  %v8915_v5 = vsub.f32 %v2439_v38, %v2498_v9 }
 0x18b   : > { %6511 = vmatmul.mubr.f32.gmra.mrb[12].mxu0 %v11774_v44  ;;  %v8834_v44 = vsub.f32 %v8666_v36, %v2472_v23  ;;  %v2518_v23 = vand.u32 4294901760, %v8882_v13 }
 0x18c   : > { %6513 = vmatprep.mubr.f32.mxu0 %v11775_v29  ;;  %11803 = vst [vmem:[#allocation32_spill] sm:$0xff] %v8814_v6  ;;  %v11396_v29 = vand.u32 4294901760, %v8819_v59  ;;  %6751 = vmatpush1.bf16.msra.mxu0 %v8814_v6  ;;  %11809 = vst [vmem:[#allocation54_spill] sm:$0xff] %v8915_v5  ;;  %v2954_v48 = vsub.f32 %v8577_v14, %v11392_v25 }
 0x18d   : > { %11805 = vst [vmem:[#allocation37_spill] sm:$0xff] %v8834_v44 }
 0x18f   : > { %6514 = vmatmul.mubr.f32.gmra.mrb[14].mxu0 %v11778_v37  ;;  %v11391_v37 = vand.u32 4294901760, %v8824_v46 }
 0x190   : > { %6516 = vmatprep.mubr.f32.mxu0 %v11779_v39  ;;  %v8842_v39 = vld [vmem:[%s11225_s3 + $0xa0] sm:$0xff] }
 0x193   : > { %6517 = vmatmul.mubr.f32.gmra.mrb[16].mxu0 %v11780_v1  ;;  %v8847_v1 = vld [vmem:[%s11225_s3 + $0xb0] sm:$0xff] }
 0x194   : > { %6519 = vmatprep.mubr.f32.mxu0 %v11781_v11  ;;  %v11384_v11 = vand.u32 4294901760, %v8559_v55 }
 0x197   : > { %6520 = vmatmul.mubr.f32.gmra.mrb[18].mxu0 %v11782_v21  ;;  %v11381_v21 = vand.u32 4294901760, %v8561_v43 }
 0x198   : > { %6522 = vmatprep.mubr.f32.mxu0 %v11783_v27  ;;  %v11386_v27 = vand.u32 4294901760, %v8842_v39 }
 0x19b   : > { %6523 = vmatmul.mubr.f32.gmra.mrb[20].mxu0 %v11784_v60  ;;  %v11385_v60 = vand.u32 4294901760, %v8847_v1 }
 0x19c   : > { %6525 = vmatprep.mubr.f32.mxu0 %v11785_v57  ;;  %v11382_v57 = vand.u32 4294901760, %v8829_v62 }
 0x19e   : > { %v2924_v36 = vsub.f32 %v8829_v62, %v11382_v57  ;;  %v8901_v57 = vld [vmem:[%s11225_s3 + $0xc0] sm:$0xff] }
 0x19f   : > { %6526 = vmatmul.mubr.f32.gmra.mrb[22].mxu0 %v11786_v33  ;;  %v11383_v33 = vand.u32 4294901760, %v8834_v44 }
 0x1a0   : > { %6528 = vmatprep.mubr.f32.mxu0 %v11787_v49  ;;  %v8860_v49 = vpack.c.bf16 %v11391_v37, %v11396_v29  ;;  %v2955_v29 = vand.u32 4294901760, %v2954_v48  ;;  %v11815_v48 = vand.u32 4294901760, %v8701_v22 }
 0x1a2   : > { %11806 = vst [vmem:[#allocation41_spill] sm:$0xff] %v8860_v49  ;;  %6753 = vmatprep.subr.bf16.mxu0 %v8860_v49 }
 0x1a3   : > { %6529 = vmatmul.mubr.f32.gmra.mrb[24].mxu0 %v11788_v19  ;;  %v2918_v19 = vsub.f32 %v8559_v55, %v11384_v11  ;;  %v2925_v11 = vand.u32 4294901760, %v2924_v36  ;;  %v2453_v36 = vld [vmem:[%s11225_s3 + $0xf8] sm:$0xff] }
 0x1a4   : > { %6531 = vmatprep.mubr.f32.mxu0 %v11789_v4  ;;  %v2930_v4 = vsub.f32 %v8561_v43, %v11381_v21  ;;  %v2526_v2 = vand.u32 4294901760, %v2453_v36 }
 0x1a6   : > { %v2931_v21 = vand.u32 4294901760, %v2930_v4 }
 0x1a7   : > { %6532 = vmatmul.mubr.f32.gmra.mrb[26].mxu0 %v11790_v20  ;;  %v8872_v20 = vpack.c.bf16 %v11385_v60, %v11386_v27  ;;  %v11393_v27 = vand.u32 4294901760, %v8572_v61 }
 0x1a8   : > { %6534 = vmatprep.mubr.f32.mxu0 %v11791_v15  ;;  %v8877_v15 = vld [vmem:[%s11225_s3 + $0xc8] sm:$0xff] }
 0x1a9   : > { %11807 = vst [vmem:[#allocation45_spill] sm:$0xff] %v8872_v20  ;;  %v2514_v8 = vand.u32 4294901760, %v8877_v15  ;;  %6755 = vmatpush1.bf16.msra.mxu0 %v8872_v20  ;;  %v2942_v9 = vsub.f32 %v8572_v61, %v11393_v27  ;;  %v8958_v27 = vsub.f32 %v8680_v31, %v2480_v35  ;;  %v11834_v20 = vand.u32 4294901760, %v8917_v63 }
 0x1ab   : > { %6535 = vmatmul.mubr.f32.gmra.mrb[28].mxu0 %v11792_v41  ;;  %v2936_v41 = vsub.f32 %v8834_v44, %v11383_v33  ;;  %v8906_v33 = vld [vmem:[%s11225_s3 + $0xd0] sm:$0xff]  ;;  %11812 = vst [vmem:[#allocation61_spill] sm:$0xff] %v8958_v27 }
 0x1ac   : > { %6537 = vmatprep.mubr.f32.mxu0 %v11793_v16  ;;  %v8893_v16 = vsub.f32 %v8675_v30, %v2476_v53  ;;  %v11395_v30 = vand.u32 4294901760, %v8901_v57  ;;  %v11394_v53 = vand.u32 4294901760, %v8906_v33 }
 0x1ad   : > { %v2937_v60 = vand.u32 4294901760, %v2936_v41 }
 0x1ae   : > { %v8923_v42 = vpack.c.bf16 %v11394_v53, %v11395_v30  ;;  %v11405_v25 = vand.u32 4294901760, %v8893_v16  ;;  %v2943_v30 = vand.u32 4294901760, %v2942_v9  ;;  %v2966_v9 = vsub.f32 %v8599_v56, %v11406_v17 }
 0x1af   : > { %6538 = vmatmul.mubr.f32.gmra.mrb[30].mxu0 %v11794_v50  ;;  %v2919_v50 = vand.u32 4294901760, %v2918_v19  ;;  %v8911_v19 = vpack.c.bf16 %v2518_v23, %v2514_v8  ;;  %v8925_v37 = vpack.c.bf16 %v2937_v60, %v2925_v11  ;;  %v8943_v11 = vld [vmem:[%s11225_s3 + $0xe0] sm:$0xff]  ;;  %v8948_v60 = vld [vmem:[%s11225_s3 + $0xf0] sm:$0xff] }
 0x1b0   : > { %11811 = vst [vmem:[#allocation58_spill] sm:$0xff] %v8923_v42  ;;  %v11404_v41 = vand.u32 4294901760, %v8943_v11  ;;  %v8975_v35 = vpack.c.bf16 %v2955_v29, %v2943_v30  ;;  %v11819_v30 = vand.u32 4294901760, %v8604_v10 }
 0x1b1   : > { %11808 = vst [vmem:[#allocation47_spill] sm:$0xff] %v8911_v19  ;;  %v6764_v4 = vpack.c.bf16 %v2931_v21, %v2919_v50  ;;  %v2451_v21 = vld [vmem:[%s11225_s3 + $0xe8] sm:$0xff]  ;;  %6757 = vmatprep.subr.bf16.mxu0 %v8911_v19  ;;  %v11403_v50 = vand.u32 4294901760, %v8948_v60  ;;  %v11409_v19 = vand.u32 4294901760, %v8958_v27 }
 0x1b2   : > { %v2522_v38 = vand.u32 4294901760, %v2451_v21  ;;  %6759 = vmatpush1.bf16.msra.mxu0 %v8923_v42  ;;  %v2948_v42 = vsub.f32 %v8893_v16, %v11405_v25  ;;  %v2978_v17 = vsub.f32 %v8604_v10, %v11819_v30  ;;  %v9013_v30 = vsub.f32 %v8882_v13, %v2518_v23 }
 0x1b3   : > { %6924 = vmatprep.subr.bf16.mxu1 %v6764_v4  ;;  %v8967_v18 = vpack.c.bf16 %v11403_v50, %v11404_v41  ;;  %v8983_v50 = vsub.f32 %v8701_v22, %v11815_v48  ;;  %v11817_v41 = vand.u32 4294901760, %v8706_v34  ;;  %v2960_v29 = vsub.f32 %v8958_v27, %v11409_v19 }
 0x1b4   : > { %6932 = vmatpush1.bf16.msra.mxu1 %v8925_v37  ;;  %v8960_v53 = vpack.c.bf16 %v2526_v2, %v2522_v38  ;;  %v2949_v31 = vand.u32 4294901760, %v2948_v42  ;;  %v11820_v22 = vand.u32 4294901760, %v8819_v59  ;;  %v2967_v42 = vand.u32 4294901760, %v2966_v9  ;;  %11824 = vst [vmem:[#allocation26_spill] sm:$0xff] %v9013_v30 }
 0x1b5   : > { %11814 = vst [vmem:[#allocation8_spill] sm:$0xff] %v8967_v18  ;;  %11816 = vst [vmem:[#allocation15_spill] sm:$0xff] %v8983_v50  ;;  %v8988_v25 = vsub.f32 %v8706_v34, %v11817_v41  ;;  %v11822_v34 = vand.u32 4294901760, %v8824_v46  ;;  %6925 = vmatprep.subr.bf16.mxu1 %v8975_v35  ;;  %v9010_v19 = vsub.f32 %v8877_v15, %v2514_v8  ;;  %v11825_v9 = vand.u32 4294901760, %v8610_v26 }
 0x1b6   : > { %11813 = vst [vmem:[#allocation7_spill] sm:$0xff] %v8960_v53  ;;  %6761 = vmatprep.subr.bf16.mxu0 %v8960_v53  ;;  %v9001_v48 = vsub.f32 %v8819_v59, %v11820_v22  ;;  %v2961_v53 = vand.u32 4294901760, %v2960_v29  ;;  %v2979_v59 = vand.u32 4294901760, %v2978_v17  ;;  %v11414_v15 = vand.u32 4294901760, %v8615_v32 }
 0x1b7   : > { %11818 = vst [vmem:[#allocation16_spill] sm:$0xff] %v8988_v25  ;;  %6763 = vmatpush1.bf16.msra.mxu0 %v8967_v18  ;;  %v9006_v41 = vsub.f32 %v8824_v46, %v11822_v34  ;;  %v11416_v18 = vmov 0.0   ;;  %v11412_v46 = vand.u32 4294901760, %v8983_v50  ;;  %v11413_v22 = vand.u32 4294901760, %v8988_v25 }
 0x1b8   : > { %11821 = vst [vmem:[#allocation21_spill] sm:$0xff] %v9001_v48  ;;  %6765 = vmatprep.subr.bf16.mxu0 %v6764_v4  ;;  %2562 = vmatprep.mubr.f32.mxu0 %v11416_v18  ;;  %v2990_v4 = vsub.f32 %v8610_v26, %v11825_v9  ;;  %v9023_v8 = vpack.c.bf16 %v2961_v53, %v2949_v31  ;;  %v11826_v23 = vand.u32 4294901760, %v8729_v45  ;;  %v11827_v29 = vand.u32 4294901760, %v8734_v0 }
 0x1b9   : > { %11823 = vst [vmem:[#allocation22_spill] sm:$0xff] %v9006_v41  ;;  %3251 = vmatprep.mubr.f32.mxu1 %v11416_v18  ;;  %v9025_v13 = vpack.c.bf16 %v2979_v59, %v2967_v42  ;;  %v2972_v9 = vsub.f32 %v8983_v50, %v11412_v46  ;;  %v2984_v53 = vsub.f32 %v8988_v25, %v11413_v22  ;;  %v11839_v52 = vand.u32 4294901760, %v9013_v30 }
 0x1ba   : > { %v9030_v17 = vsub.f32 %v8729_v45, %v11826_v23  ;;  %v9035_v34 = vsub.f32 %v8734_v0, %v11827_v29  ;;  %v2991_v31 = vand.u32 4294901760, %v2990_v4  ;;  %v3002_v42 = vsub.f32 %v8615_v32, %v11414_v15  ;;  %6933 = vmatpush1.bf16.msra.mxu1 %v9023_v8 }
 0x1bb   : > { %v9046_v45 = vsub.f32 %v2451_v21, %v2522_v38  ;;  %v9048_v59 = vsub.f32 %v2453_v36, %v2526_v2  ;;  %6926 = vmatprep.subr.bf16.mxu1 %v9025_v13  ;;  %v2973_v29 = vand.u32 4294901760, %v2972_v9  ;;  %v2985_v46 = vand.u32 4294901760, %v2984_v53 }
 0x1bc   : > { %11828 = vst [vmem:[#allocation27_spill] sm:$0xff] %v9035_v34  ;;  %v11415_v0 = vand.u32 4294901760, %v9030_v17  ;;  %v11418_v23 = vand.u32 4294901760, %v9035_v34  ;;  %v3003_v22 = vand.u32 4294901760, %v3002_v42  ;;  %v11421_v4 = vand.u32 4294901760, %v8915_v5 }
 0x1bd   : > { %11829 = vst [vmem:[#allocation33_spill] sm:$0xff] %v9046_v45  ;;  %11830 = vst [vmem:[#allocation36_spill] sm:$0xff] %v9048_v59  ;;  %v11831_v2 = vand.u32 4294901760, %v8799_v7  ;;  %v9067_v9 = vpack.c.bf16 %v2985_v46, %v2973_v29  ;;  %v11426_v29 = vand.u32 4294901760, %v9001_v48 }
 0x1be   : > { %v2996_v21 = vsub.f32 %v9030_v17, %v11415_v0  ;;  %v3008_v36 = vsub.f32 %v9035_v34, %v11418_v23  ;;  %v9069_v53 = vpack.c.bf16 %v3003_v22, %v2991_v31  ;;  %v3014_v42 = vsub.f32 %v8915_v5, %v11421_v4 }
 0x1bf   : > { %v9065_v15 = vsub.f32 %v8799_v7, %v11831_v2  ;;  %v11832_v0 = vand.u32 4294901760, %v8804_v12  ;;  %v3026_v7 = vsub.f32 %v8917_v63, %v11834_v20  ;;  %6934 = vmatpush1.bf16.msra.mxu1 %v9067_v9  ;;  %v11432_v2 = vand.u32 4294901760, %v9006_v41 }
 0x1c0   : > { %v2997_v23 = vand.u32 4294901760, %v2996_v21  ;;  %v3009_v38 = vand.u32 4294901760, %v3008_v36  ;;  %v3015_v22 = vand.u32 4294901760, %v3014_v42  ;;  %6927 = vmatprep.subr.bf16.mxu1 %v9069_v53  ;;  %v11835_v21 = vand.u32 4294901760, %v8842_v39 }
 0x1c1   : > { %v9077_v18 = vsub.f32 %v8804_v12, %v11832_v0  ;;  %v11422_v46 = vand.u32 4294901760, %v9065_v15  ;;  %v3027_v0 = vand.u32 4294901760, %v3026_v7  ;;  %v3038_v4 = vsub.f32 %v9001_v48, %v11426_v29 }
 0x1c2   : > { %v9088_v12 = vpack.c.bf16 %v3009_v38, %v2997_v23  ;;  %v9096_v36 = vsub.f32 %v8842_v39, %v11835_v21  ;;  %v3050_v23 = vsub.f32 %v9006_v41, %v11432_v2  ;;  %v11836_v38 = vand.u32 4294901760, %v8847_v1 }
 0x1c3   : > { %11833 = vst [vmem:[#allocation42_spill] sm:$0xff] %v9077_v18  ;;  %v11423_v31 = vand.u32 4294901760, %v9077_v18  ;;  %v3020_v20 = vsub.f32 %v9065_v15, %v11422_v46  ;;  %v9112_v46 = vpack.c.bf16 %v3027_v0, %v3015_v22  ;;  %v3039_v29 = vand.u32 4294901760, %v3038_v4 }
 0x1c4   : > { %v9110_v7 = vsub.f32 %v8847_v1, %v11836_v38  ;;  %v11431_v21 = vand.u32 4294901760, %v9096_v36  ;;  %6935 = vmatpush1.bf16.msra.mxu1 %v9088_v12  ;;  %v3051_v6 = vand.u32 4294901760, %v3050_v23 }
 0x1c5   : > { %v3032_v42 = vsub.f32 %v9077_v18, %v11423_v31  ;;  %v3021_v39 = vand.u32 4294901760, %v3020_v20  ;;  %v11433_v31 = vand.u32 4294901760, %v9010_v19  ;;  %6928 = vmatprep.subr.bf16.mxu1 %v9112_v46  ;;  %v11837_v20 = vand.u32 4294901760, %v8901_v57 }
 0x1c6   : > { %v11436_v24 = vand.u32 4294901760, %v9110_v7  ;;  %v3044_v1 = vsub.f32 %v9096_v36, %v11431_v21  ;;  %v9133_v23 = vpack.c.bf16 %v3051_v6, %v3039_v29  ;;  %v11838_v21 = vand.u32 4294901760, %v8906_v33 }
 0x1c7   : > { %v3033_v49 = vand.u32 4294901760, %v3032_v42  ;;  %v3062_v22 = vsub.f32 %v9010_v19, %v11433_v31  ;;  %v9129_v42 = vsub.f32 %v8901_v57, %v11837_v20  ;;  %v3074_v57 = vsub.f32 %v9013_v30, %v11839_v52 }
 0x1c8   : > { %v3056_v38 = vsub.f32 %v9110_v7, %v11436_v24  ;;  %v9141_v2 = vsub.f32 %v8906_v33, %v11838_v21  ;;  %v3045_v31 = vand.u32 4294901760, %v3044_v1  ;;  %v11442_v20 = vand.u32 4294901760, %v9048_v59 }
 0x1c9   : > { %v9131_v4 = vpack.c.bf16 %v3033_v49, %v3021_v39  ;;  %v3063_v0 = vand.u32 4294901760, %v3062_v22  ;;  %v11437_v49 = vand.u32 4294901760, %v9129_v42  ;;  %v11441_v39 = vand.u32 4294901760, %v9046_v45 }
 0x1ca   : > { %v3057_v6 = vand.u32 4294901760, %v3056_v38  ;;  %v11440_v29 = vand.u32 4294901760, %v9141_v2  ;;  %v3075_v33 = vand.u32 4294901760, %v3074_v57  ;;  %v11840_v52 = vand.u32 4294901760, %v8943_v11 }
 0x1cb   : > { %6936 = vmatpush1.bf16.msra.mxu1 %v9131_v4  ;;  %v3068_v21 = vsub.f32 %v9129_v42, %v11437_v49  ;;  %v11842_v22 = vand.u32 4294901760, %v8948_v60  ;;  %v3086_v49 = vsub.f32 %v9046_v45, %v11441_v39 }
 0x1cc   : > { %6929 = vmatprep.subr.bf16.mxu1 %v9133_v23  ;;  %v9158_v1 = vsub.f32 %v8943_v11, %v11840_v52  ;;  %v9165_v24 = vpack.c.bf16 %v3057_v6, %v3045_v31  ;;  %v3080_v57 = vsub.f32 %v9141_v2, %v11440_v29  ;;  %v3098_v11 = vsub.f32 %v9048_v59, %v11442_v20 }
 0x1cd   : > { %v9163_v38 = vsub.f32 %v8948_v60, %v11842_v22  ;;  %v9176_v52 = vpack.c.bf16 %v3075_v33, %v3063_v0  ;;  %v3069_v51 = vand.u32 4294901760, %v3068_v21  ;;  %v3087_v22 = vand.u32 4294901760, %v3086_v49 }
 0x1ce   : > { %11841 = vst [vmem:[#allocation44_spill] sm:$0xff] %v9158_v1  ;;  %v11446_v60 = vand.u32 4294901760, %v9158_v1  ;;  %v3081_v6 = vand.u32 4294901760, %v3080_v57  ;;  %v3099_v29 = vand.u32 4294901760, %v3098_v11  ;;  %v6796_v57 = vpack.c.bf16 %v8561_v43, %v8559_v55 }
 0x1cf   : > { %11843 = vst [vmem:[#allocation50_spill] sm:$0xff] %v9163_v38  ;;  %v11445_v31 = vand.u32 4294901760, %v9163_v38  ;;  %6937 = vmatpush1.bf16.msra.mxu1 %v9165_v24 }
 0x1d0   : > { %6930 = vmatprep.subr.bf16.mxu1 %v9176_v52  ;;  %v3092_v39 = vsub.f32 %v9158_v1, %v11446_v60  ;;  %v9188_v33 = vpack.c.bf16 %v3081_v6, %v3069_v51  ;;  %v9190_v21 = vpack.c.bf16 %v3099_v29, %v3087_v22 }
 0x1d1   : > { %v3104_v0 = vsub.f32 %v9163_v38, %v11445_v31 }
 0x1d2   : > { %v3093_v20 = vand.u32 4294901760, %v3092_v39 }
 0x1d3   : > { %v3105_v58 = vand.u32 4294901760, %v3104_v0  ;;  %6938 = vmatpush1.bf16.msra.mxu1 %v9188_v33  ;;  %v9232_v0 = vld [vmem:[%s11224_s2] ss:$0 sm:$0xff] }
 0x1d4   : > { %6931 = vmatprep.subr.bf16.mxu1 %v9190_v21 }
 0x1d5   : > { %v9194_v49 = vpack.c.bf16 %v3105_v58, %v3093_v20 }
 0x1d7   : > { %6939 = vmatpush1.bf16.msra.mxu1 %v9194_v49 }
 0x1d8   : > { %6797 = vmatprep.subr.bf16.mxu1 %v6796_v57 }
 0x246   : > { %v6494_v57 = vpop.f32.mrb[0].mxu0 }
 0x247   : > { %v6940_v31 = vadd.f32 %v6494_v57, %v9232_v0  ;;  %v2200_v58 = vpop.f32.mrb[1].mxu0 }
 0x248   : > { %v6941_v60 = vadd.f32 %v9232_v0, %v2200_v58 }
 0x249   : > { %v2391_v39 = vmax.f32 %v6940_v31, 0.0 }
 0x24a   : > { %v2390_v29 = vmax.f32 %v6941_v60, 0.0  ;;  %v6497_v20 = vpop.f32.mrb[2].mxu0 }
 0x24b   : > { %v9236_v51 = vand.u32 4294901760, %v2391_v39  ;;  %v6942_v6 = vadd.f32 %v6497_v20, %v9232_v0  ;;  %v2212_v11 = vpop.f32.mrb[3].mxu0 }
 0x24c   : > { %v9239_v22 = vand.u32 4294901760, %v2390_v29  ;;  %v6943_v43 = vadd.f32 %v9232_v0, %v2212_v11 }
 0x24d   : > { %11844 = vst [vmem:[#allocation51_spill] sm:$0xff] %v9236_v51  ;;  %v9243_v55 = vsub.f32 %v2391_v39, %v9236_v51  ;;  %v2393_v40 = vmax.f32 %v6942_v6, 0.0 }
 0x24e   : > { %11845 = vst [vmem:[#allocation29_spill] sm:$0xff] %v9239_v22  ;;  %v9246_v57 = vsub.f32 %v2390_v29, %v9239_v22  ;;  %v2392_v58 = vmax.f32 %v6943_v43, 0.0  ;;  %v6500_v31 = vpop.f32.mrb[4].mxu0 }
 0x24f   : > { %11846 = vst [vmem:[#allocation12_spill] sm:$0xff] %v9243_v55  ;;  %v9248_v60 = vand.u32 4294901760, %v2393_v40  ;;  %v6944_v47 = vadd.f32 %v6500_v31, %v9232_v0  ;;  %v2224_v54 = vpop.f32.mrb[5].mxu0  ;;  %v11850_v22 = vand.u32 4294901760, %v9243_v55 }
 0x250   : > { %11847 = vst [vmem:[#allocation30_spill] sm:$0xff] %v9246_v57  ;;  %v11469_v3 = vand.u32 4294901760, %v9246_v57  ;;  %v9253_v28 = vand.u32 4294901760, %v2392_v58  ;;  %v6945_v11 = vadd.f32 %v9232_v0, %v2224_v54 }
 0x251   : > { %11848 = vst [vmem:[#allocation31_spill] sm:$0xff] %v9248_v60  ;;  %v9263_v31 = vsub.f32 %v2393_v40, %v9248_v60  ;;  %v2395_v51 = vmax.f32 %v6944_v47, 0.0  ;;  %v2577_v1 = vsub.f32 %v9243_v55, %v11850_v22 }
 0x252   : > { %11849 = vst [vmem:[#allocation17_spill] sm:$0xff] %v9253_v28  ;;  %v2566_v29 = vsub.f32 %v9246_v57, %v11469_v3  ;;  %v9260_v43 = vsub.f32 %v2392_v58, %v9253_v28  ;;  %v2394_v39 = vmax.f32 %v6945_v11, 0.0  ;;  %v6503_v6 = vpop.f32.mrb[6].mxu0  ;;  %v11853_v28 = vmov 0.0  }
 0x253   : > { %v2236_v20 = vpop.f32.mrb[7].mxu0  ;;  %v9272_v11 = vand.u32 4294901760, %v2395_v51  ;;  %v6946_v40 = vadd.f32 %v6503_v6, %v9232_v0 }
 0x254   : > { %v2567_v38 = vand.u32 4294901760, %v2566_v29  ;;  %v9268_v54 = vand.u32 4294901760, %v2394_v39  ;;  %v6947_v45 = vadd.f32 %v9232_v0, %v2236_v20  ;;  %v11478_v3 = vand.u32 4294901760, %v9260_v43 }
 0x255   : > { %11852 = vst [vmem:[#allocation38_spill] sm:$0xff] %v9272_v11  ;;  %v2578_v29 = vand.u32 4294901760, %v2577_v1  ;;  %v2397_v6 = vmax.f32 %v6946_v40, 0.0 }
 0x256   : > { %11851 = vst [vmem:[#allocation35_spill] sm:$0xff] %v9268_v54  ;;  %v6506_v58 = vpop.f32.mrb[8].mxu0  ;;  %2568 = vmatmul.mubr.f32.vlgmr.msra.gmra.mrb[32].mxu0 %v2567_v38  ;;  %v2396_v60 = vmax.f32 %v6947_v45, 0.0  ;;  %v9278_v22 = vsub.f32 %v2394_v39, %v9268_v54  ;;  %v2588_v20 = vsub.f32 %v9260_v43, %v11478_v3  ;;  %v11481_v38 = vand.u32 4294901760, %v9263_v31 }
 0x257   : > { %v2248_v47 = vpop.f32.mrb[9].mxu0  ;;  %2573 = vmatprep.mubr.f32.mxu0 %v11853_v28  ;;  %6767 = vmatpush1.bf16.msra.mxu0 %v8925_v37  ;;  %v9286_v45 = vsub.f32 %v2395_v51, %v9272_v11  ;;  %v6948_v51 = vadd.f32 %v6506_v58, %v9232_v0  ;;  %v9299_v3 = vand.u32 4294901760, %v2397_v6 }
 0x258   : > { %6769 = vmatprep.subr.bf16.mxu0 %v8975_v35  ;;  %v9288_v57 = vand.u32 4294901760, %v2396_v60  ;;  %v6949_v1 = vadd.f32 %v9232_v0, %v2248_v47  ;;  %v2589_v39 = vand.u32 4294901760, %v2588_v20  ;;  %v2599_v35 = vsub.f32 %v9263_v31, %v11481_v38 }
 0x259   : > { %11855 = vst [vmem:[#allocation40_spill] sm:$0xff] %v9299_v3  ;;  %v11487_v58 = vand.u32 4294901760, %v9286_v45 }
 0x25a   : > { %v6509_v55 = vpop.f32.mrb[10].mxu0  ;;  %2579 = vmatmul.mubr.f32.gmra.mrb[34].mxu0 %v2578_v29  ;;  %11854 = vst [vmem:[#allocation39_spill] sm:$0xff] %v9288_v57  ;;  %v11484_v29 = vand.u32 4294901760, %v9278_v22  ;;  %v9302_v11 = vsub.f32 %v2396_v60, %v9288_v57  ;;  %v2398_v47 = vmax.f32 %v6949_v1, 0.0  ;;  %v2600_v20 = vand.u32 4294901760, %v2599_v35 }
 0x25b   : > { %v2260_v37 = vpop.f32.mrb[11].mxu0  ;;  %2584 = vmatprep.mubr.f32.mxu0 %v11853_v28  ;;  %6771 = vmatpush1.bf16.msra.mxu0 %v9023_v8  ;;  %v9314_v60 = vsub.f32 %v2397_v6, %v9299_v3 }
 0x25c   : > { %6773 = vmatprep.subr.bf16.mxu0 %v9025_v13  ;;  %v2610_v13 = vsub.f32 %v9278_v22, %v11484_v29  ;;  %v6951_v57 = vadd.f32 %v9232_v0, %v2260_v37  ;;  %v11488_v1 = vand.u32 4294901760, %v9302_v11  ;;  %v9322_v35 = vand.u32 4294901760, %v2398_v47 }
 0x25d   : > { %v6950_v37 = vadd.f32 %v6509_v55, %v9232_v0 }
 0x25e   : > { %v6512_v40 = vpop.f32.mrb[12].mxu0  ;;  %2590 = vmatmul.mubr.f32.gmra.mrb[36].mxu0 %v2589_v39  ;;  %v2399_v39 = vmax.f32 %v6948_v51, 0.0  ;;  %11856 = vst [vmem:[#allocation43_spill] sm:$0xff] %v9322_v35  ;;  %v2621_v51 = vsub.f32 %v9286_v45, %v11487_v58  ;;  %v2400_v29 = vmax.f32 %v6951_v57, 0.0 }
 0x25f   : > { %v2272_v8 = vpop.f32.mrb[13].mxu0  ;;  %2595 = vmatprep.mubr.f32.mxu0 %v11853_v28  ;;  %6775 = vmatpush1.bf16.msra.mxu0 %v9067_v9 }
 0x260   : > { %6777 = vmatprep.subr.bf16.mxu0 %v9069_v53  ;;  %v2611_v53 = vand.u32 4294901760, %v2610_v13  ;;  %v9328_v6 = vand.u32 4294901760, %v2399_v39  ;;  %v2622_v57 = vand.u32 4294901760, %v2621_v51  ;;  %v11859_v51 = vand.u32 4294901760, %v9314_v60 }
 0x262   : > { %v9311_v38 = vpop.f32.mrb[14].mxu0  ;;  %2601 = vmatmul.mubr.f32.gmra.mrb[38].mxu0 %v2600_v20  ;;  %11857 = vst [vmem:[#allocation46_spill] sm:$0xff] %v9328_v6 }
 0x263   : > { %v9317_v9 = vpop.f32.mrb[15].mxu0  ;;  %2606 = vmatprep.mubr.f32.mxu0 %v11853_v28  ;;  %6779 = vmatpush1.bf16.msra.mxu0 %v9088_v12  ;;  %v2632_v12 = vsub.f32 %v9302_v11, %v11488_v1  ;;  %v2401_v1 = vmax.f32 %v6950_v37, 0.0 }
 0x264   : > { %6781 = vmatprep.subr.bf16.mxu0 %v9112_v46  ;;  %v9338_v46 = vsub.f32 %v2398_v47, %v9322_v35  ;;  %v6953_v47 = vadd.f32 %v9232_v0, %v2272_v8  ;;  %v11862_v8 = vpack.c.bf16 %v8834_v44, %v8829_v62  ;;  %v11872_v62 = vpack.c.bf16 %v8604_v10, %v8599_v56 }
 0x265   : > { %v11878_v56 = vpack.c.bf16 %v8615_v32, %v8610_v26  ;;  %v11883_v26 = vpack.c.bf16 %v9035_v34, %v9030_v17  ;;  %v11889_v34 = vpack.c.bf16 %v9077_v18, %v9065_v15  ;;  %v11894_v18 = vpack.c.bf16 %v9110_v7, %v9096_v36 }
 0x266   : > { %v6518_v20 = vpop.f32.mrb[16].mxu0  ;;  %2612 = vmatmul.mubr.f32.gmra.mrb[40].mxu0 %v2611_v53  ;;  %v9348_v53 = vsub.f32 %v2399_v39, %v9328_v6  ;;  %v6952_v6 = vadd.f32 %v6512_v40, %v9232_v0  ;;  %v2402_v39 = vmax.f32 %v6953_v47, 0.0 }
 0x267   : > { %v2296_v3 = vpop.f32.mrb[17].mxu0  ;;  %2617 = vmatprep.mubr.f32.mxu0 %v11853_v28  ;;  %6783 = vmatpush1.bf16.msra.mxu0 %v9131_v4  ;;  %v9341_v58 = vadd.f32 %v6518_v20, %v9232_v0  ;;  %v9351_v4 = vand.u32 4294901760, %v2400_v29 }
 0x268   : > { %v9344_v55 = vadd.f32 %v9232_v0, %v2296_v3  ;;  %6785 = vmatprep.subr.bf16.mxu0 %v9133_v23  ;;  %v2633_v3 = vand.u32 4294901760, %v2632_v12  ;;  %v2643_v23 = vsub.f32 %v9314_v60, %v11859_v51  ;;  %v9369_v12 = vand.u32 4294901760, %v2401_v1 }
 0x269   : > { %11858 = vst [vmem:[#allocation48_spill] sm:$0xff] %v9351_v4  ;;  %v11863_v40 = vmax.f32 %v9341_v58, 0.0 }
 0x26a   : > { %v11493_v13 = vmax.f32 %v9344_v55, 0.0  ;;  %v6521_v54 = vpop.f32.mrb[18].mxu0  ;;  %2623 = vmatmul.mubr.f32.gmra.mrb[42].mxu0 %v2622_v57  ;;  %11861 = vst [vmem:[#allocation52_spill] sm:$0xff] %v9369_v12 }
 0x26b   : > { %v2308_v20 = vpop.f32.mrb[19].mxu0  ;;  %2628 = vmatprep.mubr.f32.mxu0 %v11853_v28  ;;  %6787 = vmatpush1.bf16.msra.mxu0 %v9165_v24  ;;  %v9383_v35 = vand.u32 4294901760, %v11863_v40  ;;  %v2403_v40 = vmax.f32 %v6952_v6, 0.0  ;;  %v11867_v24 = vand.u32 4294901760, %v9348_v53 }
 0x26c   : > { %v9362_v37 = vand.u32 4294901760, %v11493_v13  ;;  %v9365_v57 = vadd.f32 %v9232_v0, %v2308_v20  ;;  %6789 = vmatprep.subr.bf16.mxu0 %v9176_v52  ;;  %v9375_v13 = vsub.f32 %v2400_v29, %v9351_v4  ;;  %v2644_v52 = vand.u32 4294901760, %v2643_v23 }
 0x26d   : > { %11864 = vst [vmem:[#allocation53_spill] sm:$0xff] %v9383_v35  ;;  %v11865_v29 = vand.u32 4294901760, %v9338_v46  ;;  %v9398_v23 = vsub.f32 %v2401_v1, %v9369_v12  ;;  %v2665_v44 = vsub.f32 %v9348_v53, %v11867_v24  ;;  %v9429_v1 = vand.u32 4294901760, %v2403_v40 }
 0x26e   : > { %11860 = vst [vmem:[#allocation49_spill] sm:$0xff] %v9362_v37  ;;  %v6524_v51 = vpop.f32.mrb[20].mxu0  ;;  %2634 = vmatmul.mubr.f32.gmra.mrb[44].mxu0 %v2633_v3  ;;  %3253 = vmatmul.mubr.f32.vlgmr.msra.gmra.mrb[0].mxu1 %v9362_v37  ;;  %v9386_v3 = vadd.f32 %v6521_v54, %v9232_v0  ;;  %v11869_v6 = vmax.f32 %v9365_v57, 0.0 }
 0x26f   : > { %v2320_v20 = vpop.f32.mrb[21].mxu0  ;;  %6799 = vmatpush1.bf16.msra.mxu1 %v11862_v8  ;;  %2639 = vmatprep.mubr.f32.mxu0 %v11853_v28  ;;  %v2654_v47 = vsub.f32 %v9338_v46, %v11865_v29  ;;  %v11866_v8 = vpack.c.bf16 %v8577_v14, %v8572_v61  ;;  %v9406_v29 = vand.u32 4294901760, %v2402_v39  ;;  %11873 = vst [vmem:[#allocation59_spill] sm:$0xff] %v9429_v1 }
 0x270   : > { %3258 = vmatprep.mubr.f32.mxu1 %v11853_v28  ;;  %6791 = vmatpush1.bf16.msra.mxu0 %v9188_v33  ;;  %v9419_v24 = vadd.f32 %v9232_v0, %v2320_v20 }
 0x271   : > { %6801 = vmatprep.subr.bf16.mxu1 %v11866_v8  ;;  %11868 = vst [vmem:[#allocation56_spill] sm:$0xff] %v9406_v29  ;;  %v6955_v8 = vadd.f32 %v9232_v0, %v9317_v9  ;;  %v2655_v61 = vand.u32 4294901760, %v2654_v47  ;;  %v11871_v9 = vpack.c.bf16 %v8958_v27, %v8893_v16  ;;  %6793 = vmatprep.subr.bf16.mxu0 %v9190_v21  ;;  %v2666_v47 = vand.u32 4294901760, %v2665_v44 }
 0x272   : > { %v9400_v54 = vpop.f32.mrb[22].mxu0  ;;  %2645 = vmatmul.mubr.f32.gmra.mrb[46].mxu0 %v2644_v52  ;;  %3260 = vmatmul.mubr.f32.gmra.mrb[2].mxu1 %v9383_v35  ;;  %v9416_v52 = vand.u32 4294901760, %v11869_v6  ;;  %v6954_v6 = vadd.f32 %v9311_v38, %v9232_v0  ;;  %v9436_v21 = vsub.f32 %v2402_v39, %v9406_v29  ;;  %v11874_v38 = vand.u32 4294901760, %v9375_v13 }
 0x273   : > { %v2332_v14 = vpop.f32.mrb[23].mxu0  ;;  %2650 = vmatprep.mubr.f32.mxu0 %v11853_v28  ;;  %3265 = vmatprep.mubr.f32.mxu1 %v11853_v28  ;;  %v2404_v33 = vmax.f32 %v6955_v8, 0.0  ;;  %v11875_v44 = vmax.f32 %v9386_v3, 0.0  ;;  %v9451_v39 = vadd.f32 %v6524_v51, %v9232_v0  ;;  %v11879_v51 = vand.u32 4294901760, %v9398_v23 }
 0x274   : > { %11870 = vst [vmem:[#allocation57_spill] sm:$0xff] %v9416_v52  ;;  %6803 = vmatpush1.bf16.msra.mxu1 %v11871_v9  ;;  %6795 = vmatpush1.bf16.msra.mxu0 %v9194_v49  ;;  %v11877_v9 = vpack.c.bf16 %v8988_v25, %v8983_v50 }
 0x275   : > { %6805 = vmatprep.subr.bf16.mxu1 %v11872_v62  ;;  %v9448_v10 = vand.u32 4294901760, %v11875_v44  ;;  %v2405_v44 = vmax.f32 %v6954_v6, 0.0  ;;  %v9470_v8 = vand.u32 4294901760, %v2404_v33 }
 0x276   : > { %v6530_v20 = vpop.f32.mrb[24].mxu0  ;;  %2656 = vmatmul.mubr.f32.gmra.mrb[48].mxu0 %v2655_v61  ;;  %3267 = vmatmul.mubr.f32.gmra.mrb[4].mxu1 %v9416_v52  ;;  %v2676_v61 = vsub.f32 %v9375_v13, %v11874_v38  ;;  %v9464_v38 = vsub.f32 %v2403_v40, %v9429_v1 }
 0x277   : > { %v9439_v62 = vadd.f32 %v6530_v20, %v9232_v0  ;;  %v2344_v49 = vpop.f32.mrb[25].mxu0  ;;  %2661 = vmatprep.mubr.f32.mxu0 %v11853_v28  ;;  %3272 = vmatprep.mubr.f32.mxu1 %v11853_v28  ;;  %11876 = vst [vmem:[#allocation60_spill] sm:$0xff] %v9448_v10  ;;  %11880 = vst [vmem:[#allocation62_spill] sm:$0xff] %v9470_v8  ;;  %v9495_v40 = vand.u32 4294901760, %v2405_v44 }
 0x278   : > { %v9455_v20 = vadd.f32 %v9232_v0, %v2344_v49  ;;  %6807 = vmatpush1.bf16.msra.mxu1 %v11877_v9  ;;  %v2687_v49 = vsub.f32 %v9398_v23, %v11879_v51  ;;  %v9484_v51 = vadd.f32 %v9232_v0, %v2332_v14  ;;  %v9499_v14 = vsub.f32 %v2404_v33, %v9470_v8 }
 0x279   : > { %6809 = vmatprep.subr.bf16.mxu1 %v11878_v56  ;;  %v2677_v56 = vand.u32 4294901760, %v2676_v61  ;;  %v11884_v61 = vpack.c.bf16 %v8917_v63, %v8915_v5  ;;  %11885 = vst [vmem:[#allocation64_spill] sm:$0xff] %v9495_v40  ;;  %v11887_v63 = vmax.f32 %v9451_v39, 0.0  ;;  %v9516_v33 = vadd.f32 %v9400_v54, %v9232_v0 }
 0x27a   : > { %v6533_v27 = vpop.f32.mrb[26].mxu0  ;;  %2667 = vmatmul.mubr.f32.gmra.mrb[50].mxu0 %v2666_v47  ;;  %3274 = vmatmul.mubr.f32.gmra.mrb[6].mxu1 %v9448_v10  ;;  %v11881_v47 = vmax.f32 %v9419_v24, 0.0 }
 0x27b   : > { %v9473_v9 = vadd.f32 %v6533_v27, %v9232_v0  ;;  %v2356_v25 = vpop.f32.mrb[27].mxu0  ;;  %2672 = vmatprep.mubr.f32.mxu0 %v11853_v28  ;;  %3279 = vmatprep.mubr.f32.mxu1 %v11853_v28 }
 0x27c   : > { %v9481_v32 = vand.u32 4294901760, %v11881_v47  ;;  %v9487_v27 = vadd.f32 %v9232_v0, %v2356_v25  ;;  %6811 = vmatpush1.bf16.msra.mxu1 %v11883_v26  ;;  %v2688_v47 = vand.u32 4294901760, %v2687_v49  ;;  %v11886_v26 = vand.u32 4294901760, %v9436_v21 }
 0x27d   : > { %6813 = vmatprep.subr.bf16.mxu1 %v11884_v61  ;;  %v9512_v49 = vand.u32 4294901760, %v11887_v63  ;;  %v9530_v63 = vsub.f32 %v2405_v44, %v9495_v40 }
 0x27e   : > { %11882 = vst [vmem:[#allocation63_spill] sm:$0xff] %v9481_v32  ;;  %v6536_v6 = vpop.f32.mrb[28].mxu0  ;;  %2678 = vmatmul.mubr.f32.gmra.mrb[52].mxu0 %v2677_v56  ;;  %3281 = vmatmul.mubr.f32.gmra.mrb[8].mxu1 %v9481_v32  ;;  %v2698_v61 = vsub.f32 %v9436_v21, %v11886_v26  ;;  %v11890_v26 = vpack.c.bf16 %v9006_v41, %v9001_v48  ;;  %v11892_v41 = vmax.f32 %v9484_v51, 0.0 }
 0x27f   : > { %v9502_v25 = vadd.f32 %v6536_v6, %v9232_v0  ;;  %v2368_v50 = vpop.f32.mrb[29].mxu0  ;;  %2683 = vmatprep.mubr.f32.mxu0 %v11853_v28  ;;  %3286 = vmatprep.mubr.f32.mxu1 %v11853_v28  ;;  %11888 = vst [vmem:[#allocation65_spill] sm:$0xff] %v9512_v49  ;;  %v11891_v6 = vand.u32 4294901760, %v9464_v38 }
 0x280   : > { %v9520_v5 = vadd.f32 %v9232_v0, %v2368_v50  ;;  %6815 = vmatpush1.bf16.msra.mxu1 %v11889_v34  ;;  %v2699_v34 = vand.u32 4294901760, %v2698_v61  ;;  %v9543_v48 = vand.u32 4294901760, %v11892_v41  ;;  %v11895_v61 = vpack.c.bf16 %v9013_v30, %v9010_v19 }
 0x281   : > { %6817 = vmatprep.subr.bf16.mxu1 %v11890_v26  ;;  %v2709_v26 = vsub.f32 %v9464_v38, %v11891_v6  ;;  %v11896_v6 = vmax.f32 %v9344_v55, 0.0  ;;  %v11901_v55 = vmax.f32 %v9341_v58, 0.0  ;;  %v11904_v58 = vld [vmem:[#allocation50_spill] sm:$0xff] }
 0x282   : > { %v6539_v56 = vpop.f32.mrb[30].mxu0  ;;  %2689 = vmatmul.mubr.f32.gmra.mrb[54].mxu0 %v2688_v47  ;;  %3288 = vmatmul.mubr.f32.gmra.mrb[10].mxu1 %v9512_v49  ;;  %v11515_v47 = vmax.f32 %v9516_v33, 0.0  ;;  %11893 = vst [vmem:[#allocation66_spill] sm:$0xff] %v9543_v48 }
 0x283   : > { %v9533_v54 = vadd.f32 %v6539_v56, %v9232_v0  ;;  %v2380_v50 = vpop.f32.mrb[31].mxu0  ;;  %2694 = vmatprep.mubr.f32.mxu0 %v11853_v28  ;;  %3293 = vmatprep.mubr.f32.mxu1 %v11853_v28  ;;  %v11514_v56 = vand.u32 4294901760, %v9499_v14  ;;  %v2710_v41 = vand.u32 4294901760, %v2709_v26  ;;  %v11898_v26 = vpack.c.bf16 %v9141_v2, %v9129_v42 }
 0x284   : > { %v9546_v44 = vadd.f32 %v9232_v0, %v2380_v50  ;;  %6819 = vmatpush1.bf16.msra.mxu1 %v11894_v18  ;;  %v9562_v50 = vsub.f32 %v11896_v6, %v9362_v37  ;;  %v9566_v18 = vand.u32 4294901760, %v11515_v47  ;;  %v11899_v0 = vld [vmem:[#allocation33_spill] sm:$0xff]  ;;  %v9582_v6 = vsub.f32 %v11901_v55, %v9383_v35  ;;  %v11905_v55 = vld [vmem:[#allocation44_spill] sm:$0xff] }
 0x285   : > { %6821 = vmatprep.subr.bf16.mxu1 %v11895_v61  ;;  %v2720_v61 = vsub.f32 %v9499_v14, %v11514_v56  ;;  %v11900_v30 = vpack.c.bf16 %v9048_v59, %v11899_v0  ;;  %v11902_v56 = vand.u32 4294901760, %v9530_v63  ;;  %v11522_v47 = vmax.f32 %v9439_v62, 0.0  ;;  %v11907_v59 = vld [vmem:[#allocation19_spill] sm:$0xff] }
 0x286   : > { %2700 = vmatmul.mubr.f32.gmra.mrb[56].mxu0 %v2699_v34  ;;  %3295 = vmatmul.mubr.f32.gmra.mrb[12].mxu1 %v9543_v48  ;;  %11897 = vst [vmem:[#allocation67_spill] sm:$0xff] %v9566_v18  ;;  %v11521_v34 = vmax.f32 %v9455_v20, 0.0  ;;  %v11906_v35 = vpack.c.bf16 %v11904_v58, %v11905_v55 }
 0x287   : > { %2705 = vmatprep.mubr.f32.mxu0 %v11853_v28  ;;  %3300 = vmatprep.mubr.f32.mxu1 %v11853_v28 }
 0x288   : > { %6823 = vmatpush1.bf16.msra.mxu1 %v11898_v26  ;;  %v2731_v26 = vsub.f32 %v9530_v63, %v11902_v56 }
 0x289   : > { %6825 = vmatprep.subr.bf16.mxu1 %v11900_v30  ;;  %v9592_v30 = vand.u32 4294901760, %v11521_v34 }
 0x28a   : > { %2711 = vmatmul.mubr.f32.gmra.mrb[58].mxu0 %v2710_v41  ;;  %3302 = vmatmul.mubr.f32.gmra.mrb[14].mxu1 %v9566_v18  ;;  %v2721_v41 = vand.u32 4294901760, %v2720_v61  ;;  %v2732_v56 = vand.u32 4294901760, %v2731_v26  ;;  %v11908_v61 = vmax.f32 %v9365_v57, 0.0  ;;  %v11911_v26 = vmax.f32 %v9386_v3, 0.0 }
 0x28b   : > { %2716 = vmatprep.mubr.f32.mxu0 %v11853_v28  ;;  %3307 = vmatprep.mubr.f32.mxu1 %v11853_v28  ;;  %11903 = vst [vmem:[#allocation33_spill] sm:$0xff] %v9592_v30  ;;  %v11912_v57 = vand.u32 4294901760, %v9582_v6 }
 0x28c   : > { %6827 = vmatpush1.bf16.msra.mxu1 %v11906_v35  ;;  %v9606_v37 = vsub.f32 %v11908_v61, %v9416_v52  ;;  %v9610_v35 = vand.u32 4294901760, %v11522_v47  ;;  %v9620_v34 = vsub.f32 %v11911_v26, %v9448_v10 }
 0x28d   : > { %6829 = vmatprep.subr.bf16.mxu1 %v11907_v59  ;;  %v11910_v59 = vand.u32 4294901760, %v9562_v50  ;;  %v2753_v61 = vsub.f32 %v9582_v6, %v11912_v57  ;;  %v11914_v57 = vmax.f32 %v9419_v24, 0.0 }
 0x28e   : > { %2722 = vmatmul.mubr.f32.gmra.mrb[60].mxu0 %v2721_v41  ;;  %3309 = vmatmul.mubr.f32.gmra.mrb[16].mxu1 %v9592_v30  ;;  %11909 = vst [vmem:[#allocation44_spill] sm:$0xff] %v9610_v35  ;;  %v11525_v41 = vmax.f32 %v9487_v27, 0.0  ;;  %v11528_v52 = vand.u32 4294901760, %v9606_v37  ;;  %v11918_v24 = vand.u32 4294901760, %v9620_v34 }
 0x28f   : > { %2727 = vmatprep.mubr.f32.mxu0 %v11853_v28  ;;  %3314 = vmatprep.mubr.f32.mxu1 %v11853_v28  ;;  %v2742_v58 = vsub.f32 %v9562_v50, %v11910_v59  ;;  %v2754_v3 = vand.u32 4294901760, %v2753_v61  ;;  %v9640_v47 = vsub.f32 %v11914_v57, %v9481_v32  ;;  %v11917_v61 = vmax.f32 %v9451_v39, 0.0 }
 0x290   : > { %v9630_v59 = vand.u32 4294901760, %v11525_v41  ;;  %v11915_v41 = vmax.f32 %v9473_v9, 0.0  ;;  %v2764_v10 = vsub.f32 %v9606_v37, %v11528_v52 }
 0x291   : > { %v9654_v26 = vsub.f32 %v11917_v61, %v9512_v49  ;;  %v11534_v32 = vand.u32 4294901760, %v9640_v47 }
 0x292   : > { %2733 = vmatmul.mubr.f32.gmra.mrb[62].mxu0 %v2732_v56  ;;  %3316 = vmatmul.mubr.f32.gmra.mrb[18].mxu1 %v9610_v35  ;;  %11913 = vst [vmem:[#allocation68_spill] sm:$0xff] %v9630_v59  ;;  %v2743_v56 = vand.u32 4294901760, %v2742_v58  ;;  %v9644_v58 = vand.u32 4294901760, %v11915_v41  ;;  %v2775_v41 = vsub.f32 %v9620_v34, %v11918_v24  ;;  %v2765_v52 = vand.u32 4294901760, %v2764_v10 }
 0x293   : > { %2738 = vmatprep.mubr.f32.mxu0 %v11853_v28  ;;  %3321 = vmatprep.mubr.f32.mxu1 %v11853_v28  ;;  %v11920_v24 = vmax.f32 %v9484_v51, 0.0  ;;  %v2786_v49 = vsub.f32 %v9640_v47, %v11534_v32  ;;  %v11924_v51 = vand.u32 4294901760, %v9654_v26 }
 0x294   : > { %11916 = vst [vmem:[#allocation69_spill] sm:$0xff] %v9644_v58  ;;  %v2776_v39 = vand.u32 4294901760, %v2775_v41  ;;  %v11923_v41 = vmax.f32 %v9516_v33, 0.0 }
 0x295   : > { %v9674_v57 = vsub.f32 %v11920_v24, %v9543_v48  ;;  %v11538_v24 = vmax.f32 %v9533_v54, 0.0  ;;  %v2787_v32 = vand.u32 4294901760, %v2786_v49 }
 0x296   : > { %2744 = vmatmul.mubr.f32.gmra.mrb[64].mxu0 %v2743_v56  ;;  %3323 = vmatmul.mubr.f32.gmra.mrb[20].mxu1 %v9630_v59  ;;  %v11531_v56 = vmax.f32 %v9520_v5, 0.0  ;;  %v9688_v61 = vsub.f32 %v11923_v41, %v9566_v18  ;;  %v11926_v41 = vmax.f32 %v9455_v20, 0.0  ;;  %v11928_v20 = vmax.f32 %v9439_v62, 0.0 }
 0x297   : > { %2749 = vmatprep.mubr.f32.mxu0 %v11853_v28  ;;  %3328 = vmatprep.mubr.f32.mxu1 %v11853_v28  ;;  %v11539_v48 = vand.u32 4294901760, %v9674_v57  ;;  %v11931_v18 = vmax.f32 %v9487_v27, 0.0  ;;  %v11934_v27 = vmax.f32 %v9473_v9, 0.0  ;;  %v11937_v9 = vmax.f32 %v9520_v5, 0.0 }
 0x298   : > { %v11544_v49 = vand.u32 4294901760, %v9688_v61  ;;  %v11940_v5 = vmax.f32 %v9502_v25, 0.0 }
 0x299   : > { %v9735_v62 = vsub.f32 %v11931_v18, %v9630_v59  ;;  %v9749_v18 = vsub.f32 %v11934_v27, %v9644_v58 }
 0x29a   : > { %2755 = vmatmul.mubr.f32.gmra.mrb[66].mxu0 %v2754_v3  ;;  %3330 = vmatmul.mubr.f32.gmra.mrb[22].mxu1 %v9644_v58  ;;  %v9664_v3 = vand.u32 4294901760, %v11531_v56  ;;  %v11921_v56 = vmax.f32 %v9502_v25, 0.0  ;;  %v11943_v25 = vmax.f32 %v9546_v44, 0.0 }
 0x29b   : > { %2760 = vmatprep.mubr.f32.mxu0 %v11853_v28  ;;  %3335 = vmatprep.mubr.f32.mxu1 %v11853_v28  ;;  %v11553_v59 = vand.u32 4294901760, %v9735_v62  ;;  %v11556_v58 = vand.u32 4294901760, %v9749_v18 }
 0x29c   : > { %11919 = vst [vmem:[#allocation70_spill] sm:$0xff] %v9664_v3  ;;  %v9678_v10 = vand.u32 4294901760, %v11921_v56  ;;  %v2797_v56 = vsub.f32 %v9654_v26, %v11924_v51  ;;  %v9707_v51 = vsub.f32 %v11926_v41, %v9592_v30  ;;  %v11930_v30 = vld [vmem:[#allocation4_spill] sm:$0xff] }
 0x29e   : > { %2766 = vmatmul.mubr.f32.gmra.mrb[68].mxu0 %v2765_v52  ;;  %3337 = vmatmul.mubr.f32.gmra.mrb[24].mxu1 %v9664_v3  ;;  %11922 = vst [vmem:[#allocation71_spill] sm:$0xff] %v9678_v10  ;;  %v11537_v52 = vmax.f32 %v9546_v44, 0.0  ;;  %v2798_v33 = vand.u32 4294901760, %v2797_v56  ;;  %v9723_v56 = vsub.f32 %v11928_v20, %v9610_v35  ;;  %v11933_v35 = vld [vmem:[#allocation12_spill] sm:$0xff]  ;;  %v11946_v44 = vmax.f32 %v9533_v54, 0.0 }
 0x29f   : > { %2771 = vmatprep.mubr.f32.mxu0 %v11853_v28  ;;  %3342 = vmatprep.mubr.f32.mxu1 %v11853_v28 }
 0x2a2   : > { %2777 = vmatmul.mubr.f32.gmra.mrb[70].mxu0 %v2776_v39  ;;  %3344 = vmatmul.mubr.f32.gmra.mrb[26].mxu1 %v9678_v10  ;;  %v9698_v39 = vand.u32 4294901760, %v11537_v52  ;;  %v9711_v52 = vand.u32 4294901760, %v11538_v24  ;;  %v2819_v24 = vsub.f32 %v9688_v61, %v11544_v49  ;;  %v11932_v49 = vld [vmem:[#allocation20_spill] sm:$0xff] }
 0x2a3   : > { %2782 = vmatprep.mubr.f32.mxu0 %v11853_v28  ;;  %3349 = vmatprep.mubr.f32.mxu1 %v11853_v28 }
 0x2a4   : > { %11925 = vst [vmem:[#allocation72_spill] sm:$0xff] %v9698_v39  ;;  %11927 = vst [vmem:[#allocation73_spill] sm:$0xff] %v9711_v52 }
 0x2a6   : > { %2788 = vmatmul.mubr.f32.gmra.mrb[72].mxu0 %v2787_v32  ;;  %3351 = vmatmul.mubr.f32.gmra.mrb[28].mxu1 %v9698_v39  ;;  %v2808_v32 = vsub.f32 %v9674_v57, %v11539_v48  ;;  %v11547_v48 = vand.u32 4294901760, %v9707_v51 }
 0x2a7   : > { %2793 = vmatprep.mubr.f32.mxu0 %v11853_v28  ;;  %3356 = vmatprep.mubr.f32.mxu1 %v11853_v28 }
 0x2a8   : > { %v2809_v41 = vand.u32 4294901760, %v2808_v32  ;;  %v2820_v32 = vand.u32 4294901760, %v2819_v24  ;;  %v2830_v20 = vsub.f32 %v9707_v51, %v11547_v48 }
 0x2aa   : > { %2799 = vmatmul.mubr.f32.gmra.mrb[74].mxu0 %v2798_v33  ;;  %3358 = vmatmul.mubr.f32.gmra.mrb[30].mxu1 %v9711_v52  ;;  %v11929_v33 = vld [vmem:[#allocation30_spill] sm:$0xff]  ;;  %v2831_v24 = vand.u32 4294901760, %v2830_v20  ;;  %v9763_v20 = vsub.f32 %v11937_v9, %v9664_v3 }
 0x2ab   : > { %2804 = vmatprep.mubr.f32.mxu0 %v11853_v28  ;;  %3492 = vmatprep.mubr.f32.mxu1 %v11853_v28 }
 0x2ac   : > { %v11559_v3 = vand.u32 4294901760, %v9763_v20 }
 0x2ae   : > { %2810 = vmatmul.mubr.f32.gmra.mrb[76].mxu0 %v2809_v41  ;;  %3495 = vmatmul.mubr.f32.vlgmr.msra.gmra.mrb[32].mxu1 %v11929_v33  ;;  %v11550_v41 = vand.u32 4294901760, %v9723_v56 }
 0x2af   : > { %6831 = vmatpush1.bf16.msra.mxu1 %v11930_v30  ;;  %2815 = vmatprep.mubr.f32.mxu0 %v11853_v28 }
 0x2b0   : > { %3500 = vmatprep.mubr.f32.mxu1 %v11853_v28  ;;  %6833 = vmatprep.subr.bf16.mxu1 %v11932_v49  ;;  %v2841_v48 = vsub.f32 %v9723_v56, %v11550_v41  ;;  %v11935_v49 = vld [vmem:[#allocation23_spill] sm:$0xff]  ;;  %v2852_v41 = vsub.f32 %v9735_v62, %v11553_v59  ;;  %v2863_v59 = vsub.f32 %v9749_v18, %v11556_v58 }
 0x2b1   : > { %v2874_v58 = vsub.f32 %v9763_v20, %v11559_v3 }
 0x2b2   : > { %2821 = vmatmul.mubr.f32.gmra.mrb[78].mxu0 %v2820_v32  ;;  %3503 = vmatmul.mubr.f32.gmra.mrb[34].mxu1 %v11933_v35  ;;  %v11936_v32 = vld [vmem:[#allocation6_spill] sm:$0xff]  ;;  %v2842_v27 = vand.u32 4294901760, %v2841_v48  ;;  %v9777_v48 = vsub.f32 %v11940_v5, %v9678_v10  ;;  %v2853_v9 = vand.u32 4294901760, %v2852_v41  ;;  %v9791_v41 = vsub.f32 %v11943_v25, %v9698_v39 }
 0x2b3   : > { %2826 = vmatprep.mubr.f32.mxu0 %v11853_v28  ;;  %3508 = vmatprep.mubr.f32.mxu1 %v11853_v28  ;;  %v2864_v5 = vand.u32 4294901760, %v2863_v59  ;;  %v9805_v59 = vsub.f32 %v11946_v44, %v9711_v52  ;;  %v2875_v25 = vand.u32 4294901760, %v2874_v58  ;;  %v11950_v52 = vld [vmem:[#allocation7_spill] sm:$0xff] }
 0x2b4   : > { %6835 = vmatpush1.bf16.msra.mxu1 %v11935_v49  ;;  %v11562_v10 = vand.u32 4294901760, %v9777_v48  ;;  %v11565_v39 = vand.u32 4294901760, %v9791_v41 }
 0x2b5   : > { %6837 = vmatprep.subr.bf16.mxu1 %v11936_v32  ;;  %v11938_v32 = vld [vmem:[#allocation24_spill] sm:$0xff]  ;;  %v11566_v44 = vand.u32 4294901760, %v9805_v59 }
 0x2b6   : > { %2832 = vmatmul.mubr.f32.gmra.mrb[80].mxu0 %v2831_v24  ;;  %3511 = vmatmul.mubr.f32.gmra.mrb[36].mxu1 %v9260_v43  ;;  %v11939_v24 = vld [vmem:[#allocation25_spill] sm:$0xff]  ;;  %v2885_v3 = vsub.f32 %v9777_v48, %v11562_v10  ;;  %v2896_v58 = vsub.f32 %v9791_v41, %v11565_v39  ;;  %v11949_v10 = vld [vmem:[#allocation58_spill] sm:$0xff] }
 0x2b7   : > { %2837 = vmatprep.mubr.f32.mxu0 %v11853_v28  ;;  %3516 = vmatprep.mubr.f32.mxu1 %v11853_v28  ;;  %v2907_v39 = vsub.f32 %v9805_v59, %v11566_v44  ;;  %v11965_v44 = vld [vmem:[#allocation46_spill] sm:$0xff] }
 0x2b8   : > { %6839 = vmatpush1.bf16.msra.mxu1 %v11938_v32  ;;  %v2886_v54 = vand.u32 4294901760, %v2885_v3  ;;  %v2897_v3 = vand.u32 4294901760, %v2896_v58  ;;  %v11961_v58 = vld [vmem:[#allocation38_spill] sm:$0xff] }
 0x2b9   : > { %6841 = vmatprep.subr.bf16.mxu1 %v11939_v24  ;;  %v11941_v24 = vld [vmem:[#allocation9_spill] sm:$0xff] }
 0x2ba   : > { %2843 = vmatmul.mubr.f32.gmra.mrb[82].mxu0 %v2842_v27  ;;  %3519 = vmatmul.mubr.f32.gmra.mrb[38].mxu1 %v9263_v31  ;;  %v11942_v27 = vld [vmem:[#allocation28_spill] sm:$0xff] }
 0x2bb   : > { %2848 = vmatprep.mubr.f32.mxu0 %v11853_v28  ;;  %3524 = vmatprep.mubr.f32.mxu1 %v11853_v28 }
 0x2bc   : > { %6843 = vmatpush1.bf16.msra.mxu1 %v11941_v24 }
 0x2bd   : > { %6845 = vmatprep.subr.bf16.mxu1 %v11942_v27  ;;  %v11944_v27 = vld [vmem:[#allocation32_spill] sm:$0xff] }
 0x2be   : > { %2854 = vmatmul.mubr.f32.gmra.mrb[84].mxu0 %v2853_v9  ;;  %3527 = vmatmul.mubr.f32.gmra.mrb[40].mxu1 %v9278_v22  ;;  %v11945_v9 = vld [vmem:[#allocation41_spill] sm:$0xff] }
 0x2bf   : > { %2859 = vmatprep.mubr.f32.mxu0 %v11853_v28  ;;  %3532 = vmatprep.mubr.f32.mxu1 %v11853_v28 }
 0x2c0   : > { %6847 = vmatpush1.bf16.msra.mxu1 %v11944_v27 }
 0x2c1   : > { %6849 = vmatprep.subr.bf16.mxu1 %v11945_v9  ;;  %v11947_v9 = vld [vmem:[#allocation45_spill] sm:$0xff] }
 0x2c2   : > { %2865 = vmatmul.mubr.f32.gmra.mrb[86].mxu0 %v2864_v5  ;;  %3535 = vmatmul.mubr.f32.gmra.mrb[42].mxu1 %v9286_v45  ;;  %v11948_v5 = vld [vmem:[#allocation47_spill] sm:$0xff] }
 0x2c3   : > { %2870 = vmatprep.mubr.f32.mxu0 %v11853_v28  ;;  %3540 = vmatprep.mubr.f32.mxu1 %v11853_v28 }
 0x2c4   : > { %6851 = vmatpush1.bf16.msra.mxu1 %v11947_v9  ;;  %v11951_v9 = vld [vmem:[#allocation5_spill] sm:$0xff] }
 0x2c5   : > { %6853 = vmatprep.subr.bf16.mxu1 %v11948_v5  ;;  %v11952_v5 = vand.u32 4294901760, %v11951_v9  ;;  %v11956_v9 = vld [vmem:[#allocation29_spill] sm:$0xff] }
 0x2c6   : > { %2876 = vmatmul.mubr.f32.gmra.mrb[88].mxu0 %v2875_v25  ;;  %3543 = vmatmul.mubr.f32.gmra.mrb[44].mxu1 %v9302_v11  ;;  %v11953_v25 = vld [vmem:[#allocation10_spill] sm:$0xff] }
 0x2c7   : > { %2881 = vmatprep.mubr.f32.mxu0 %v11853_v28  ;;  %3548 = vmatprep.mubr.f32.mxu1 %v11853_v28  ;;  %v11954_v27 = vand.u32 4294901760, %v11953_v25  ;;  %v11962_v25 = vld [vmem:[#allocation39_spill] sm:$0xff] }
 0x2c8   : > { %6855 = vmatpush1.bf16.msra.mxu1 %v11949_v10  ;;  %v11955_v10 = vld [vmem:[#allocation8_spill] sm:$0xff] }
 0x2c9   : > { %6857 = vmatprep.subr.bf16.mxu1 %v11950_v52  ;;  %v6860_v24 = vpack.c.bf16 %v11954_v27, %v11952_v5  ;;  %v2908_v27 = vand.u32 4294901760, %v2907_v39  ;;  %v11958_v39 = vld [vmem:[#allocation17_spill] sm:$0xff]  ;;  %v11959_v5 = vld [vmem:[#allocation31_spill] sm:$0xff]  ;;  %v11974_v52 = vand.u32 4294901760, %v11929_v33 }
 0x2ca   : > { %2887 = vmatmul.mubr.f32.gmra.mrb[90].mxu0 %v2886_v54  ;;  %3551 = vmatmul.mubr.f32.gmra.mrb[46].mxu1 %v9314_v60  ;;  %v11960_v54 = vld [vmem:[#allocation35_spill] sm:$0xff] }
 0x2cb   : > { %2892 = vmatprep.mubr.f32.mxu0 %v11853_v28  ;;  %3556 = vmatprep.mubr.f32.mxu1 %v11853_v28 }
 0x2cc   : > { %6859 = vmatpush1.bf16.msra.mxu1 %v11955_v10 }
 0x2cd   : > { %6861 = vmatprep.subr.bf16.mxu1 %v6860_v24  ;;  %v11957_v24 = vld [vmem:[#allocation51_spill] sm:$0xff] }
 0x2ce   : > { %2898 = vmatmul.mubr.f32.gmra.mrb[92].mxu0 %v2897_v3  ;;  %3559 = vmatmul.mubr.f32.gmra.mrb[48].mxu1 %v9338_v46  ;;  %v11963_v3 = vld [vmem:[#allocation40_spill] sm:$0xff] }
 0x2cf   : > { %2903 = vmatprep.mubr.f32.mxu0 %v11853_v28  ;;  %3564 = vmatprep.mubr.f32.mxu1 %v11853_v28 }
 0x2d2   : > { %2909 = vmatmul.mubr.f32.gmra.mrb[94].mxu0 %v2908_v27  ;;  %3567 = vmatmul.mubr.f32.gmra.mrb[50].mxu1 %v9348_v53  ;;  %v11964_v27 = vld [vmem:[#allocation43_spill] sm:$0xff] }
 0x2d3   : > { %3139 = vmatprep.mubr.f32.mxu0 %v11853_v28  ;;  %3572 = vmatprep.mubr.f32.mxu1 %v11853_v28 }
 0x2d6   : > { %3141 = vmatmul.mubr.f32.vlgmr.msra.gmra.mrb[32].mxu0 %v11956_v9  ;;  %3575 = vmatmul.mubr.f32.gmra.mrb[52].mxu1 %v9375_v13 }
 0x2d7   : > { %3146 = vmatprep.mubr.f32.mxu0 %v11853_v28  ;;  %3580 = vmatprep.mubr.f32.mxu1 %v11853_v28 }
 0x2da   : > { %3148 = vmatmul.mubr.f32.gmra.mrb[34].mxu0 %v11957_v24  ;;  %3583 = vmatmul.mubr.f32.gmra.mrb[54].mxu1 %v9398_v23 }
 0x2db   : > { %3153 = vmatprep.mubr.f32.mxu0 %v11853_v28  ;;  %3588 = vmatprep.mubr.f32.mxu1 %v11853_v28 }
 0x2de   : > { %3155 = vmatmul.mubr.f32.gmra.mrb[36].mxu0 %v11958_v39  ;;  %3591 = vmatmul.mubr.f32.gmra.mrb[56].mxu1 %v9436_v21 }
 0x2df   : > { %3160 = vmatprep.mubr.f32.mxu0 %v11853_v28  ;;  %3596 = vmatprep.mubr.f32.mxu1 %v11853_v28 }
 0x2e2   : > { %3162 = vmatmul.mubr.f32.gmra.mrb[38].mxu0 %v11959_v5  ;;  %3599 = vmatmul.mubr.f32.gmra.mrb[58].mxu1 %v9464_v38 }
 0x2e3   : > { %3167 = vmatprep.mubr.f32.mxu0 %v11853_v28  ;;  %3604 = vmatprep.mubr.f32.mxu1 %v11853_v28 }
 0x2e6   : > { %3169 = vmatmul.mubr.f32.gmra.mrb[40].mxu0 %v11960_v54  ;;  %3607 = vmatmul.mubr.f32.gmra.mrb[60].mxu1 %v9499_v14 }
 0x2e7   : > { %3174 = vmatprep.mubr.f32.mxu0 %v11853_v28  ;;  %3612 = vmatprep.mubr.f32.mxu1 %v11853_v28 }
 0x2ea   : > { %3176 = vmatmul.mubr.f32.gmra.mrb[42].mxu0 %v11961_v58  ;;  %3615 = vmatmul.mubr.f32.gmra.mrb[62].mxu1 %v9530_v63  ;;  %v11976_v58 = vld [vmem:[#allocation61_spill] sm:$0xff] }
 0x2eb   : > { %3181 = vmatprep.mubr.f32.mxu0 %v11853_v28  ;;  %3620 = vmatprep.mubr.f32.mxu1 %v11853_v28  ;;  %v11977_v54 = vand.u32 4294901760, %v11976_v58  ;;  %v11989_v58 = vld [vmem:[#allocation18_spill] sm:$0xff] }
 0x2ee   : > { %3183 = vmatmul.mubr.f32.gmra.mrb[44].mxu0 %v11962_v25  ;;  %3623 = vmatmul.mubr.f32.gmra.mrb[0].mxu1 %v9562_v50  ;;  %v11975_v25 = vand.u32 4294901760, %v8893_v16 }
 0x2ef   : > { %3188 = vmatprep.mubr.f32.mxu0 %v11853_v28  ;;  %3628 = vmatprep.mubr.f32.mxu1 %v11853_v28 }
 0x2f0   : > { %v6866_v5 = vpack.c.bf16 %v11977_v54, %v11975_v25  ;;  %v11990_v25 = vand.u32 4294901760, %v11989_v58  ;;  %v12005_v58 = vld [vmem:[#allocation22_spill] sm:$0xff] }
 0x2f2   : > { %3190 = vmatmul.mubr.f32.gmra.mrb[46].mxu0 %v11963_v3  ;;  %3631 = vmatmul.mubr.f32.gmra.mrb[2].mxu1 %v9582_v6 }
 0x2f3   : > { %3195 = vmatprep.mubr.f32.mxu0 %v11853_v28  ;;  %3636 = vmatprep.mubr.f32.mxu1 %v11853_v28 }
 0x2f6   : > { %3197 = vmatmul.mubr.f32.gmra.mrb[48].mxu0 %v11964_v27  ;;  %3639 = vmatmul.mubr.f32.gmra.mrb[4].mxu1 %v9606_v37  ;;  %v11972_v27 = vld [vmem:[#allocation2_spill] sm:$0xff] }
 0x2f7   : > { %3202 = vmatprep.mubr.f32.mxu0 %v11853_v28  ;;  %3644 = vmatprep.mubr.f32.mxu1 %v11853_v28  ;;  %v11973_v10 = vand.u32 4294901760, %v11972_v27  ;;  %v11982_v27 = vand.u32 4294901760, %v11933_v35  ;;  %v11992_v35 = vand.u32 4294901760, %v9030_v17 }
 0x2fa   : > { %3204 = vmatmul.mubr.f32.gmra.mrb[50].mxu0 %v11965_v44  ;;  %3647 = vmatmul.mubr.f32.gmra.mrb[6].mxu1 %v9620_v34 }
 0x2fb   : > { %3209 = vmatprep.mubr.f32.mxu0 %v11853_v28  ;;  %3652 = vmatprep.mubr.f32.mxu1 %v11853_v28 }
 0x2fe   : > { %3211 = vmatmul.mubr.f32.gmra.mrb[52].mxu0 %v9351_v4  ;;  %3655 = vmatmul.mubr.f32.gmra.mrb[8].mxu1 %v9640_v47  ;;  %v11970_v4 = vld [vmem:[#allocation11_spill] sm:$0xff] }
 0x2ff   : > { %3216 = vmatprep.mubr.f32.mxu0 %v11853_v28  ;;  %3660 = vmatprep.mubr.f32.mxu1 %v11853_v28  ;;  %v11971_v44 = vand.u32 4294901760, %v11970_v4 }
 0x301   : > { %v6864_v3 = vpack.c.bf16 %v11973_v10, %v11971_v44  ;;  %v11987_v44 = vld [vmem:[#allocation3_spill] sm:$0xff] }
 0x302   : > { %3218 = vmatmul.mubr.f32.gmra.mrb[54].mxu0 %v9369_v12  ;;  %3663 = vmatmul.mubr.f32.gmra.mrb[10].mxu1 %v9654_v26  ;;  %v11988_v54 = vand.u32 4294901760, %v11987_v44  ;;  %v12003_v44 = vld [vmem:[#allocation21_spill] sm:$0xff] }
 0x303   : > { %3223 = vmatprep.mubr.f32.mxu0 %v11853_v28  ;;  %3668 = vmatprep.mubr.f32.mxu1 %v11853_v28 }
 0x306   : > { %3225 = vmatmul.mubr.f32.gmra.mrb[56].mxu0 %v9406_v29  ;;  %3671 = vmatmul.mubr.f32.gmra.mrb[12].mxu1 %v9674_v57 }
 0x307   : > { %3230 = vmatprep.mubr.f32.mxu0 %v11853_v28  ;;  %3676 = vmatprep.mubr.f32.mxu1 %v11853_v28 }
 0x30a   : > { %3232 = vmatmul.mubr.f32.gmra.mrb[58].mxu0 %v9429_v1  ;;  %3679 = vmatmul.mubr.f32.gmra.mrb[14].mxu1 %v9688_v61  ;;  %v11968_v1 = vld [vmem:[#allocation37_spill] sm:$0xff] }
 0x30b   : > { %3237 = vmatprep.mubr.f32.mxu0 %v11853_v28  ;;  %3684 = vmatprep.mubr.f32.mxu1 %v11853_v28  ;;  %v11969_v29 = vand.u32 4294901760, %v11968_v1 }
 0x30e   : > { %3239 = vmatmul.mubr.f32.gmra.mrb[60].mxu0 %v9470_v8  ;;  %3687 = vmatmul.mubr.f32.gmra.mrb[16].mxu1 %v9707_v51 }
 0x30f   : > { %3244 = vmatprep.mubr.f32.mxu0 %v11853_v28  ;;  %3692 = vmatprep.mubr.f32.mxu1 %v11853_v28 }
 0x312   : > { %3246 = vmatmul.mubr.f32.gmra.mrb[62].mxu0 %v9495_v40  ;;  %3695 = vmatmul.mubr.f32.gmra.mrb[18].mxu1 %v9723_v56  ;;  %v11966_v40 = vld [vmem:[#allocation34_spill] sm:$0xff] }
 0x313   : > { %3700 = vmatprep.mubr.f32.mxu1 %v11853_v28  ;;  %v11967_v8 = vand.u32 4294901760, %v11966_v40  ;;  %v11978_v40 = vld [vmem:[#allocation13_spill] sm:$0xff] }
 0x314   : > { %v11979_v1 = vand.u32 4294901760, %v11978_v40  ;;  %v11991_v40 = vand.u32 4294901760, %v9260_v43  ;;  %v12000_v43 = vand.u32 4294901760, %v9065_v15 }
 0x315   : > { %v6862_v12 = vpack.c.bf16 %v11969_v29, %v11967_v8  ;;  %v11980_v29 = vld [vmem:[#allocation14_spill] sm:$0xff] }
 0x316   : > { %3703 = vmatmul.mubr.f32.gmra.mrb[20].mxu1 %v9735_v62  ;;  %v11981_v8 = vand.u32 4294901760, %v11980_v29 }
 0x317   : > { %3708 = vmatprep.mubr.f32.mxu1 %v11853_v28 }
 0x318   : > { %v6868_v4 = vpack.c.bf16 %v11981_v8, %v11979_v1  ;;  %v11995_v8 = vld [vmem:[#allocation54_spill] sm:$0xff] }
 0x31a   : > { %3711 = vmatmul.mubr.f32.gmra.mrb[22].mxu1 %v9749_v18 }
 0x31b   : > { %3716 = vmatprep.mubr.f32.mxu1 %v11853_v28 }
 0x31e   : > { %3719 = vmatmul.mubr.f32.gmra.mrb[24].mxu1 %v9763_v20 }
 0x31f   : > { %3724 = vmatprep.mubr.f32.mxu1 %v11853_v28 }
 0x322   : > { %3727 = vmatmul.mubr.f32.gmra.mrb[26].mxu1 %v9777_v48 }
 0x323   : > { %3732 = vmatprep.mubr.f32.mxu1 %v11853_v28 }
 0x326   : > { %3735 = vmatmul.mubr.f32.gmra.mrb[28].mxu1 %v9791_v41 }
 0x327   : > { %3740 = vmatprep.mubr.f32.mxu1 %v11853_v28 }
 0x32a   : > { %3743 = vmatmul.mubr.f32.gmra.mrb[30].mxu1 %v9805_v59 }
 0x32b   : > { %3845 = vmatprep.mubr.f32.mxu1 %v11853_v28 }
 0x32e   : > { %3849 = vmatmul.mubr.f32.vlgmr.msra.gmra.mrb[32].mxu1 %v11974_v52  ;;  %v11985_v52 = vld [vmem:[#allocation16_spill] sm:$0xff] }
 0x32f   : > { %6863 = vmatpush1.bf16.msra.mxu1 %v6862_v12  ;;  %3854 = vmatprep.mubr.f32.mxu1 %v11853_v28  ;;  %v11983_v12 = vld [vmem:[#allocation15_spill] sm:$0xff]  ;;  %v11986_v33 = vand.u32 4294901760, %v11985_v52  ;;  %v11999_v52 = vand.u32 4294901760, %v9263_v31  ;;  %v12008_v31 = vand.u32 4294901760, %v9096_v36 }
 0x330   : > { %6865 = vmatprep.subr.bf16.mxu1 %v6864_v3  ;;  %v11984_v10 = vand.u32 4294901760, %v11983_v12  ;;  %v6872_v3 = vpack.c.bf16 %v11990_v25, %v11988_v54  ;;  %v12004_v54 = vand.u32 4294901760, %v12003_v44  ;;  %v12006_v25 = vand.u32 4294901760, %v12005_v58 }
 0x331   : > { %v12032_v44 = vand.u32 4294901760, %v9530_v63 }
 0x332   : > { %3858 = vmatmul.mubr.f32.gmra.mrb[34].mxu1 %v11982_v27  ;;  %v6870_v16 = vpack.c.bf16 %v11986_v33, %v11984_v10  ;;  %v11996_v27 = vand.u32 4294901760, %v11995_v8  ;;  %v12001_v33 = vld [vmem:[#allocation42_spill] sm:$0xff] }
 0x333   : > { %3863 = vmatprep.mubr.f32.mxu1 %v11853_v28  ;;  %6867 = vmatpush1.bf16.msra.mxu1 %v6866_v5  ;;  %v11993_v5 = vld [vmem:[#allocation27_spill] sm:$0xff] }
 0x334   : > { %6869 = vmatprep.subr.bf16.mxu1 %v6868_v4  ;;  %v11994_v1 = vand.u32 4294901760, %v11993_v5  ;;  %v11997_v4 = vld [vmem:[#allocation55_spill] sm:$0xff]  ;;  %v12010_v5 = vand.u32 4294901760, %v9010_v19 }
 0x335   : > { %v11998_v12 = vand.u32 4294901760, %v11997_v4  ;;  %v12015_v4 = vand.u32 4294901760, %v9141_v2  ;;  %v12023_v2 = vand.u32 4294901760, %v9314_v60  ;;  %v12028_v60 = vand.u32 4294901760, %v9398_v23 }
 0x336   : > { %3867 = vmatmul.mubr.f32.gmra.mrb[36].mxu1 %v11991_v40  ;;  %v6874_v29 = vpack.c.bf16 %v11994_v1, %v11992_v35  ;;  %v12007_v40 = vand.u32 4294901760, %v9278_v22  ;;  %v12009_v35 = vand.u32 4294901760, %v9110_v7  ;;  %v12011_v1 = vld [vmem:[#allocation26_spill] sm:$0xff]  ;;  %v12014_v22 = vand.u32 4294901760, %v9129_v42 }
 0x337   : > { %3872 = vmatprep.mubr.f32.mxu1 %v11853_v28  ;;  %6871 = vmatpush1.bf16.msra.mxu1 %v6870_v16  ;;  %v6876_v10 = vpack.c.bf16 %v11998_v12, %v11996_v27  ;;  %v12002_v16 = vand.u32 4294901760, %v12001_v33  ;;  %v12013_v27 = vand.u32 4294901760, %v9286_v45  ;;  %v12016_v7 = vand.u32 4294901760, %v11899_v0  ;;  %v12017_v12 = vld [vmem:[#allocation36_spill] sm:$0xff]  ;;  %v12024_v0 = vld [vmem:[#allocation19_spill] sm:$0xff] }
 0x338   : > { %6873 = vmatprep.subr.bf16.mxu1 %v6872_v3  ;;  %v6880_v3 = vpack.c.bf16 %v12006_v25, %v12004_v54  ;;  %v6882_v15 = vpack.c.bf16 %v12009_v35, %v12008_v31  ;;  %v6886_v36 = vpack.c.bf16 %v12015_v4, %v12014_v22  ;;  %v12020_v45 = vand.u32 4294901760, %v11905_v55 }
 0x339   : > { %v6878_v17 = vpack.c.bf16 %v12002_v16, %v12000_v43  ;;  %v12021_v43 = vld [vmem:[#allocation50_spill] sm:$0xff]  ;;  %v12026_v16 = vand.u32 4294901760, %v9348_v53  ;;  %v12027_v55 = vand.u32 4294901760, %v9375_v13  ;;  %v12030_v53 = vand.u32 4294901760, %v9464_v38 }
 0x33a   : > { %3876 = vmatmul.mubr.f32.gmra.mrb[38].mxu1 %v11999_v52  ;;  %v12019_v52 = vand.u32 4294901760, %v9302_v11  ;;  %v12022_v33 = vand.u32 4294901760, %v12021_v43  ;;  %v12025_v11 = vand.u32 4294901760, %v9338_v46  ;;  %v12029_v46 = vand.u32 4294901760, %v9436_v21 }
 0x33b   : > { %3881 = vmatprep.mubr.f32.mxu1 %v11853_v28  ;;  %6875 = vmatpush1.bf16.msra.mxu1 %v6874_v29  ;;  %v12012_v29 = vand.u32 4294901760, %v12011_v1  ;;  %v12031_v13 = vand.u32 4294901760, %v9499_v14  ;;  %v12033_v54 = vand.u32 4294901760, %v9562_v50  ;;  %v12034_v25 = vand.u32 4294901760, %v9582_v6 }
 0x33c   : > { %6877 = vmatprep.subr.bf16.mxu1 %v6876_v10  ;;  %v12018_v10 = vand.u32 4294901760, %v12017_v12  ;;  %v6890_v42 = vpack.c.bf16 %v12022_v33, %v12020_v45  ;;  %v12036_v35 = vand.u32 4294901760, %v9620_v34  ;;  %v12040_v4 = vand.u32 4294901760, %v9688_v61 }
 0x33d   : > { %v6884_v8 = vpack.c.bf16 %v12012_v29, %v12010_v5  ;;  %v12037_v5 = vand.u32 4294901760, %v9640_v47  ;;  %v12038_v29 = vand.u32 4294901760, %v9654_v26  ;;  %v12044_v43 = vand.u32 4294901760, %v9749_v18 }
 0x33e   : > { %3885 = vmatmul.mubr.f32.gmra.mrb[40].mxu1 %v12007_v40  ;;  %v6888_v19 = vpack.c.bf16 %v12018_v10, %v12016_v7  ;;  %v12035_v40 = vand.u32 4294901760, %v9606_v37  ;;  %v12041_v7 = vand.u32 4294901760, %v9707_v51  ;;  %v12042_v10 = vand.u32 4294901760, %v9723_v56 }
 0x33f   : > { %3890 = vmatprep.mubr.f32.mxu1 %v11853_v28  ;;  %6879 = vmatpush1.bf16.msra.mxu1 %v6878_v17 }
 0x340   : > { %6881 = vmatprep.subr.bf16.mxu1 %v6880_v3 }
 0x342   : > { %3894 = vmatmul.mubr.f32.gmra.mrb[42].mxu1 %v12013_v27  ;;  %v12039_v27 = vand.u32 4294901760, %v9674_v57 }
 0x343   : > { %3899 = vmatprep.mubr.f32.mxu1 %v11853_v28  ;;  %6883 = vmatpush1.bf16.msra.mxu1 %v6882_v15 }
 0x344   : > { %6885 = vmatprep.subr.bf16.mxu1 %v6884_v8 }
 0x346   : > { %3903 = vmatmul.mubr.f32.gmra.mrb[44].mxu1 %v12019_v52  ;;  %v12043_v52 = vand.u32 4294901760, %v9735_v62 }
 0x347   : > { %3908 = vmatprep.mubr.f32.mxu1 %v11853_v28  ;;  %6887 = vmatpush1.bf16.msra.mxu1 %v6886_v36 }
 0x348   : > { %6889 = vmatprep.subr.bf16.mxu1 %v6888_v19 }
 0x34a   : > { %3912 = vmatmul.mubr.f32.gmra.mrb[46].mxu1 %v12023_v2 }
 0x34b   : > { %3917 = vmatprep.mubr.f32.mxu1 %v11853_v28  ;;  %6891 = vmatpush1.bf16.msra.mxu1 %v6890_v42  ;;  %v12045_v42 = vand.u32 4294901760, %v9763_v20 }
 0x34c   : > { %6893 = vmatprep.subr.bf16.mxu1 %v12024_v0  ;;  %v12046_v0 = vand.u32 4294901760, %v9777_v48 }
 0x34e   : > { %3921 = vmatmul.mubr.f32.gmra.mrb[48].mxu1 %v12025_v11 }
 0x34f   : > { %3926 = vmatprep.mubr.f32.mxu1 %v11853_v28 }
 0x352   : > { %3930 = vmatmul.mubr.f32.gmra.mrb[50].mxu1 %v12026_v16  ;;  %v12048_v16 = vand.u32 4294901760, %v9791_v41  ;;  %v12054_v41 = vld [vmem:[#allocation20_spill] sm:$0xff] }
 0x353   : > { %3935 = vmatprep.mubr.f32.mxu1 %v11853_v28 }
 0x356   : > { %3939 = vmatmul.mubr.f32.gmra.mrb[52].mxu1 %v12027_v55 }
 0x357   : > { %3944 = vmatprep.mubr.f32.mxu1 %v11853_v28 }
 0x35a   : > { %3948 = vmatmul.mubr.f32.gmra.mrb[54].mxu1 %v12028_v60  ;;  %v12051_v60 = vand.u32 4294901760, %v9805_v59  ;;  %v12057_v59 = vld [vmem:[#allocation6_spill] sm:$0xff] }
 0x35b   : > { %3953 = vmatprep.mubr.f32.mxu1 %v11853_v28 }
 0x35e   : > { %3957 = vmatmul.mubr.f32.gmra.mrb[56].mxu1 %v12029_v46 }
 0x35f   : > { %3962 = vmatprep.mubr.f32.mxu1 %v11853_v28 }
 0x362   : > { %3966 = vmatmul.mubr.f32.gmra.mrb[58].mxu1 %v12030_v53 }
 0x363   : > { %3971 = vmatprep.mubr.f32.mxu1 %v11853_v28 }
 0x366   : > { %3975 = vmatmul.mubr.f32.gmra.mrb[60].mxu1 %v12031_v13 }
 0x367   : > { %3980 = vmatprep.mubr.f32.mxu1 %v11853_v28 }
 0x369   : > { %v10020_v17 = vpop.f32.mrb[64].mxu0 }
 0x36a   : > { %v10022_v23 = vpop.f32.mrb[65].mxu0  ;;  %3984 = vmatmul.mubr.f32.gmra.mrb[62].mxu1 %v12032_v44 }
 0x36b   : > { %3989 = vmatprep.mubr.f32.mxu1 %v11853_v28 }
 0x36d   : > { %v10027_v21 = vpop.f32.mrb[66].mxu0 }
 0x36e   : > { %v10029_v38 = vpop.f32.mrb[67].mxu0  ;;  %3993 = vmatmul.mubr.f32.gmra.mrb[0].mxu1 %v12033_v54 }
 0x36f   : > { %3998 = vmatprep.mubr.f32.mxu1 %v11853_v28 }
 0x371   : > { %v10034_v14 = vpop.f32.mrb[68].mxu0 }
 0x372   : > { %v10036_v58 = vpop.f32.mrb[69].mxu0  ;;  %4002 = vmatmul.mubr.f32.gmra.mrb[2].mxu1 %v12034_v25 }
 0x373   : > { %4007 = vmatprep.mubr.f32.mxu1 %v11853_v28 }
 0x375   : > { %v10041_v63 = vpop.f32.mrb[70].mxu0 }
 0x376   : > { %v10043_v3 = vpop.f32.mrb[71].mxu0  ;;  %4011 = vmatmul.mubr.f32.gmra.mrb[4].mxu1 %v12035_v40 }
 0x377   : > { %4016 = vmatprep.mubr.f32.mxu1 %v11853_v28 }
 0x379   : > { %v10048_v50 = vpop.f32.mrb[72].mxu0 }
 0x37a   : > { %v10050_v31 = vpop.f32.mrb[73].mxu0  ;;  %4020 = vmatmul.mubr.f32.gmra.mrb[6].mxu1 %v12036_v35  ;;  %v12063_v35 = vld [vmem:[#allocation31_spill] sm:$0xff] }
 0x37b   : > { %4025 = vmatprep.mubr.f32.mxu1 %v11853_v28 }
 0x37d   : > { %v10055_v6 = vpop.f32.mrb[74].mxu0 }
 0x37e   : > { %v10057_v15 = vpop.f32.mrb[75].mxu0  ;;  %4029 = vmatmul.mubr.f32.gmra.mrb[8].mxu1 %v12037_v5  ;;  %v12065_v5 = vld [vmem:[#allocation28_spill] sm:$0xff] }
 0x37f   : > { %4034 = vmatprep.mubr.f32.mxu1 %v11853_v28 }
 0x381   : > { %v10062_v37 = vpop.f32.mrb[76].mxu0 }
 0x382   : > { %v10064_v1 = vpop.f32.mrb[77].mxu0  ;;  %4038 = vmatmul.mubr.f32.gmra.mrb[10].mxu1 %v12038_v29 }
 0x383   : > { %4043 = vmatprep.mubr.f32.mxu1 %v11853_v28 }
 0x385   : > { %v10069_v34 = vpop.f32.mrb[78].mxu0 }
 0x386   : > { %v10071_v8 = vpop.f32.mrb[79].mxu0  ;;  %4047 = vmatmul.mubr.f32.gmra.mrb[12].mxu1 %v12039_v27 }
 0x387   : > { %4052 = vmatprep.mubr.f32.mxu1 %v11853_v28 }
 0x389   : > { %v10076_v47 = vpop.f32.mrb[80].mxu0 }
 0x38a   : > { %v10078_v22 = vpop.f32.mrb[81].mxu0  ;;  %4056 = vmatmul.mubr.f32.gmra.mrb[14].mxu1 %v12040_v4  ;;  %v12068_v4 = vld [vmem:[#allocation35_spill] sm:$0xff] }
 0x38b   : > { %4061 = vmatprep.mubr.f32.mxu1 %v11853_v28 }
 0x38d   : > { %v10083_v26 = vpop.f32.mrb[82].mxu0 }
 0x38e   : > { %v10085_v36 = vpop.f32.mrb[83].mxu0  ;;  %4065 = vmatmul.mubr.f32.gmra.mrb[16].mxu1 %v12041_v7  ;;  %v12070_v7 = vld [vmem:[#allocation41_spill] sm:$0xff] }
 0x38f   : > { %4070 = vmatprep.mubr.f32.mxu1 %v11853_v28 }
 0x391   : > { %v10090_v57 = vpop.f32.mrb[84].mxu0 }
 0x392   : > { %v10092_v12 = vpop.f32.mrb[85].mxu0  ;;  %4074 = vmatmul.mubr.f32.gmra.mrb[18].mxu1 %v12042_v10 }
 0x393   : > { %4079 = vmatprep.mubr.f32.mxu1 %v11853_v28 }
 0x395   : > { %v10097_v61 = vpop.f32.mrb[86].mxu0 }
 0x396   : > { %v10099_v19 = vpop.f32.mrb[87].mxu0  ;;  %4083 = vmatmul.mubr.f32.gmra.mrb[20].mxu1 %v12043_v52 }
 0x397   : > { %4088 = vmatprep.mubr.f32.mxu1 %v11853_v28 }
 0x399   : > { %v10104_v51 = vpop.f32.mrb[88].mxu0 }
 0x39a   : > { %v10106_v45 = vpop.f32.mrb[89].mxu0  ;;  %4092 = vmatmul.mubr.f32.gmra.mrb[22].mxu1 %v12044_v43  ;;  %v12073_v43 = vld [vmem:[#allocation38_spill] sm:$0xff] }
 0x39b   : > { %4097 = vmatprep.mubr.f32.mxu1 %v11853_v28 }
 0x39d   : > { %v10111_v56 = vpop.f32.mrb[90].mxu0 }
 0x39e   : > { %v10113_v33 = vpop.f32.mrb[91].mxu0  ;;  %4101 = vmatmul.mubr.f32.gmra.mrb[24].mxu1 %v12045_v42  ;;  %v12074_v42 = vld [vmem:[#allocation45_spill] sm:$0xff] }
 0x39f   : > { %4106 = vmatprep.mubr.f32.mxu1 %v11853_v28 }
 0x3a1   : > { %v10118_v62 = vpop.f32.mrb[92].mxu0 }
 0x3a2   : > { %v10120_v2 = vpop.f32.mrb[93].mxu0  ;;  %4110 = vmatmul.mubr.f32.gmra.mrb[26].mxu1 %v12046_v0  ;;  %v12075_v0 = vld [vmem:[#allocation47_spill] sm:$0xff] }
 0x3a3   : > { %4115 = vmatprep.mubr.f32.mxu1 %v11853_v28 }
 0x3a5   : > { %v10125_v18 = vpop.f32.mrb[94].mxu0 }
 0x3a6   : > { %v10127_v11 = vpop.f32.mrb[95].mxu0  ;;  %4119 = vmatmul.mubr.f32.gmra.mrb[28].mxu1 %v12048_v16 }
 0x3a7   : > { %12047 = vst [vmem:[#allocation30_spill] sm:$0xff] %v10127_v11  ;;  %4124 = vmatprep.mubr.f32.mxu1 %v11853_v28  ;;  %v12122_v11 = vld [vmem:[#allocation73_spill] sm:$0xff] }
 0x3a9   : > { %v10132_v20 = vpop.f32.mrb[32].mxu0 }
 0x3aa   : > { %12049 = vst [vmem:[#allocation4_spill] sm:$0xff] %v10132_v20  ;;  %v10134_v55 = vpop.f32.mrb[33].mxu0  ;;  %4128 = vmatmul.mubr.f32.gmra.mrb[30].mxu1 %v12051_v60  ;;  %v12121_v20 = vld [vmem:[#allocation72_spill] sm:$0xff] }
 0x3ab   : > { %12050 = vst [vmem:[#allocation12_spill] sm:$0xff] %v10134_v55  ;;  %4294 = vmatprep.mubr.f32.mxu1 %v11853_v28  ;;  %v12120_v55 = vld [vmem:[#allocation71_spill] sm:$0xff] }
 0x3ad   : > { %v10139_v48 = vpop.f32.mrb[34].mxu0 }
 0x3ae   : > { %12052 = vst [vmem:[#allocation23_spill] sm:$0xff] %v10139_v48  ;;  %v10141_v46 = vpop.f32.mrb[35].mxu0  ;;  %4296 = vmatmul.mubr.f32.vlgmr.msra.gmra.mrb[32].mxu1 %v11956_v9  ;;  %v12119_v48 = vld [vmem:[#allocation70_spill] sm:$0xff] }
 0x3af   : > { %12053 = vst [vmem:[#allocation24_spill] sm:$0xff] %v10141_v46  ;;  %6895 = vmatpush1.bf16.msra.mxu1 %v11930_v30  ;;  %4301 = vmatprep.mubr.f32.mxu1 %v11853_v28  ;;  %v12060_v30 = vld [vmem:[#allocation25_spill] sm:$0xff] }
 0x3b0   : > { %6897 = vmatprep.subr.bf16.mxu1 %v12054_v41  ;;  %v12078_v41 = vld [vmem:[#allocation39_spill] sm:$0xff]  ;;  %v12118_v46 = vld [vmem:[#allocation69_spill] sm:$0xff] }
 0x3b1   : > { %v10147_v53 = vpop.f32.mrb[36].mxu0 }
 0x3b2   : > { %12055 = vst [vmem:[#allocation5_spill] sm:$0xff] %v10147_v53  ;;  %v10149_v13 = vpop.f32.mrb[37].mxu0  ;;  %4303 = vmatmul.mubr.f32.gmra.mrb[34].mxu1 %v11957_v24  ;;  %v12117_v53 = vld [vmem:[#allocation68_spill] sm:$0xff] }
 0x3b3   : > { %12056 = vst [vmem:[#allocation10_spill] sm:$0xff] %v10149_v13  ;;  %4308 = vmatprep.mubr.f32.mxu1 %v11853_v28  ;;  %6899 = vmatpush1.bf16.msra.mxu1 %v11935_v49  ;;  %v12064_v49 = vld [vmem:[#allocation9_spill] sm:$0xff]  ;;  %v12116_v13 = vld [vmem:[#allocation44_spill] sm:$0xff] }
 0x3b4   : > { %6901 = vmatprep.subr.bf16.mxu1 %v12057_v59  ;;  %v12079_v59 = vld [vmem:[#allocation58_spill] sm:$0xff] }
 0x3b5   : > { %v10155_v44 = vpop.f32.mrb[38].mxu0 }
 0x3b6   : > { %12058 = vst [vmem:[#allocation29_spill] sm:$0xff] %v10155_v44  ;;  %v10157_v54 = vpop.f32.mrb[39].mxu0  ;;  %4310 = vmatmul.mubr.f32.gmra.mrb[36].mxu1 %v11958_v39  ;;  %v12115_v44 = vld [vmem:[#allocation33_spill] sm:$0xff] }
 0x3b7   : > { %12059 = vst [vmem:[#allocation51_spill] sm:$0xff] %v10157_v54  ;;  %4315 = vmatprep.mubr.f32.mxu1 %v11853_v28  ;;  %6903 = vmatpush1.bf16.msra.mxu1 %v11938_v32  ;;  %v12069_v32 = vld [vmem:[#allocation32_spill] sm:$0xff]  ;;  %v12114_v54 = vld [vmem:[#allocation67_spill] sm:$0xff] }
 0x3b8   : > { %6905 = vmatprep.subr.bf16.mxu1 %v12060_v30  ;;  %v12080_v30 = vld [vmem:[#allocation7_spill] sm:$0xff] }
 0x3b9   : > { %v10163_v25 = vpop.f32.mrb[40].mxu0 }
 0x3ba   : > { %12061 = vst [vmem:[#allocation17_spill] sm:$0xff] %v10163_v25  ;;  %v10165_v40 = vpop.f32.mrb[41].mxu0  ;;  %4317 = vmatmul.mubr.f32.gmra.mrb[38].mxu1 %v12063_v35  ;;  %v12113_v25 = vld [vmem:[#allocation66_spill] sm:$0xff] }
 0x3bb   : > { %12062 = vst [vmem:[#allocation34_spill] sm:$0xff] %v10165_v40  ;;  %4322 = vmatprep.mubr.f32.mxu1 %v11853_v28  ;;  %6907 = vmatpush1.bf16.msra.mxu1 %v12064_v49  ;;  %v12112_v40 = vld [vmem:[#allocation65_spill] sm:$0xff] }
 0x3bc   : > { %6909 = vmatprep.subr.bf16.mxu1 %v12065_v5 }
 0x3bd   : > { %v10171_v29 = vpop.f32.mrb[42].mxu0 }
 0x3be   : > { %12066 = vst [vmem:[#allocation37_spill] sm:$0xff] %v10171_v29  ;;  %v10173_v27 = vpop.f32.mrb[43].mxu0  ;;  %4324 = vmatmul.mubr.f32.gmra.mrb[40].mxu1 %v12068_v4  ;;  %v12105_v29 = vld [vmem:[#allocation62_spill] sm:$0xff] }
 0x3bf   : > { %12067 = vst [vmem:[#allocation11_spill] sm:$0xff] %v10173_v27  ;;  %4329 = vmatprep.mubr.f32.mxu1 %v11853_v28  ;;  %6911 = vmatpush1.bf16.msra.mxu1 %v12069_v32  ;;  %v12083_v32 = vld [vmem:[#allocation40_spill] sm:$0xff]  ;;  %v12102_v27 = vld [vmem:[#allocation59_spill] sm:$0xff] }
 0x3c0   : > { %6913 = vmatprep.subr.bf16.mxu1 %v12070_v7  ;;  %v12084_v7 = vld [vmem:[#allocation8_spill] sm:$0xff] }
 0x3c1   : > { %v10179_v10 = vpop.f32.mrb[44].mxu0 }
 0x3c2   : > { %12071 = vst [vmem:[#allocation2_spill] sm:$0xff] %v10179_v10  ;;  %v10181_v52 = vpop.f32.mrb[45].mxu0  ;;  %4331 = vmatmul.mubr.f32.gmra.mrb[42].mxu1 %v12073_v43  ;;  %v12099_v10 = vld [vmem:[#allocation56_spill] sm:$0xff] }
 0x3c3   : > { %12072 = vst [vmem:[#allocation61_spill] sm:$0xff] %v10181_v52  ;;  %4336 = vmatprep.mubr.f32.mxu1 %v11853_v28  ;;  %6915 = vmatpush1.bf16.msra.mxu1 %v12074_v42  ;;  %v12096_v52 = vld [vmem:[#allocation52_spill] sm:$0xff] }
 0x3c4   : > { %6917 = vmatprep.subr.bf16.mxu1 %v12075_v0 }
 0x3c5   : > { %v10187_v16 = vpop.f32.mrb[46].mxu0 }
 0x3c6   : > { %12076 = vst [vmem:[#allocation13_spill] sm:$0xff] %v10187_v16  ;;  %v10189_v60 = vpop.f32.mrb[47].mxu0  ;;  %4338 = vmatmul.mubr.f32.gmra.mrb[44].mxu1 %v12078_v41 }
 0x3c7   : > { %12077 = vst [vmem:[#allocation14_spill] sm:$0xff] %v10189_v60  ;;  %4343 = vmatprep.mubr.f32.mxu1 %v11853_v28  ;;  %6919 = vmatpush1.bf16.msra.mxu1 %v12079_v59  ;;  %v12087_v60 = vld [vmem:[#allocation43_spill] sm:$0xff] }
 0x3c8   : > { %6921 = vmatprep.subr.bf16.mxu1 %v12080_v30 }
 0x3c9   : > { %v10195_v49 = vpop.f32.mrb[48].mxu0 }
 0x3ca   : > { %12081 = vst [vmem:[#allocation15_spill] sm:$0xff] %v10195_v49  ;;  %v10197_v5 = vpop.f32.mrb[49].mxu0  ;;  %4345 = vmatmul.mubr.f32.gmra.mrb[46].mxu1 %v12083_v32  ;;  %v12090_v49 = vld [vmem:[#allocation46_spill] sm:$0xff] }
 0x3cb   : > { %12082 = vst [vmem:[#allocation16_spill] sm:$0xff] %v10197_v5  ;;  %4350 = vmatprep.mubr.f32.mxu1 %v11853_v28  ;;  %6923 = vmatpush1.bf16.msra.mxu1 %v12084_v7  ;;  %v12093_v7 = vld [vmem:[#allocation48_spill] sm:$0xff] }
 0x3cd   : > { %v10202_v42 = vpop.f32.mrb[50].mxu0 }
 0x3ce   : > { %12085 = vst [vmem:[#allocation3_spill] sm:$0xff] %v10202_v42  ;;  %v10204_v0 = vpop.f32.mrb[51].mxu0  ;;  %4352 = vmatmul.mubr.f32.gmra.mrb[48].mxu1 %v12087_v60 }
 0x3cf   : > { %12086 = vst [vmem:[#allocation18_spill] sm:$0xff] %v10204_v0  ;;  %4357 = vmatprep.mubr.f32.mxu1 %v11853_v28 }
 0x3d1   : > { %v10208_v59 = vpop.f32.mrb[52].mxu0 }
 0x3d2   : > { %12088 = vst [vmem:[#allocation27_spill] sm:$0xff] %v10208_v59  ;;  %v10210_v30 = vpop.f32.mrb[53].mxu0  ;;  %4359 = vmatmul.mubr.f32.gmra.mrb[50].mxu1 %v12090_v49 }
 0x3d3   : > { %12089 = vst [vmem:[#allocation54_spill] sm:$0xff] %v10210_v30  ;;  %4364 = vmatprep.mubr.f32.mxu1 %v11853_v28 }
 0x3d5   : > { %v10214_v5 = vpop.f32.mrb[54].mxu0 }
 0x3d6   : > { %12091 = vst [vmem:[#allocation55_spill] sm:$0xff] %v10214_v5  ;;  %v10216_v16 = vpop.f32.mrb[55].mxu0  ;;  %4366 = vmatmul.mubr.f32.gmra.mrb[52].mxu1 %v12093_v7 }
 0x3d7   : > { %12092 = vst [vmem:[#allocation42_spill] sm:$0xff] %v10216_v16  ;;  %4371 = vmatprep.mubr.f32.mxu1 %v11853_v28 }
 0x3d9   : > { %v10220_v0 = vpop.f32.mrb[56].mxu0 }
 0x3da   : > { %12094 = vst [vmem:[#allocation21_spill] sm:$0xff] %v10220_v0  ;;  %v10222_v42 = vpop.f32.mrb[57].mxu0  ;;  %4373 = vmatmul.mubr.f32.gmra.mrb[54].mxu1 %v12096_v52 }
 0x3db   : > { %12095 = vst [vmem:[#allocation22_spill] sm:$0xff] %v10222_v42  ;;  %4378 = vmatprep.mubr.f32.mxu1 %v11853_v28 }
 0x3dd   : > { %v10226_v30 = vpop.f32.mrb[58].mxu0 }
 0x3de   : > { %12097 = vst [vmem:[#allocation26_spill] sm:$0xff] %v10226_v30  ;;  %v10228_v59 = vpop.f32.mrb[59].mxu0  ;;  %4380 = vmatmul.mubr.f32.gmra.mrb[56].mxu1 %v12099_v10  ;;  %v12107_v30 = vld [vmem:[#allocation49_spill] sm:$0xff] }
 0x3df   : > { %12098 = vst [vmem:[#allocation36_spill] sm:$0xff] %v10228_v59  ;;  %4385 = vmatprep.mubr.f32.mxu1 %v11853_v28  ;;  %v12106_v59 = vld [vmem:[#allocation64_spill] sm:$0xff] }
 0x3e1   : > { %v10232_v16 = vpop.f32.mrb[60].mxu0 }
 0x3e2   : > { %12100 = vst [vmem:[#allocation50_spill] sm:$0xff] %v10232_v16  ;;  %v10234_v5 = vpop.f32.mrb[61].mxu0  ;;  %4387 = vmatmul.mubr.f32.gmra.mrb[58].mxu1 %v12102_v27  ;;  %v12109_v16 = vld [vmem:[#allocation57_spill] sm:$0xff] }
 0x3e3   : > { %12101 = vst [vmem:[#allocation19_spill] sm:$0xff] %v10234_v5  ;;  %4392 = vmatprep.mubr.f32.mxu1 %v11853_v28  ;;  %v12108_v5 = vld [vmem:[#allocation53_spill] sm:$0xff] }
 0x3e5   : > { %v10238_v42 = vpop.f32.mrb[62].mxu0 }
 0x3e6   : > { %12103 = vst [vmem:[#allocation20_spill] sm:$0xff] %v10238_v42  ;;  %v10240_v0 = vpop.f32.mrb[63].mxu0  ;;  %4394 = vmatmul.mubr.f32.gmra.mrb[60].mxu1 %v12105_v29  ;;  %v12111_v42 = vld [vmem:[#allocation63_spill] sm:$0xff] }
 0x3e7   : > { %12104 = vst [vmem:[#allocation6_spill] sm:$0xff] %v10240_v0  ;;  %4399 = vmatprep.mubr.f32.mxu1 %v11853_v28  ;;  %v12110_v0 = vld [vmem:[#allocation60_spill] sm:$0xff] }
 0x3ea   : > { %4401 = vmatmul.mubr.f32.gmra.mrb[62].mxu1 %v12106_v59 }
 0x3eb   : > { %4406 = vmatprep.mubr.f32.mxu1 %v11853_v28 }
 0x3ee   : > { %4408 = vmatmul.mubr.f32.gmra.mrb[0].mxu1 %v12107_v30 }
 0x3ef   : > { %4413 = vmatprep.mubr.f32.mxu1 %v11853_v28 }
 0x3f2   : > { %4415 = vmatmul.mubr.f32.gmra.mrb[2].mxu1 %v12108_v5 }
 0x3f3   : > { %4420 = vmatprep.mubr.f32.mxu1 %v11853_v28 }
 0x3f6   : > { %4422 = vmatmul.mubr.f32.gmra.mrb[4].mxu1 %v12109_v16 }
 0x3f7   : > { %4427 = vmatprep.mubr.f32.mxu1 %v11853_v28 }
 0x3fa   : > { %4429 = vmatmul.mubr.f32.gmra.mrb[6].mxu1 %v12110_v0 }
 0x3fb   : > { %4434 = vmatprep.mubr.f32.mxu1 %v11853_v28 }
 0x3fe   : > { %4436 = vmatmul.mubr.f32.gmra.mrb[8].mxu1 %v12111_v42 }
 0x3ff   : > { %4441 = vmatprep.mubr.f32.mxu1 %v11853_v28 }
 0x402   : > { %4443 = vmatmul.mubr.f32.gmra.mrb[10].mxu1 %v12112_v40 }
 0x403   : > { %4448 = vmatprep.mubr.f32.mxu1 %v11853_v28 }
 0x406   : > { %4450 = vmatmul.mubr.f32.gmra.mrb[12].mxu1 %v12113_v25 }
 0x407   : > { %4455 = vmatprep.mubr.f32.mxu1 %v11853_v28 }
 0x40a   : > { %4457 = vmatmul.mubr.f32.gmra.mrb[14].mxu1 %v12114_v54 }
 0x40b   : > { %4462 = vmatprep.mubr.f32.mxu1 %v11853_v28 }
 0x40e   : > { %4464 = vmatmul.mubr.f32.gmra.mrb[16].mxu1 %v12115_v44 }
 0x40f   : > { %4469 = vmatprep.mubr.f32.mxu1 %v11853_v28 }
 0x412   : > { %4471 = vmatmul.mubr.f32.gmra.mrb[18].mxu1 %v12116_v13 }
 0x413   : > { %4476 = vmatprep.mubr.f32.mxu1 %v11853_v28 }
 0x416   : > { %4478 = vmatmul.mubr.f32.gmra.mrb[20].mxu1 %v12117_v53 }
 0x417   : > { %4483 = vmatprep.mubr.f32.mxu1 %v11853_v28 }
 0x41a   : > { %4485 = vmatmul.mubr.f32.gmra.mrb[22].mxu1 %v12118_v46 }
 0x41b   : > { %4490 = vmatprep.mubr.f32.mxu1 %v11853_v28 }
 0x41e   : > { %4492 = vmatmul.mubr.f32.gmra.mrb[24].mxu1 %v12119_v48 }
 0x41f   : > { %4497 = vmatprep.mubr.f32.mxu1 %v11853_v28 }
 0x422   : > { %4499 = vmatmul.mubr.f32.gmra.mrb[26].mxu1 %v12120_v55 }
 0x423   : > { %4504 = vmatprep.mubr.f32.mxu1 %v11853_v28 }
 0x426   : > { %4506 = vmatmul.mubr.f32.gmra.mrb[28].mxu1 %v12121_v20 }
 0x427   : > { %4511 = vmatprep.mubr.f32.mxu1 %v11853_v28 }
 0x42a   : > { %4513 = vmatmul.mubr.f32.gmra.mrb[30].mxu1 %v12122_v11 }
 0x42b   : > { %4615 = vmatprep.mubr.f32.mxu1 %v11853_v28 }
 0x42e   : > { %4617 = vmatmul.mubr.f32.vlgmr.msra.gmra.mrb[32].mxu1 %v11956_v9  ;;  %v2456_v9 = vlaneseq }
 0x42f   : > { %4622 = vmatprep.mubr.f32.mxu1 %v11853_v28 }
 0x432   : > { %4624 = vmatmul.mubr.f32.gmra.mrb[34].mxu1 %v11957_v24  ;;  %v10341_v24 = vshrl.u32 %v2456_v9, 7 }
 0x433   : > { %4629 = vmatprep.mubr.f32.mxu1 %v11853_v28 }
 0x436   : > { %4631 = vmatmul.mubr.f32.gmra.mrb[36].mxu1 %v11958_v39  ;;  %v2458_v39 = vsub.s32 0, %v10341_v24 }
 0x437   : > { %4636 = vmatprep.mubr.f32.mxu1 %v11853_v28 }
 0x43a   : > { %4638 = vmatmul.mubr.f32.gmra.mrb[38].mxu1 %v12063_v35  ;;  %v4912_v35 = vadd.s32 8, %v10341_v24 }
 0x43b   : > { %4643 = vmatprep.mubr.f32.mxu1 %v11853_v28 }
 0x43e   : > { %4645 = vmatmul.mubr.f32.gmra.mrb[40].mxu1 %v12068_v4  ;;  %v12159_v4 = vld [vmem:[#allocation24_spill] sm:$0xff] }
 0x43f   : > { %4650 = vmatprep.mubr.f32.mxu1 %v11853_v28 }
 0x442   : > { %4652 = vmatmul.mubr.f32.gmra.mrb[42].mxu1 %v12073_v43 }
 0x443   : > { %4657 = vmatprep.mubr.f32.mxu1 %v11853_v28 }
 0x446   : > { %4659 = vmatmul.mubr.f32.gmra.mrb[44].mxu1 %v12078_v41  ;;  %v12162_v41 = vld [vmem:[#allocation29_spill] sm:$0xff] }
 0x447   : > { %4664 = vmatprep.mubr.f32.mxu1 %v11853_v28 }
 0x44a   : > { %4666 = vmatmul.mubr.f32.gmra.mrb[46].mxu1 %v12083_v32 }
 0x44b   : > { %4671 = vmatprep.mubr.f32.mxu1 %v11853_v28 }
 0x44e   : > { %4673 = vmatmul.mubr.f32.gmra.mrb[48].mxu1 %v12087_v60 }
 0x44f   : > { %4678 = vmatprep.mubr.f32.mxu1 %v11853_v28 }
 0x452   : > { %4680 = vmatmul.mubr.f32.gmra.mrb[50].mxu1 %v12090_v49 }
 0x453   : > { %4685 = vmatprep.mubr.f32.mxu1 %v11853_v28 }
 0x456   : > { %4687 = vmatmul.mubr.f32.gmra.mrb[52].mxu1 %v12093_v7 }
 0x457   : > { %4692 = vmatprep.mubr.f32.mxu1 %v11853_v28 }
 0x45a   : > { %4694 = vmatmul.mubr.f32.gmra.mrb[54].mxu1 %v12096_v52  ;;  %v12160_v52 = vld [vmem:[#allocation5_spill] sm:$0xff] }
 0x45b   : > { %4699 = vmatprep.mubr.f32.mxu1 %v11853_v28 }
 0x45e   : > { %4701 = vmatmul.mubr.f32.gmra.mrb[56].mxu1 %v12099_v10 }
 0x45f   : > { %4706 = vmatprep.mubr.f32.mxu1 %v11853_v28 }
 0x462   : > { %4708 = vmatmul.mubr.f32.gmra.mrb[58].mxu1 %v12102_v27 }
 0x463   : > { %4713 = vmatprep.mubr.f32.mxu1 %v11853_v28 }
 0x466   : > { %4715 = vmatmul.mubr.f32.gmra.mrb[60].mxu1 %v12105_v29 }
 0x467   : > { %4720 = vmatprep.mubr.f32.mxu1 %v11853_v28 }
 0x46a   : > { %4722 = vmatmul.mubr.f32.gmra.mrb[62].mxu1 %v12106_v59 }
 0x46b   : > { %4727 = vmatprep.mubr.f32.mxu1 %v11853_v28 }
 0x46e   : > { %4729 = vmatmul.mubr.f32.gmra.mrb[0].mxu1 %v12107_v30  ;;  %v12165_v30 = vld [vmem:[#allocation34_spill] sm:$0xff] }
 0x46f   : > { %4734 = vmatprep.mubr.f32.mxu1 %v11853_v28 }
 0x472   : > { %4736 = vmatmul.mubr.f32.gmra.mrb[2].mxu1 %v12108_v5  ;;  %v12163_v5 = vld [vmem:[#allocation51_spill] sm:$0xff] }
 0x473   : > { %4741 = vmatprep.mubr.f32.mxu1 %v11853_v28 }
 0x476   : > { %4743 = vmatmul.mubr.f32.gmra.mrb[4].mxu1 %v12109_v16  ;;  %v12161_v16 = vld [vmem:[#allocation10_spill] sm:$0xff] }
 0x477   : > { %4748 = vmatprep.mubr.f32.mxu1 %v11853_v28 }
 0x47a   : > { %4750 = vmatmul.mubr.f32.gmra.mrb[6].mxu1 %v12110_v0  ;;  %v12164_v0 = vld [vmem:[#allocation17_spill] sm:$0xff] }
 0x47b   : > { %4755 = vmatprep.mubr.f32.mxu1 %v11853_v28 }
 0x47e   : > { %4757 = vmatmul.mubr.f32.gmra.mrb[8].mxu1 %v12111_v42  ;;  %v4980_v42 = vand.u32 15, %v10341_v24 }
 0x47f   : > { %4762 = vmatprep.mubr.f32.mxu1 %v11853_v28 }
 0x482   : > { %4764 = vmatmul.mubr.f32.gmra.mrb[10].mxu1 %v12112_v40 }
 0x483   : > { %4769 = vmatprep.mubr.f32.mxu1 %v11853_v28 }
 0x486   : > { %4771 = vmatmul.mubr.f32.gmra.mrb[12].mxu1 %v12113_v25 }
 0x487   : > { %4776 = vmatprep.mubr.f32.mxu1 %v11853_v28 }
 0x48a   : > { %4778 = vmatmul.mubr.f32.gmra.mrb[14].mxu1 %v12114_v54  ;;  %v5012_v54 = vshra.s32 %v10341_v24, 4 }
 0x48b   : > { %4783 = vmatprep.mubr.f32.mxu1 %v11853_v28 }
 0x48e   : > { %4785 = vmatmul.mubr.f32.gmra.mrb[16].mxu1 %v12115_v44 }
 0x48f   : > { %4790 = vmatprep.mubr.f32.mxu1 %v11853_v28 }
 0x492   : > { %4792 = vmatmul.mubr.f32.gmra.mrb[18].mxu1 %v12116_v13 }
 0x493   : > { %4797 = vmatprep.mubr.f32.mxu1 %v11853_v28 }
 0x496   : > { %4799 = vmatmul.mubr.f32.gmra.mrb[20].mxu1 %v12117_v53 }
 0x497   : > { %4804 = vmatprep.mubr.f32.mxu1 %v11853_v28 }
 0x49a   : > { %4806 = vmatmul.mubr.f32.gmra.mrb[22].mxu1 %v12118_v46  ;;  %v2462_v46 = vsub.s32 1, %v10341_v24 }
 0x49b   : > { %4811 = vmatprep.mubr.f32.mxu1 %v11853_v28 }
 0x49e   : > { %4813 = vmatmul.mubr.f32.gmra.mrb[24].mxu1 %v12119_v48  ;;  %v2454_v48 = vld [vmem:[%s11226_s4] sm:$0x3] }
 0x49f   : > { %4818 = vmatprep.mubr.f32.mxu1 %v11853_v28  ;;  %v10350_v53 = vrot.slane %v2454_v48, %v2462_v46  ;;  %v5140_v46 = vcvt.s32.f32 %v5012_v54  ;;  %v12171_v54 = vld [vmem:[#allocation14_spill] sm:$0xff] }
 0x4a1   : > { %v10366_v13 = vadd.f32 %v10029_v38, %v10350_v53  ;;  %v10496_v10 = vadd.f32 %v12159_v4, %v10350_v53  ;;  %v10504_v60 = vadd.f32 %v12161_v16, %v10350_v53  ;;  %v10512_v32 = vadd.f32 %v12163_v5, %v10350_v53 }
 0x4a2   : > { %4820 = vmatmul.mubr.f32.gmra.mrb[26].mxu1 %v12120_v55  ;;  %v10348_v55 = vrot.slane %v2454_v48, %v2458_v39  ;;  %v10521_v7 = vadd.f32 %v12165_v30, %v10350_v53  ;;  %v12167_v48 = vld [vmem:[#allocation11_spill] sm:$0xff]  ;;  %v5013_v4 = vshra.s32 %v4912_v35, 4 }
 0x4a3   : > { %4825 = vmatprep.mubr.f32.mxu1 %v11853_v28  ;;  %12126 = vst [vmem:[#allocation28_spill] sm:$0xff] %v10366_v13  ;;  %v12172_v30 = vld [vmem:[#allocation15_spill] sm:$0xff] }
 0x4a4   : > { %v10370_v44 = vadd.f32 %v10034_v14, %v10348_v55  ;;  %v10386_v38 = vadd.f32 %v10048_v50, %v10348_v55  ;;  %v10390_v14 = vadd.f32 %v10050_v31, %v10350_v53  ;;  %v10406_v50 = vadd.f32 %v10064_v1, %v10350_v53 }
 0x4a5   : > { %v10410_v31 = vadd.f32 %v10069_v34, %v10348_v55  ;;  %v10426_v1 = vadd.f32 %v10083_v26, %v10348_v55  ;;  %v10430_v34 = vadd.f32 %v10085_v36, %v10350_v53  ;;  %v10446_v26 = vadd.f32 %v10099_v19, %v10350_v53 }
 0x4a6   : > { %4827 = vmatmul.mubr.f32.gmra.mrb[28].mxu1 %v12121_v20  ;;  %v10362_v20 = vadd.f32 %v10027_v21, %v10348_v55  ;;  %12127 = vst [vmem:[#allocation35_spill] sm:$0xff] %v10370_v44  ;;  %v10382_v21 = vadd.f32 %v10043_v3, %v10350_v53  ;;  %12131 = vst [vmem:[#allocation45_spill] sm:$0xff] %v10386_v38  ;;  %v10402_v3 = vadd.f32 %v10062_v37, %v10348_v55 }
 0x4a7   : > { %4832 = vmatprep.mubr.f32.mxu1 %v11853_v28  ;;  %v10354_v28 = vadd.f32 %v10020_v17, %v10348_v55  ;;  %v10374_v17 = vadd.f32 %v10036_v58, %v10350_v53  ;;  %12132 = vst [vmem:[#allocation47_spill] sm:$0xff] %v10390_v14  ;;  %v10394_v58 = vadd.f32 %v10055_v6, %v10348_v55  ;;  %12136 = vst [vmem:[#allocation40_spill] sm:$0xff] %v10406_v50 }
 0x4a8   : > { %12125 = vst [vmem:[#allocation9_spill] sm:$0xff] %v10362_v20  ;;  %12130 = vst [vmem:[#allocation38_spill] sm:$0xff] %v10382_v21  ;;  %v10414_v6 = vadd.f32 %v10071_v8, %v10350_v53  ;;  %v10422_v37 = vadd.f32 %v10078_v22, %v10350_v53  ;;  %v10434_v8 = vadd.f32 %v10090_v57, %v10348_v55 }
 0x4a9   : > { %12123 = vst [vmem:[#allocation25_spill] sm:$0xff] %v10354_v28  ;;  %12128 = vst [vmem:[#allocation32_spill] sm:$0xff] %v10374_v17  ;;  %v10442_v22 = vadd.f32 %v10097_v61, %v10348_v55  ;;  %v10450_v36 = vadd.f32 %v10104_v51, %v10348_v55  ;;  %v10454_v57 = vadd.f32 %v10106_v45, %v10350_v53 }
 0x4aa   : > { %4834 = vmatmul.mubr.f32.gmra.mrb[30].mxu1 %v12122_v11  ;;  %v10358_v11 = vadd.f32 %v10022_v23, %v10350_v53  ;;  %v10378_v23 = vadd.f32 %v10041_v63, %v10348_v55  ;;  %12133 = vst [vmem:[#allocation39_spill] sm:$0xff] %v10394_v58  ;;  %v10398_v63 = vadd.f32 %v10057_v15, %v10350_v53  ;;  %12135 = vst [vmem:[#allocation7_spill] sm:$0xff] %v10402_v3 }
 0x4ab   : > { %12137 = vst [vmem:[#allocation8_spill] sm:$0xff] %v10410_v31  ;;  %12138 = vst [vmem:[#allocation43_spill] sm:$0xff] %v10414_v6  ;;  %v10418_v15 = vadd.f32 %v10076_v47, %v10348_v55  ;;  %v10438_v47 = vadd.f32 %v10092_v12, %v10350_v53  ;;  %v10458_v12 = vadd.f32 %v10111_v56, %v10348_v55  ;;  %v12154_v56 = vld [vmem:[#allocation30_spill] sm:$0xff]  ;;  %v12183_v31 = vld [vmem:[#allocation36_spill] sm:$0xff] }
 0x4ac   : > { %12124 = vst [vmem:[#allocation31_spill] sm:$0xff] %v10358_v11  ;;  %12129 = vst [vmem:[#allocation41_spill] sm:$0xff] %v10378_v23  ;;  %v10462_v61 = vadd.f32 %v10113_v33, %v10350_v53  ;;  %v10466_v19 = vadd.f32 %v10118_v62, %v10348_v55  ;;  %v10470_v51 = vadd.f32 %v10120_v2, %v10350_v53  ;;  %v12156_v33 = vld [vmem:[#allocation4_spill] sm:$0xff]  ;;  %v4978_v62 = vand.u32 127, %v2456_v9  ;;  %v12166_v9 = vld [vmem:[#allocation37_spill] sm:$0xff] }
 0x4ad   : > { %12134 = vst [vmem:[#allocation58_spill] sm:$0xff] %v10398_v63  ;;  %12139 = vst [vmem:[#allocation46_spill] sm:$0xff] %v10418_v15  ;;  %v10474_v45 = vadd.f32 %v10125_v18, %v10348_v55  ;;  %v10479_v25 = vadd.f32 %v12154_v56, %v10350_v53  ;;  %v10483_v40 = vadd.f32 %v12156_v33, %v10348_v55  ;;  %v12157_v2 = vld [vmem:[#allocation12_spill] sm:$0xff]  ;;  %v12158_v18 = vld [vmem:[#allocation23_spill] sm:$0xff] }
 0x4ae   : > { %12140 = vst [vmem:[#allocation48_spill] sm:$0xff] %v10422_v37  ;;  %12141 = vst [vmem:[#allocation52_spill] sm:$0xff] %v10426_v1  ;;  %v10488_v29 = vadd.f32 %v12157_v2, %v10350_v53  ;;  %v10492_v27 = vadd.f32 %v12158_v18, %v10348_v55  ;;  %v10500_v43 = vadd.f32 %v12160_v52, %v10348_v55  ;;  %v12168_v33 = vld [vmem:[#allocation2_spill] sm:$0xff]  ;;  %v10535_v18 = vand.u32 3, %v4978_v62  ;;  %v12169_v52 = vld [vmem:[#allocation61_spill] sm:$0xff] }
 0x4af   : > { %12142 = vst [vmem:[#allocation56_spill] sm:$0xff] %v10430_v34  ;;  %12143 = vst [vmem:[#allocation59_spill] sm:$0xff] %v10434_v8  ;;  %v10508_v49 = vadd.f32 %v12162_v41, %v10348_v55  ;;  %v10517_v59 = vadd.f32 %v12164_v0, %v10348_v55  ;;  %v10525_v39 = vadd.f32 %v12166_v9, %v10348_v55  ;;  %v12170_v41 = vld [vmem:[#allocation13_spill] sm:$0xff]  ;;  %v12173_v62 = vld [vmem:[#allocation16_spill] sm:$0xff] }
 0x4b0   : > { %12144 = vst [vmem:[#allocation62_spill] sm:$0xff] %v10438_v47  ;;  %12145 = vst [vmem:[#allocation64_spill] sm:$0xff] %v10442_v22  ;;  %v10529_v56 = vadd.f32 %v12167_v48, %v10350_v53  ;;  %v10533_v2 = vadd.f32 %v12168_v33, %v10348_v55  ;;  %v10539_v16 = vadd.f32 %v12169_v52, %v10350_v53  ;;  %v12174_v33 = vld [vmem:[#allocation3_spill] sm:$0xff]  ;;  %vm5237_vm0 = vcmp.eq.s32.totalorder %v10535_v18, 1  ;;  %v12182_v1 = vld [vmem:[#allocation26_spill] sm:$0xff] }
 0x4b1   : > { %12146 = vst [vmem:[#allocation49_spill] sm:$0xff] %v10446_v26  ;;  %12147 = vst [vmem:[#allocation53_spill] sm:$0xff] %v10450_v36  ;;  %v10543_v5 = vadd.f32 %v12170_v41, %v10348_v55  ;;  %v10547_v0 = vadd.f32 %v12171_v54, %v10350_v53  ;;  %v10551_v9 = vadd.f32 %v12172_v30, %v10348_v55  ;;  %v4981_v54 = vand.u32 15, %v4912_v35  ;;  %v12180_v26 = vld [vmem:[#allocation21_spill] sm:$0xff]  ;;  %v12191_v11 = vld [vmem:[#allocation6_spill] sm:$0xff] }
 0x4b2   : > { %12148 = vst [vmem:[#allocation57_spill] sm:$0xff] %v10454_v57  ;;  %12149 = vst [vmem:[#allocation60_spill] sm:$0xff] %v10458_v12  ;;  %v10555_v48 = vadd.f32 %v12173_v62, %v10350_v53  ;;  %v10559_v52 = vadd.f32 %v12174_v33, %v10348_v55  ;;  %v4914_v30 = vadd.s32 24, %v10341_v24  ;;  %v5141_v62 = vcvt.s32.f32 %v5013_v4  ;;  %v12177_v57 = vld [vmem:[#allocation54_spill] sm:$0xff] }
 0x4b3   : > { %12150 = vst [vmem:[#allocation63_spill] sm:$0xff] %v10462_v61  ;;  %12151 = vst [vmem:[#allocation65_spill] sm:$0xff] %v10466_v19  ;;  %v4913_v19 = vadd.s32 16, %v10341_v24  ;;  %v12176_v61 = vld [vmem:[#allocation27_spill] sm:$0xff]  ;;  %v4915_v33 = vadd.s32 32, %v10341_v24  ;;  %v10588_v22 = vadd.f32 %v12180_v26, %v10348_v55  ;;  %v12181_v4 = vld [vmem:[#allocation22_spill] sm:$0xff]  ;;  %v5045_v8 = vcvt.s32.f32 %v4981_v54 }
 0x4b4   : > { %12152 = vst [vmem:[#allocation66_spill] sm:$0xff] %v10470_v51  ;;  %12153 = vst [vmem:[#allocation67_spill] sm:$0xff] %v10474_v45  ;;  %v5044_v45 = vcvt.s32.f32 %v4980_v42  ;;  %v5172_v51 = vmul.f32 8.0, %v5140_v46  ;;  %v10569_v12 = vadd.f32 %v12176_v61, %v10348_v55  ;;  %v12178_v42 = vld [vmem:[#allocation55_spill] sm:$0xff]  ;;  %v12179_v46 = vld [vmem:[#allocation42_spill] sm:$0xff]  ;;  %v4916_v61 = vadd.s32 40, %v10341_v24 }
 0x4b5   : > { %12155 = vst [vmem:[#allocation33_spill] sm:$0xff] %v10479_v25  ;;  %v12175_v25 = vld [vmem:[#allocation18_spill] sm:$0xff]  ;;  %v10579_v35 = vadd.f32 %v12178_v42, %v10348_v55  ;;  %v10583_v36 = vadd.f32 %v12179_v46, %v10350_v53  ;;  %v10592_v47 = vadd.f32 %v12181_v4, %v10350_v53  ;;  %vm5236_vm1 = vcmp.eq.s32.totalorder %v10535_v18, 0  ;;  %v12187_v54 = vld [vmem:[#allocation19_spill] sm:$0xff] }
 0x4b6   : > { %v10563_v41 = vadd.f32 %v12175_v25, %v10350_v53  ;;  %v10575_v25 = vadd.f32 %v12177_v57, %v10350_v53  ;;  %v5076_v57 = vmul.f32 8.0, %v5044_v45  ;;  %v5238_v42 = vsel %vm5237_vm0, %v5172_v51, 0.0  ;;  %v12185_v45 = vld [vmem:[#allocation50_spill] sm:$0xff] }
 0x4b7   : > { %v5014_v34 = vshra.s32 %v4913_v19, 4  ;;  %v5015_v46 = vshra.s32 %v4914_v30, 4  ;;  %v10599_v37 = vadd.f32 %v12182_v1, %v10348_v55  ;;  %v5173_v15 = vmul.f32 8.0, %v5141_v62 }
 0x4b8   : > { %v4982_v26 = vand.u32 15, %v4913_v19  ;;  %v5016_v6 = vshra.s32 %v4915_v33, 4  ;;  %v10603_v4 = vadd.f32 %v12183_v31, %v10350_v53  ;;  %v10607_v50 = vadd.f32 %v12185_v45, %v10348_v55  ;;  %v10621_v31 = vld [vmem:[%s11227_s5] ss:$0 sm:$0xff] }
 0x4b9   : > { %v5017_v3 = vshra.s32 %v4916_v61, 4  ;;  %v4917_v51 = vadd.s32 48, %v10341_v24  ;;  %v10612_v63 = vadd.f32 %v12187_v54, %v10350_v53  ;;  %v5270_v1 = vsel %vm5236_vm1, %v5076_v57, %v5238_v42  ;;  %v12189_v57 = vld [vmem:[#allocation20_spill] sm:$0xff] }
 0x4ba   : > { %12184 = vst [vmem:[#allocation44_spill] sm:$0xff] %v10603_v4  ;;  %12186 = vst [vmem:[#allocation68_spill] sm:$0xff] %v10607_v50  ;;  %v4918_v19 = vadd.s32 56, %v10341_v24  ;;  %v4919_v62 = vadd.s32 64, %v10341_v24  ;;  %v5077_v45 = vmul.f32 8.0, %v5045_v8  ;;  %v5142_v58 = vcvt.s32.f32 %v5014_v34 }
 0x4bb   : > { %12188 = vst [vmem:[#allocation69_spill] sm:$0xff] %v10612_v63  ;;  %v4983_v14 = vand.u32 15, %v4914_v30  ;;  %v5143_v38 = vcvt.s32.f32 %v5015_v46  ;;  %v5239_v54 = vsel %vm5237_vm0, %v5173_v15, 0.0  ;;  %v5046_v21 = vcvt.s32.f32 %v4982_v26 }
 0x4bc   : > { %v4984_v23 = vand.u32 15, %v4915_v33  ;;  %v5144_v17 = vcvt.s32.f32 %v5016_v6  ;;  %v10627_v42 = vadd.f32 %v12189_v57, %v10348_v55  ;;  %v4985_v44 = vand.u32 15, %v4916_v61 }
 0x4bd   : > { %v5145_v13 = vcvt.s32.f32 %v5017_v3  ;;  %v5018_v20 = vshra.s32 %v4917_v51, 4  ;;  %v10631_v28 = vadd.f32 %v12191_v11, %v10350_v53  ;;  %v10634_v34 = vadd.f32 %v10621_v31, %v5270_v1 }
 0x4be   : > { %12190 = vst [vmem:[#allocation70_spill] sm:$0xff] %v10627_v42  ;;  %v5019_v8 = vshra.s32 %v4918_v19, 4  ;;  %v5020_v30 = vshra.s32 %v4919_v62, 4  ;;  %v5271_v15 = vsel %vm5236_vm1, %v5077_v45, %v5239_v54  ;;  %v5174_v6 = vmul.f32 8.0, %v5142_v58 }
 0x4bf   : > { %12192 = vst [vmem:[#allocation71_spill] sm:$0xff] %v10631_v28  ;;  %v5047_v33 = vcvt.s32.f32 %v4983_v14  ;;  %v5175_v46 = vmul.f32 8.0, %v5143_v38  ;;  %v5078_v55 = vmul.f32 8.0, %v5046_v21  ;;  %v5048_v26 = vcvt.s32.f32 %v4984_v23 }
 0x4c0   : > { %v5176_v61 = vmul.f32 8.0, %v5144_v17  ;;  %v4986_v3 = vand.u32 15, %v4917_v51  ;;  %v5049_v57 = vcvt.s32.f32 %v4985_v44  ;;  %v5177_v42 = vmul.f32 8.0, %v5145_v13 }
 0x4c1   : > { %v5146_v63 = vcvt.s32.f32 %v5018_v20  ;;  %v4987_v53 = vand.u32 15, %v4918_v19  ;;  %v5147_v11 = vcvt.s32.f32 %v5019_v8  ;;  %v4988_v28 = vand.u32 15, %v4919_v62 }
 0x4c2   : > { %v5148_v1 = vcvt.s32.f32 %v5020_v30  ;;  %v4920_v50 = vadd.s32 72, %v10341_v24  ;;  %v5240_v4 = vsel %vm5237_vm0, %v5174_v6, 0.0  ;;  %v5079_v45 = vmul.f32 8.0, %v5047_v33 }
 0x4c3   : > { %v5241_v38 = vsel %vm5237_vm0, %v5175_v46, 0.0  ;;  %v4921_v23 = vadd.s32 80, %v10341_v24  ;;  %v5080_v17 = vmul.f32 8.0, %v5048_v26  ;;  %v5242_v13 = vsel %vm5237_vm0, %v5176_v61, 0.0 }
 0x4c4   : > { %v5050_v20 = vcvt.s32.f32 %v4986_v3  ;;  %v4922_v44 = vadd.s32 88, %v10341_v24  ;;  %v5081_v21 = vmul.f32 8.0, %v5049_v57  ;;  %v5243_v14 = vsel %vm5237_vm0, %v5177_v42, 0.0 }
 0x4c5   : > { %v5178_v58 = vmul.f32 8.0, %v5146_v63  ;;  %v5051_v51 = vcvt.s32.f32 %v4987_v53  ;;  %v5179_v19 = vmul.f32 8.0, %v5147_v11  ;;  %v5052_v62 = vcvt.s32.f32 %v4988_v28 }
 0x4c6   : > { %v5180_v54 = vmul.f32 8.0, %v5148_v1  ;;  %v5021_v8 = vshra.s32 %v4920_v50, 4  ;;  %v10650_v30 = vadd.f32 %v10621_v31, %v5271_v15  ;;  %v5272_v6 = vsel %vm5236_vm1, %v5078_v55, %v5240_v4 }
 0x4c7   : > { %v5022_v33 = vshra.s32 %v4921_v23, 4  ;;  %v4923_v46 = vadd.s32 96, %v10341_v24  ;;  %v5273_v26 = vsel %vm5236_vm1, %v5079_v45, %v5241_v38  ;;  %v5274_v63 = vsel %vm5236_vm1, %v5080_v17, %v5242_v13 }
 0x4c8   : > { %v5082_v42 = vmul.f32 8.0, %v5050_v20  ;;  %v5023_v28 = vshra.s32 %v4922_v44, 4  ;;  %v5275_v61 = vsel %vm5236_vm1, %v5081_v21, %v5243_v14  ;;  %v5244_v15 = vsel %vm5237_vm0, %v5178_v58, 0.0 }
 0x4c9   : > { %v5083_v3 = vmul.f32 8.0, %v5051_v51  ;;  %v4989_v57 = vand.u32 15, %v4920_v50  ;;  %v5245_v4 = vsel %vm5237_vm0, %v5179_v19, 0.0  ;;  %v5084_v55 = vmul.f32 8.0, %v5052_v62 }
 0x4ca   : > { %v5246_v53 = vsel %vm5237_vm0, %v5180_v54, 0.0  ;;  %v5149_v11 = vcvt.s32.f32 %v5021_v8  ;;  %v4990_v1 = vand.u32 15, %v4921_v23  ;;  %v5150_v45 = vcvt.s32.f32 %v5022_v33 }
 0x4cb   : > { %v4991_v38 = vand.u32 15, %v4922_v44  ;;  %v5024_v17 = vshra.s32 %v4923_v46, 4  ;;  %v10669_v13 = vadd.f32 %v10621_v31, %v5272_v6  ;;  %v10672_v20 = vadd.f32 %v10621_v31, %v5273_v26 }
 0x4cc   : > { %v5276_v50 = vsel %vm5236_vm1, %v5082_v42, %v5244_v15  ;;  %v5151_v21 = vcvt.s32.f32 %v5023_v28  ;;  %v5277_v14 = vsel %vm5236_vm1, %v5083_v3, %v5245_v4  ;;  %v5053_v58 = vcvt.s32.f32 %v4989_v57 }
 0x4cd   : > { %v4992_v51 = vand.u32 15, %v4923_v46  ;;  %v4924_v23 = vadd.s32 104, %v10341_v24  ;;  %v10680_v44 = vadd.f32 %v10621_v31, %v5274_v63  ;;  %v10683_v19 = vadd.f32 %v10621_v31, %v5275_v61 }
 0x4ce   : > { %v5278_v62 = vsel %vm5236_vm1, %v5084_v55, %v5246_v53  ;;  %v5181_v54 = vmul.f32 8.0, %v5149_v11  ;;  %v5054_v6 = vcvt.s32.f32 %v4990_v1  ;;  %v5182_v33 = vmul.f32 8.0, %v5150_v45 }
 0x4cf   : > { %v5055_v46 = vcvt.s32.f32 %v4991_v38  ;;  %v5152_v26 = vcvt.s32.f32 %v5024_v17  ;;  %v10694_v28 = vadd.f32 %v10621_v31, %v5276_v50  ;;  %v10697_v61 = vadd.f32 %v10621_v31, %v5277_v14 }
 0x4d0   : > { %v5183_v15 = vmul.f32 8.0, %v5151_v21  ;;  %v5085_v57 = vmul.f32 8.0, %v5053_v58  ;;  %v5056_v4 = vcvt.s32.f32 %v4992_v51  ;;  %v5025_v55 = vshra.s32 %v4924_v23, 4 }
 0x4d1   : > { %v10702_v11 = vadd.f32 %v10621_v31, %v5278_v62  ;;  %v4925_v1 = vadd.s32 112, %v10341_v24  ;;  %v5086_v38 = vmul.f32 8.0, %v5054_v6  ;;  %v5248_v17 = vsel %vm5237_vm0, %v5182_v33, 0.0 }
 0x4d2   : > { %v5184_v50 = vmul.f32 8.0, %v5152_v26  ;;  %v5249_v58 = vsel %vm5237_vm0, %v5183_v15, 0.0  ;;  %v4993_v51 = vand.u32 15, %v4924_v23  ;;  %v5153_v6 = vcvt.s32.f32 %v5025_v55 }
 0x4d3   : > { %vm5342_vm2 = vcmp.lt.s32.totalorder %v10535_v18, 2  ;;  %v5280_v15 = vsel %vm5236_vm1, %v5086_v38, %v5248_v17 }
 0x4d4   : > { %v5250_v23 = vsel %vm5237_vm0, %v5184_v50, 0.0  ;;  %v5185_v17 = vmul.f32 8.0, %v5153_v6 }
 0x501   : > { %v4618_v8 = vpop.f32.mrb[32].mxu1 }
 0x502   : > { %v6973_v63 = vadd.f32 %v10483_v40, %v4618_v8  ;;  %v4620_v42 = vpop.f32.mrb[33].mxu1  ;;  %v5247_v40 = vsel %vm5237_vm0, %v5181_v54, 0.0  ;;  %v5088_v8 = vmul.f32 8.0, %v5056_v4 }
 0x503   : > { %v6975_v3 = vadd.f32 %v10488_v29, %v4620_v42  ;;  %v5087_v29 = vmul.f32 8.0, %v5055_v46  ;;  %v5279_v54 = vsel %vm5236_vm1, %v5085_v57, %v5247_v40  ;;  %v5026_v42 = vshra.s32 %v4925_v1, 4  ;;  %v10729_v57 = vld [vmem:[%s11228_s6] ss:$0 sm:$0xff] }
 0x504   : > { %v5413_v53 = vmul.f32 1.442695, %v6973_v63  ;;  %5573 = vst [vmem:[%s10690_s10 + $0x8] sm:$0xff] %v6973_v63  ;;  %v4840_v33 = vmul.f32 %v6973_v63, %v6973_v63  ;;  %v5057_v40 = vcvt.s32.f32 %v4993_v51  ;;  %v10734_v38 = vadd.f32 %v10621_v31, %v5279_v54 }
 0x505   : > { %5574 = vst [vmem:[%s10690_s10 + $0x10] sm:$0xff] %v6975_v3  ;;  %v4625_v45 = vpop.f32.mrb[34].mxu1  ;;  %v4926_v3 = vadd.s32 120, %v10341_v24  ;;  %v10742_v51 = vadd.f32 %v10621_v31, %v5280_v15 }
 0x506   : > { %7542 = vpow2.f32 %v5413_v53  ;;  %v6977_v21 = vadd.f32 %v10492_v27, %v4625_v45  ;;  %v4627_v14 = vpop.f32.mrb[35].mxu1 }
 0x507   : > { %v6979_v62 = vadd.f32 %v10496_v10, %v4627_v14  ;;  %v5281_v10 = vsel %vm5236_vm1, %v5087_v29, %v5249_v58  ;;  %v4994_v29 = vand.u32 15, %v4925_v1  ;;  %v5282_v58 = vsel %vm5236_vm1, %v5088_v8, %v5250_v23 }
 0x508   : > { %v4841_v46 = vmul.f32 %v6977_v21, %v6977_v21  ;;  %v5415_v26 = vmul.f32 1.442695, %v6977_v21  ;;  %5575 = vst [vmem:[%s10690_s10 + $0x20] sm:$0xff] %v6977_v21  ;;  %v5027_v54 = vshra.s32 %v4926_v3, 4  ;;  %v5089_v8 = vmul.f32 8.0, %v5057_v40 }
 0x509   : > { %5576 = vst [vmem:[%s10690_s10 + $0x28] sm:$0xff] %v6979_v62  ;;  %v4632_v27 = vpop.f32.mrb[36].mxu1  ;;  %v5154_v62 = vcvt.s32.f32 %v5026_v42  ;;  %v5251_v42 = vsel %vm5237_vm0, %v5185_v17, 0.0 }
 0x50a   : > { %v4872_v4 = vadd.f32 %v4841_v46, %v4840_v33  ;;  %7544 = vpow2.f32 %v5415_v26  ;;  %v6981_v55 = vadd.f32 %v10500_v43, %v4632_v27  ;;  %v4634_v53 = vpop.f32.mrb[37].mxu1  ;;  %v5349_v33 = vmul.f32 %v6973_v63, %v10729_v57 }
 0x50b   : > { %v6983_v45 = vadd.f32 %v10504_v60, %v4634_v53  ;;  %v10745_v60 = vadd.f32 %v10621_v31, %v5281_v10  ;;  %v10750_v63 = vadd.f32 %v10621_v31, %v5282_v58  ;;  %v5058_v27 = vcvt.s32.f32 %v4994_v29 }
 0x50c   : > { %v4842_v50 = vmul.f32 %v6981_v55, %v6981_v55  ;;  %v5417_v14 = vmul.f32 1.442695, %v6981_v55  ;;  %5577 = vst [vmem:[%s10690_s10 + $0x38] sm:$0xff] %v6981_v55  ;;  %v4995_v53 = vand.u32 15, %v4926_v3  ;;  %v5283_v3 = vsel %vm5236_vm1, %v5089_v8, %v5251_v42 }
 0x50d   : > { %5578 = vst [vmem:[%s10690_s10 + $0x40] sm:$0xff] %v6983_v45  ;;  %v4639_v43 = vpop.f32.mrb[38].mxu1 }
 0x50e   : > { %v4873_v1 = vadd.f32 %v4872_v4, %v4842_v50  ;;  %7546 = vpow2.f32 %v5417_v14  ;;  %v6985_v6 = vadd.f32 %v10508_v49, %v4639_v43  ;;  %v4641_v46 = vpop.f32.mrb[39].mxu1  ;;  %v5186_v4 = vmul.f32 8.0, %v5154_v62 }
 0x50f   : > { %v6987_v26 = vadd.f32 %v10512_v32, %v4641_v46  ;;  %v5381_v49 = vadd.f32 %v5349_v33, %v10634_v34  ;;  %v5350_v32 = vmul.f32 %v6977_v21, %v10729_v57  ;;  %v5155_v50 = vcvt.s32.f32 %v5027_v54 }
 0x510   : > { %v7543_v15 = vpop.eup %7542  ;;  %v4843_v10 = vmul.f32 %v6985_v6, %v6985_v6  ;;  %v5419_v23 = vmul.f32 1.442695, %v6985_v6  ;;  %5579 = vst [vmem:[%s10690_s10 + $0x50] sm:$0xff] %v6985_v6  ;;  %v5090_v62 = vmul.f32 8.0, %v5058_v27  ;;  %v4927_v21 = vadd.s32 128, %v10341_v24 }
 0x511   : > { %v5477_v40 = vmul.f32 %v7543_v15, %v10729_v57  ;;  %5580 = vst [vmem:[%s10690_s10 + $0x58] sm:$0xff] %v6987_v26  ;;  %v4646_v45 = vpop.f32.mrb[40].mxu1  ;;  %v5382_v46 = vadd.f32 %v5350_v32, %v10650_v30  ;;  %v5351_v26 = vmul.f32 %v6981_v55, %v10729_v57  ;;  %v5187_v42 = vmul.f32 8.0, %v5155_v50 }
 0x512   : > { %v4874_v14 = vadd.f32 %v4873_v1, %v4843_v10  ;;  %7548 = vpow2.f32 %v5419_v23  ;;  %v6989_v17 = vadd.f32 %v10517_v59, %v4646_v45  ;;  %v4648_v29 = vpop.f32.mrb[41].mxu1  ;;  %v5252_v59 = vsel %vm5237_vm0, %v5186_v4, 0.0 }
 0x513   : > { %v5509_v34 = vsel %vm5342_vm2, %v5381_v49, %v5477_v40  ;;  %v6991_v58 = vadd.f32 %v10521_v7, %v4648_v29  ;;  %v5059_v1 = vcvt.s32.f32 %v4995_v53  ;;  %v10776_v23 = vadd.f32 %v10621_v31, %v5283_v3 }
 0x514   : > { %v7545_v33 = vpop.eup %7544  ;;  %5541 = vst [vmem:[%s10690_s10] sm:$0xff] %v5509_v34  ;;  %v4844_v43 = vmul.f32 %v6989_v17, %v6989_v17  ;;  %v5421_v54 = vmul.f32 1.442695, %v6989_v17  ;;  %5581 = vst [vmem:[%s10690_s10 + $0x68] sm:$0xff] %v6989_v17  ;;  %v5284_v55 = vsel %vm5236_vm1, %v5090_v62, %v5252_v59  ;;  %v5028_v53 = vshra.s32 %v4927_v21, 4 }
 0x515   : > { %v5478_v8 = vmul.f32 %v7545_v33, %v10729_v57  ;;  %5582 = vst [vmem:[%s10690_s10 + $0x70] sm:$0xff] %v6991_v58  ;;  %v4653_v7 = vpop.f32.mrb[42].mxu1  ;;  %v4928_v45 = vadd.s32 136, %v10341_v24  ;;  %v5383_v50 = vadd.f32 %v5351_v26, %v10669_v13  ;;  %v5352_v29 = vmul.f32 %v6985_v6, %v10729_v57 }
 0x516   : > { %v4875_v27 = vadd.f32 %v4874_v14, %v4844_v43  ;;  %7550 = vpow2.f32 %v5421_v54  ;;  %v6993_v15 = vadd.f32 %v10525_v39, %v4653_v7  ;;  %v4655_v10 = vpop.f32.mrb[43].mxu1  ;;  %v5091_v39 = vmul.f32 8.0, %v5059_v1 }
 0x517   : > { %v5510_v30 = vsel %vm5342_vm2, %v5382_v46, %v5478_v8  ;;  %v6995_v4 = vadd.f32 %v10529_v56, %v4655_v10  ;;  %v5253_v3 = vsel %vm5237_vm0, %v5187_v42, 0.0  ;;  %v4996_v33 = vand.u32 15, %v4927_v21 }
 0x518   : > { %v7547_v49 = vpop.eup %7546  ;;  %5542 = vst [vmem:[%s10690_s10 + $0x18] sm:$0xff] %v5510_v30  ;;  %v4845_v40 = vmul.f32 %v6993_v15, %v6993_v15  ;;  %v5423_v32 = vmul.f32 1.442695, %v6993_v15  ;;  %5583 = vst [vmem:[%s10690_s10 + $0x80] sm:$0xff] %v6993_v15  ;;  %v10797_v6 = vadd.f32 %v10621_v31, %v5284_v55  ;;  %v5156_v54 = vcvt.s32.f32 %v5028_v53 }
 0x519   : > { %v5479_v14 = vmul.f32 %v7547_v49, %v10729_v57  ;;  %5584 = vst [vmem:[%s10690_s10 + $0x88] sm:$0xff] %v6995_v4  ;;  %v4660_v56 = vpop.f32.mrb[44].mxu1  ;;  %v5029_v8 = vshra.s32 %v4928_v45, 4  ;;  %v5384_v21 = vadd.f32 %v5352_v29, %v10672_v20  ;;  %v4929_v42 = vadd.s32 144, %v10341_v24 }
 0x51a   : > { %v4876_v34 = vadd.f32 %v4875_v27, %v4845_v40  ;;  %7552 = vpow2.f32 %v5423_v32  ;;  %v6997_v58 = vadd.f32 %v10533_v2, %v4660_v56  ;;  %v4662_v62 = vpop.f32.mrb[45].mxu1  ;;  %v5285_v2 = vsel %vm5236_vm1, %v5091_v39, %v5253_v3 }
 0x51b   : > { %v5511_v13 = vsel %vm5342_vm2, %v5383_v50, %v5479_v14  ;;  %v6999_v43 = vadd.f32 %v10539_v16, %v4662_v62  ;;  %v5353_v16 = vmul.f32 %v6989_v17, %v10729_v57  ;;  %v5060_v4 = vcvt.s32.f32 %v4996_v33 }
 0x51c   : > { %v7549_v59 = vpop.eup %7548  ;;  %5543 = vst [vmem:[%s10690_s10 + $0x30] sm:$0xff] %v5511_v13  ;;  %v4846_v1 = vmul.f32 %v6997_v58, %v6997_v58  ;;  %v5425_v46 = vmul.f32 1.442695, %v6997_v58  ;;  %5585 = vst [vmem:[%s10690_s10 + $0x98] sm:$0xff] %v6997_v58  ;;  %v5188_v53 = vmul.f32 8.0, %v5156_v54  ;;  %v4997_v49 = vand.u32 15, %v4928_v45 }
 0x51d   : > { %v5480_v26 = vmul.f32 %v7549_v59, %v10729_v57  ;;  %5586 = vst [vmem:[%s10690_s10 + $0xa0] sm:$0xff] %v6999_v43  ;;  %v4667_v7 = vpop.f32.mrb[46].mxu1  ;;  %v10815_v39 = vadd.f32 %v10621_v31, %v5285_v2  ;;  %v5157_v50 = vcvt.s32.f32 %v5029_v8  ;;  %v5354_v29 = vmul.f32 %v6993_v15, %v10729_v57 }
 0x51e   : > { %v4877_v27 = vadd.f32 %v4876_v34, %v4846_v1  ;;  %7554 = vpow2.f32 %v5425_v46  ;;  %v7001_v10 = vadd.f32 %v10543_v5, %v4667_v7  ;;  %v4669_v30 = vpop.f32.mrb[47].mxu1  ;;  %v5385_v5 = vadd.f32 %v5353_v16, %v10680_v44 }
 0x51f   : > { %v5512_v20 = vsel %vm5342_vm2, %v5384_v21, %v5480_v26  ;;  %v7003_v55 = vadd.f32 %v10547_v0, %v4669_v30  ;;  %v5030_v45 = vshra.s32 %v4929_v42, 4  ;;  %v5092_v62 = vmul.f32 8.0, %v5060_v4 }
 0x520   : > { %v7551_v17 = vpop.eup %7550  ;;  %5544 = vst [vmem:[%s10690_s10 + $0x48] sm:$0xff] %v5512_v20  ;;  %v4847_v40 = vmul.f32 %v7001_v10, %v7001_v10  ;;  %v5427_v32 = vmul.f32 1.442695, %v7001_v10  ;;  %5587 = vst [vmem:[%s10690_s10 + $0xb0] sm:$0xff] %v7001_v10  ;;  %v5254_v13 = vsel %vm5237_vm0, %v5188_v53, 0.0  ;;  %v5061_v15 = vcvt.s32.f32 %v4997_v49 }
 0x521   : > { %v5481_v14 = vmul.f32 %v7551_v17, %v10729_v57  ;;  %5588 = vst [vmem:[%s10690_s10 + $0xb8] sm:$0xff] %v7003_v55  ;;  %v4674_v0 = vpop.f32.mrb[48].mxu1  ;;  %v5189_v1 = vmul.f32 8.0, %v5157_v50  ;;  %v4998_v46 = vand.u32 15, %v4929_v42  ;;  %v5355_v8 = vmul.f32 %v6997_v58, %v10729_v57 }
 0x522   : > { %v4878_v56 = vadd.f32 %v4877_v27, %v4847_v40  ;;  %7556 = vpow2.f32 %v5427_v32  ;;  %v7005_v3 = vadd.f32 %v10551_v9, %v4674_v0  ;;  %v4676_v34 = vpop.f32.mrb[49].mxu1  ;;  %v5386_v9 = vadd.f32 %v5354_v29, %v10683_v19 }
 0x523   : > { %v5513_v33 = vsel %vm5342_vm2, %v5385_v5, %v5481_v14  ;;  %v7007_v44 = vadd.f32 %v10555_v48, %v4676_v34  ;;  %v5158_v21 = vcvt.s32.f32 %v5030_v45  ;;  %v5286_v42 = vsel %vm5236_vm1, %v5092_v62, %v5254_v13 }
 0x524   : > { %v7553_v43 = vpop.eup %7552  ;;  %5545 = vst [vmem:[%s10690_s10 + $0x60] sm:$0xff] %v5513_v33  ;;  %v4848_v54 = vmul.f32 %v7005_v3, %v7005_v3  ;;  %v5429_v59 = vmul.f32 1.442695, %v7005_v3  ;;  %5589 = vst [vmem:[%s10690_s10 + $0xc8] sm:$0xff] %v7005_v3  ;;  %v5093_v30 = vmul.f32 8.0, %v5061_v15  ;;  %v4930_v58 = vadd.s32 152, %v10341_v24 }
 0x525   : > { %v5482_v2 = vmul.f32 %v7553_v43, %v10729_v57  ;;  %5590 = vst [vmem:[%s10690_s10 + $0xd0] sm:$0xff] %v7007_v44  ;;  %v4681_v48 = vpop.f32.mrb[50].mxu1  ;;  %v5062_v53 = vcvt.s32.f32 %v4998_v46  ;;  %v5387_v49 = vadd.f32 %v5355_v8, %v10694_v28  ;;  %v5356_v40 = vmul.f32 %v7001_v10, %v10729_v57 }
 0x526   : > { %v4879_v26 = vadd.f32 %v4878_v56, %v4848_v54  ;;  %7558 = vpow2.f32 %v5429_v59  ;;  %v7009_v16 = vadd.f32 %v10559_v52, %v4681_v48  ;;  %v4683_v7 = vpop.f32.mrb[51].mxu1  ;;  %v5255_v52 = vsel %vm5237_vm0, %v5189_v1, 0.0 }
 0x527   : > { %v5514_v19 = vsel %vm5342_vm2, %v5386_v9, %v5482_v2  ;;  %v7011_v27 = vadd.f32 %v10563_v41, %v4683_v7  ;;  %v5190_v32 = vmul.f32 8.0, %v5158_v21  ;;  %v10850_v29 = vadd.f32 %v10621_v31, %v5286_v42 }
 0x528   : > { %v7555_v4 = vpop.eup %7554  ;;  %5546 = vst [vmem:[%s10690_s10 + $0x78] sm:$0xff] %v5514_v19  ;;  %v4849_v20 = vmul.f32 %v7009_v16, %v7009_v16  ;;  %v5431_v55 = vmul.f32 1.442695, %v7009_v16  ;;  %5591 = vst [vmem:[%s10690_s10 + $0xe0] sm:$0xff] %v7009_v16  ;;  %v5287_v10 = vsel %vm5236_vm1, %v5093_v30, %v5255_v52  ;;  %v5031_v45 = vshra.s32 %v4930_v58, 4 }
 0x529   : > { %v5483_v17 = vmul.f32 %v7555_v4, %v10729_v57  ;;  %5592 = vst [vmem:[%s10690_s10 + $0xe8] sm:$0xff] %v7011_v27  ;;  %v4688_v41 = vpop.f32.mrb[52].mxu1  ;;  %v4931_v33 = vadd.s32 160, %v10341_v24  ;;  %v5388_v44 = vadd.f32 %v5356_v40, %v10697_v61  ;;  %v5357_v15 = vmul.f32 %v7005_v3, %v10729_v57 }
 0x52a   : > { %v4880_v50 = vadd.f32 %v4879_v26, %v4849_v20  ;;  %7560 = vpow2.f32 %v5431_v55  ;;  %v7013_v5 = vadd.f32 %v10569_v12, %v4688_v41  ;;  %v4690_v14 = vpop.f32.mrb[53].mxu1  ;;  %v5094_v12 = vmul.f32 8.0, %v5062_v53 }
 0x52b   : > { %v5515_v28 = vsel %vm5342_vm2, %v5387_v49, %v5483_v17  ;;  %v7015_v0 = vadd.f32 %v10575_v25, %v4690_v14  ;;  %v5256_v43 = vsel %vm5237_vm0, %v5190_v32, 0.0  ;;  %v4999_v46 = vand.u32 15, %v4930_v58 }
 0x52c   : > { %v7557_v56 = vpop.eup %7556  ;;  %5547 = vst [vmem:[%s10690_s10 + $0x90] sm:$0xff] %v5515_v28  ;;  %v4850_v34 = vmul.f32 %v7013_v5, %v7013_v5  ;;  %v5433_v62 = vmul.f32 1.442695, %v7013_v5  ;;  %5593 = vst [vmem:[%s10690_s10 + $0xf8] sm:$0xff] %v7013_v5  ;;  %v10871_v3 = vadd.f32 %v10621_v31, %v5287_v10  ;;  %v5159_v2 = vcvt.s32.f32 %v5031_v45 }
 0x52d   : > { %v5484_v13 = vmul.f32 %v7557_v56, %v10729_v57  ;;  %5594 = vst [vmem:[%s10690_s10 + $0x100] sm:$0xff] %v7015_v0  ;;  %v4695_v25 = vpop.f32.mrb[54].mxu1  ;;  %v5032_v26 = vshra.s32 %v4931_v33, 4  ;;  %v5389_v7 = vadd.f32 %v5357_v15, %v10702_v11  ;;  %v4932_v27 = vadd.s32 168, %v10341_v24 }
 0x52e   : > { %v4881_v54 = vadd.f32 %v4880_v50, %v4850_v34  ;;  %7562 = vpow2.f32 %v5433_v62  ;;  %v7017_v59 = vadd.f32 %v10579_v35, %v4695_v25  ;;  %v4697_v1 = vpop.f32.mrb[55].mxu1  ;;  %v5288_v35 = vsel %vm5236_vm1, %v5094_v12, %v5256_v43 }
 0x52f   : > { %v5516_v61 = vsel %vm5342_vm2, %v5388_v44, %v5484_v13  ;;  %v7019_v9 = vadd.f32 %v10583_v36, %v4697_v1  ;;  %v5358_v36 = vmul.f32 %v7009_v16, %v10729_v57  ;;  %v5063_v20 = vcvt.s32.f32 %v4999_v46 }
 0x530   : > { %v7559_v8 = vpop.eup %7558  ;;  %5548 = vst [vmem:[%s10690_s10 + $0xa8] sm:$0xff] %v5516_v61  ;;  %v4851_v48 = vmul.f32 %v7017_v59, %v7017_v59  ;;  %v5435_v21 = vmul.f32 1.442695, %v7017_v59  ;;  %5595 = vst [vmem:[%s10690_s10 + $0x110] sm:$0xff] %v7017_v59  ;;  %v5191_v52 = vmul.f32 8.0, %v5159_v2  ;;  %v5000_v53 = vand.u32 15, %v4931_v33 }
 0x531   : > { %v5485_v42 = vmul.f32 %v7559_v8, %v10729_v57  ;;  %5596 = vst [vmem:[%s10690_s10 + $0x118] sm:$0xff] %v7019_v9  ;;  %v4702_v19 = vpop.f32.mrb[56].mxu1  ;;  %v10889_v40 = vadd.f32 %v10621_v31, %v5288_v35  ;;  %v5160_v41 = vcvt.s32.f32 %v5032_v26  ;;  %v5359_v50 = vmul.f32 %v7013_v5, %v10729_v57  ;;  %v12194_v61 = vld [vmem:[#allocation68_spill] sm:$0xff] }
 0x532   : > { %v4882_v30 = vadd.f32 %v4881_v54, %v4851_v48  ;;  %7564 = vpow2.f32 %v5435_v21  ;;  %v7021_v58 = vadd.f32 %v10588_v22, %v4702_v19  ;;  %v4704_v4 = vpop.f32.mrb[57].mxu1  ;;  %v5390_v22 = vadd.f32 %v5358_v36, %v10734_v38  ;;  %v12193_v38 = vld [vmem:[#allocation44_spill] sm:$0xff]  ;;  %v12195_v48 = vld [vmem:[#allocation69_spill] sm:$0xff] }
 0x533   : > { %v5517_v11 = vsel %vm5342_vm2, %v5389_v7, %v5485_v42  ;;  %v7023_v55 = vadd.f32 %v10592_v47, %v4704_v4  ;;  %v5033_v14 = vshra.s32 %v4932_v27, 4  ;;  %v5095_v45 = vmul.f32 8.0, %v5063_v20 }
 0x534   : > { %v7561_v16 = vpop.eup %7560  ;;  %5549 = vst [vmem:[%s10690_s10 + $0xc0] sm:$0xff] %v5517_v11  ;;  %v4852_v49 = vmul.f32 %v7021_v58, %v7021_v58  ;;  %v5437_v17 = vmul.f32 1.442695, %v7021_v58  ;;  %5597 = vst [vmem:[%s10690_s10 + $0x128] sm:$0xff] %v7021_v58  ;;  %v5257_v62 = vsel %vm5237_vm0, %v5191_v52, 0.0  ;;  %v5064_v5 = vcvt.s32.f32 %v5000_v53  ;;  %v12196_v52 = vld [vmem:[#allocation70_spill] sm:$0xff] }
 0x535   : > { %v5486_v32 = vmul.f32 %v7561_v16, %v10729_v57  ;;  %5598 = vst [vmem:[%s10690_s10 + $0x130] sm:$0xff] %v7023_v55  ;;  %v4709_v47 = vpop.f32.mrb[58].mxu1  ;;  %v5192_v13 = vmul.f32 8.0, %v5160_v41  ;;  %v5001_v15 = vand.u32 15, %v4932_v27  ;;  %v5360_v43 = vmul.f32 %v7017_v59, %v10729_v57 }
 0x536   : > { %v4883_v28 = vadd.f32 %v4882_v30, %v4852_v49  ;;  %7566 = vpow2.f32 %v5437_v17  ;;  %v7025_v0 = vadd.f32 %v10599_v37, %v4709_v47  ;;  %v4711_v10 = vpop.f32.mrb[59].mxu1  ;;  %v5391_v37 = vadd.f32 %v5359_v50, %v10742_v51  ;;  %v12197_v17 = vld [vmem:[#allocation71_spill] sm:$0xff] }
 0x537   : > { %v5518_v56 = vsel %vm5342_vm2, %v5390_v22, %v5486_v32  ;;  %v7027_v34 = vadd.f32 %v12193_v38, %v4711_v10  ;;  %v5161_v1 = vcvt.s32.f32 %v5033_v14  ;;  %v5289_v8 = vsel %vm5236_vm1, %v5095_v45, %v5257_v62 }
 0x538   : > { %v7563_v12 = vpop.eup %7562  ;;  %5550 = vst [vmem:[%s10690_s10 + $0xd8] sm:$0xff] %v5518_v56  ;;  %v4853_v33 = vmul.f32 %v7025_v0, %v7025_v0  ;;  %v5439_v44 = vmul.f32 1.442695, %v7025_v0  ;;  %5599 = vst [vmem:[%s10690_s10 + $0x140] sm:$0xff] %v7025_v0  ;;  %v5096_v35 = vmul.f32 8.0, %v5064_v5  ;;  %v4933_v59 = vadd.s32 176, %v10341_v24 }
 0x539   : > { %v5487_v25 = vmul.f32 %v7563_v12, %v10729_v57  ;;  %5600 = vst [vmem:[%s10690_s10 + $0x148] sm:$0xff] %v7027_v34  ;;  %v4716_v54 = vpop.f32.mrb[60].mxu1  ;;  %v5258_v36 = vsel %vm5237_vm0, %v5192_v13, 0.0  ;;  %v5065_v19 = vcvt.s32.f32 %v5001_v15  ;;  %v5392_v27 = vadd.f32 %v5360_v43, %v10745_v60  ;;  %v12198_v5 = vld [vmem:[#allocation25_spill] sm:$0xff]  ;;  %v12199_v13 = vld [vmem:[#allocation31_spill] sm:$0xff] }
 0x53a   : > { %v4884_v46 = vadd.f32 %v4883_v28, %v4853_v33  ;;  %7568 = vpow2.f32 %v5439_v44  ;;  %v7029_v9 = vadd.f32 %v12194_v61, %v4716_v54  ;;  %v4718_v2 = vpop.f32.mrb[61].mxu1  ;;  %v5361_v4 = vmul.f32 %v7021_v58, %v10729_v57 }
 0x53b   : > { %v5519_v51 = vsel %vm5342_vm2, %v5391_v37, %v5487_v25  ;;  %v7031_v21 = vadd.f32 %v12195_v48, %v4718_v2  ;;  %v5193_v11 = vmul.f32 8.0, %v5161_v1  ;;  %v10924_v49 = vadd.f32 %v10621_v31, %v5289_v8 }
 0x53c   : > { %v7565_v26 = vpop.eup %7564  ;;  %5551 = vst [vmem:[%s10690_s10 + $0xf0] sm:$0xff] %v5519_v51  ;;  %v4854_v7 = vmul.f32 %v7029_v9, %v7029_v9  ;;  %v5441_v42 = vmul.f32 1.442695, %v7029_v9  ;;  %5601 = vst [vmem:[%s10690_s10 + $0x158] sm:$0xff] %v7029_v9  ;;  %v5290_v58 = vsel %vm5236_vm1, %v5096_v35, %v5258_v36  ;;  %v5034_v22 = vshra.s32 %v4933_v59, 4  ;;  %v12200_v35 = vld [vmem:[#allocation9_spill] sm:$0xff] }
 0x53d   : > { %v5488_v30 = vmul.f32 %v7565_v26, %v10729_v57  ;;  %5602 = vst [vmem:[%s10690_s10 + $0x160] sm:$0xff] %v7031_v21  ;;  %v4723_v20 = vpop.f32.mrb[62].mxu1  ;;  %v5097_v14 = vmul.f32 8.0, %v5065_v19  ;;  %v4934_v28 = vadd.s32 184, %v10341_v24  ;;  %v5393_v10 = vadd.f32 %v5361_v4, %v10750_v63 }
 0x53e   : > { %v4885_v55 = vadd.f32 %v4884_v46, %v4854_v7  ;;  %7570 = vpow2.f32 %v5441_v42  ;;  %v7033_v53 = vadd.f32 %v12196_v52, %v4723_v20  ;;  %v4725_v16 = vpop.f32.mrb[63].mxu1  ;;  %v5362_v56 = vmul.f32 %v7025_v0, %v10729_v57  ;;  %v12201_v42 = vld [vmem:[#allocation28_spill] sm:$0xff] }
 0x53f   : > { %v5520_v60 = vsel %vm5342_vm2, %v5392_v27, %v5488_v30  ;;  %v7035_v41 = vadd.f32 %v12197_v17, %v4725_v16  ;;  %v5259_v34 = vsel %vm5237_vm0, %v5193_v11, 0.0  ;;  %v5002_v44 = vand.u32 15, %v4933_v59 }
 0x540   : > { %v7567_v32 = vpop.eup %7566  ;;  %5552 = vst [vmem:[%s10690_s10 + $0x108] sm:$0xff] %v5520_v60  ;;  %v4855_v50 = vmul.f32 %v7033_v53, %v7033_v53  ;;  %v5443_v47 = vmul.f32 1.442695, %v7033_v53  ;;  %5603 = vst [vmem:[%s10690_s10 + $0x170] sm:$0xff] %v7033_v53  ;;  %v10945_v0 = vadd.f32 %v10621_v31, %v5290_v58  ;;  %v5162_v37 = vcvt.s32.f32 %v5034_v22  ;;  %v12202_v58 = vld [vmem:[#allocation35_spill] sm:$0xff] }
 0x541   : > { %v5489_v45 = vmul.f32 %v7567_v32, %v10729_v57  ;;  %5604 = vst [vmem:[%s10690_s10 + $0x178] sm:$0xff] %v7035_v41  ;;  %v4730_v38 = vpop.f32.mrb[0].mxu1  ;;  %v5291_v1 = vsel %vm5236_vm1, %v5097_v14, %v5259_v34  ;;  %v5035_v46 = vshra.s32 %v4934_v28, 4  ;;  %v5394_v61 = vadd.f32 %v5362_v56, %v10776_v23 }
 0x542   : > { %v4886_v62 = vadd.f32 %v4885_v55, %v4855_v50  ;;  %7572 = vpow2.f32 %v5443_v47  ;;  %v7037_v12 = vadd.f32 %v4730_v38, %v12198_v5  ;;  %v4732_v33 = vpop.f32.mrb[1].mxu1  ;;  %v5363_v8 = vmul.f32 %v7029_v9, %v10729_v57 }
 0x543   : > { %v5521_v63 = vsel %vm5342_vm2, %v5393_v10, %v5489_v45  ;;  %v7039_v15 = vadd.f32 %v4732_v33, %v12199_v13  ;;  %v4935_v48 = vadd.s32 192, %v10341_v24  ;;  %v5066_v7 = vcvt.s32.f32 %v5002_v44  ;;  %v12204_v13 = vld [vmem:[#allocation41_spill] sm:$0xff] }
 0x544   : > { %v7569_v25 = vpop.eup %7568  ;;  %5553 = vst [vmem:[%s10690_s10 + $0x120] sm:$0xff] %v5521_v63  ;;  %v4856_v43 = vmul.f32 %v7037_v12, %v7037_v12  ;;  %v5445_v54 = vmul.f32 1.442695, %v7037_v12  ;;  %5605 = vst [vmem:[%s10690_s10 + $0x188] sm:$0xff] %v7037_v12  ;;  %v5194_v19 = vmul.f32 8.0, %v5162_v37  ;;  %v5003_v27 = vand.u32 15, %v4934_v28 }
 0x545   : > { %v5490_v2 = vmul.f32 %v7569_v25, %v10729_v57  ;;  %5606 = vst [vmem:[%s10690_s10 + $0x190] sm:$0xff] %v7039_v15  ;;  %v4737_v51 = vpop.f32.mrb[2].mxu1  ;;  %v10963_v20 = vadd.f32 %v10621_v31, %v5291_v1  ;;  %v5163_v11 = vcvt.s32.f32 %v5035_v46  ;;  %v5395_v55 = vadd.f32 %v5363_v8, %v10797_v6  ;;  %v12203_v6 = vld [vmem:[#allocation32_spill] sm:$0xff] }
 0x546   : > { %v4887_v21 = vadd.f32 %v4886_v62, %v4856_v43  ;;  %7574 = vpow2.f32 %v5445_v54  ;;  %v7041_v59 = vadd.f32 %v4737_v51, %v12200_v35  ;;  %v4739_v26 = vpop.f32.mrb[3].mxu1  ;;  %v5364_v16 = vmul.f32 %v7033_v53, %v10729_v57  ;;  %v12205_v43 = vld [vmem:[#allocation38_spill] sm:$0xff] }
 0x547   : > { %v5522_v23 = vsel %vm5342_vm2, %v5394_v61, %v5490_v2  ;;  %v7043_v36 = vadd.f32 %v4739_v26, %v12201_v42  ;;  %v5036_v17 = vshra.s32 %v4935_v48, 4  ;;  %v5098_v31 = vmul.f32 8.0, %v5066_v7  ;;  %v12206_v42 = vld [vmem:[#allocation45_spill] sm:$0xff] }
 0x548   : > { %v7571_v9 = vpop.eup %7570  ;;  %5554 = vst [vmem:[%s10690_s10 + $0x138] sm:$0xff] %v5522_v23  ;;  %v4857_v30 = vmul.f32 %v7041_v59, %v7041_v59  ;;  %v5447_v4 = vmul.f32 1.442695, %v7041_v59  ;;  %5607 = vst [vmem:[%s10690_s10 + $0x1a0] sm:$0xff] %v7041_v59  ;;  %v5260_v14 = vsel %vm5237_vm0, %v5194_v19, 0.0  ;;  %v5067_v53 = vcvt.s32.f32 %v5003_v27 }
 0x549   : > { %v5491_v52 = vmul.f32 %v7571_v9, %v10729_v57  ;;  %5608 = vst [vmem:[%s10690_s10 + $0x1a8] sm:$0xff] %v7043_v36  ;;  %v4744_v60 = vpop.f32.mrb[4].mxu1  ;;  %v5195_v56 = vmul.f32 8.0, %v5163_v11  ;;  %v5004_v38 = vand.u32 15, %v4935_v48  ;;  %v5396_v34 = vadd.f32 %v5364_v16, %v10815_v39  ;;  %v11002_v27 = vld [vmem:[%s11227_s5] ss:$0 sm:$0xff] }
 0x54a   : > { %v4888_v41 = vadd.f32 %v4887_v21, %v4857_v30  ;;  %7576 = vpow2.f32 %v5447_v4  ;;  %v7045_v22 = vadd.f32 %v4744_v60, %v12202_v58  ;;  %v4746_v32 = vpop.f32.mrb[5].mxu1  ;;  %v5365_v5 = vmul.f32 %v7037_v12, %v10729_v57  ;;  %v12207_v9 = vld [vmem:[#allocation47_spill] sm:$0xff] }
 0x54b   : > { %v5523_v50 = vsel %vm5342_vm2, %v5395_v55, %v5491_v52  ;;  %v7047_v47 = vadd.f32 %v4746_v32, %v12203_v6  ;;  %v5164_v44 = vcvt.s32.f32 %v5036_v17  ;;  %v5292_v25 = vsel %vm5236_vm1, %v5098_v31, %v5260_v14 }
 0x54c   : > { %v7573_v28 = vpop.eup %7572  ;;  %5555 = vst [vmem:[%s10690_s10 + $0x150] sm:$0xff] %v5523_v50  ;;  %v4858_v10 = vmul.f32 %v7045_v22, %v7045_v22  ;;  %v5449_v45 = vmul.f32 1.442695, %v7045_v22  ;;  %5609 = vst [vmem:[%s10690_s10 + $0x1b8] sm:$0xff] %v7045_v22  ;;  %v5099_v1 = vmul.f32 8.0, %v5067_v53  ;;  %v10988_v12 = vadd.s32 200, %v10341_v24 }
 0x54d   : > { %v5492_v62 = vmul.f32 %v7573_v28, %v10729_v57  ;;  %5610 = vst [vmem:[%s10690_s10 + $0x1c0] sm:$0xff] %v7047_v47  ;;  %v4751_v33 = vpop.f32.mrb[6].mxu1  ;;  %v5261_v8 = vsel %vm5237_vm0, %v5195_v56, 0.0  ;;  %v5068_v51 = vcvt.s32.f32 %v5004_v38  ;;  %v5397_v48 = vadd.f32 %v5365_v5, %v10850_v29  ;;  %v12208_v47 = vld [vmem:[#allocation39_spill] sm:$0xff] }
 0x54e   : > { %v4889_v63 = vadd.f32 %v4888_v41, %v4858_v10  ;;  %7578 = vpow2.f32 %v5449_v45  ;;  %v7049_v15 = vadd.f32 %v4751_v33, %v12204_v13  ;;  %v4753_v37 = vpop.f32.mrb[7].mxu1  ;;  %v5366_v35 = vmul.f32 %v7041_v59, %v10729_v57  ;;  %v12209_v10 = vld [vmem:[#allocation58_spill] sm:$0xff] }
 0x54f   : > { %v5524_v39 = vsel %vm5342_vm2, %v5396_v34, %v5492_v62  ;;  %v7051_v54 = vadd.f32 %v4753_v37, %v12205_v43  ;;  %v5196_v7 = vmul.f32 8.0, %v5164_v44  ;;  %v11005_v29 = vadd.f32 %v11002_v27, %v5292_v25  ;;  %v12210_v43 = vld [vmem:[#allocation7_spill] sm:$0xff] }
 0x550   : > { %v7575_v46 = vpop.eup %7574  ;;  %5556 = vst [vmem:[%s10690_s10 + $0x168] sm:$0xff] %v5524_v39  ;;  %v4859_v61 = vmul.f32 %v7049_v15, %v7049_v15  ;;  %v5451_v2 = vmul.f32 1.442695, %v7049_v15  ;;  %5611 = vst [vmem:[%s10690_s10 + $0x1d0] sm:$0xff] %v7049_v15  ;;  %v5293_v4 = vsel %vm5236_vm1, %v5099_v1, %v5261_v8  ;;  %v5037_v11 = vshra.s32 %v10988_v12, 4 }
 0x551   : > { %v5493_v21 = vmul.f32 %v7575_v46, %v10729_v57  ;;  %5612 = vst [vmem:[%s10690_s10 + $0x1d8] sm:$0xff] %v7051_v54  ;;  %v4758_v26 = vpop.f32.mrb[8].mxu1  ;;  %v5100_v60 = vmul.f32 8.0, %v5068_v51  ;;  %v4937_v17 = vadd.s32 208, %v10341_v24  ;;  %v5398_v41 = vadd.f32 %v5366_v35, %v10871_v3  ;;  %v12211_v46 = vld [vmem:[#allocation40_spill] sm:$0xff] }
 0x552   : > { %v4890_v23 = vadd.f32 %v4889_v63, %v4859_v61  ;;  %7580 = vpow2.f32 %v5451_v2  ;;  %v7053_v36 = vadd.f32 %v4758_v26, %v12206_v42  ;;  %v4760_v19 = vpop.f32.mrb[9].mxu1  ;;  %v5367_v32 = vmul.f32 %v7045_v22, %v10729_v57 }
 0x553   : > { %v5525_v59 = vsel %vm5342_vm2, %v5397_v48, %v5493_v21  ;;  %v7055_v30 = vadd.f32 %v4760_v19, %v12207_v9  ;;  %v5262_v50 = vsel %vm5237_vm0, %v5196_v7, 0.0  ;;  %v5005_v28 = vand.u32 15, %v10988_v12  ;;  %v12212_v9 = vld [vmem:[#allocation8_spill] sm:$0xff] }
 0x554   : > { %v7577_v55 = vpop.eup %7576  ;;  %5557 = vst [vmem:[%s10690_s10 + $0x180] sm:$0xff] %v5525_v59  ;;  %v4860_v52 = vmul.f32 %v7053_v36, %v7053_v36  ;;  %v5453_v16 = vmul.f32 1.442695, %v7053_v36  ;;  %5613 = vst [vmem:[%s10690_s10 + $0x1e8] sm:$0xff] %v7053_v36  ;;  %v11028_v22 = vadd.f32 %v11002_v27, %v5293_v4  ;;  %v5165_v56 = vcvt.s32.f32 %v5037_v11 }
 0x555   : > { %v5494_v58 = vmul.f32 %v7577_v55, %v10729_v57  ;;  %5614 = vst [vmem:[%s10690_s10 + $0x1f0] sm:$0xff] %v7055_v30  ;;  %v4765_v31 = vpop.f32.mrb[10].mxu1  ;;  %v5294_v5 = vsel %vm5236_vm1, %v5100_v60, %v5262_v50  ;;  %v5038_v33 = vshra.s32 %v4937_v17, 4  ;;  %v5399_v44 = vadd.f32 %v5367_v32, %v10889_v40 }
 0x556   : > { %v4891_v6 = vadd.f32 %v4890_v23, %v4860_v52  ;;  %7582 = vpow2.f32 %v5453_v16  ;;  %v7057_v14 = vadd.f32 %v4765_v31, %v12208_v47  ;;  %v4767_v53 = vpop.f32.mrb[11].mxu1  ;;  %v5368_v13 = vmul.f32 %v7049_v15, %v10729_v57 }
 0x557   : > { %v5526_v3 = vsel %vm5342_vm2, %v5398_v41, %v5494_v58  ;;  %v7059_v45 = vadd.f32 %v4767_v53, %v12209_v10  ;;  %v4938_v25 = vadd.s32 216, %v10341_v24  ;;  %v5069_v12 = vcvt.s32.f32 %v5005_v28 }
 0x558   : > { %v7579_v38 = vpop.eup %7578  ;;  %5558 = vst [vmem:[%s10690_s10 + $0x198] sm:$0xff] %v5526_v3  ;;  %v4861_v34 = vmul.f32 %v7057_v14, %v7057_v14  ;;  %v5455_v62 = vmul.f32 1.442695, %v7057_v14  ;;  %5615 = vst [vmem:[%s10690_s10 + $0x200] sm:$0xff] %v7057_v14  ;;  %v11044_v2 = vadd.f32 %v11002_v27, %v5294_v5  ;;  %v5006_v15 = vand.u32 15, %v4937_v17  ;;  %v12214_v3 = vld [vmem:[#allocation46_spill] sm:$0xff] }
 0x559   : > { %v5495_v63 = vmul.f32 %v7579_v38, %v10729_v57  ;;  %5616 = vst [vmem:[%s10690_s10 + $0x208] sm:$0xff] %v7059_v45  ;;  %v4772_v37 = vpop.f32.mrb[12].mxu1  ;;  %v5197_v21 = vmul.f32 8.0, %v5165_v56  ;;  %v5166_v35 = vcvt.s32.f32 %v5038_v33  ;;  %v5400_v26 = vadd.f32 %v5368_v13, %v10924_v49  ;;  %v12213_v49 = vld [vmem:[#allocation43_spill] sm:$0xff]  ;;  %v12215_v38 = vld [vmem:[#allocation48_spill] sm:$0xff] }
 0x55a   : > { %v4892_v39 = vadd.f32 %v4891_v6, %v4861_v34  ;;  %7584 = vpow2.f32 %v5455_v62  ;;  %v7061_v54 = vadd.f32 %v4772_v37, %v12210_v43  ;;  %v4774_v1 = vpop.f32.mrb[13].mxu1  ;;  %v5369_v23 = vmul.f32 %v7053_v36, %v10729_v57 }
 0x55b   : > { %v5527_v40 = vsel %vm5342_vm2, %v5399_v44, %v5495_v63  ;;  %v7063_v61 = vadd.f32 %v4774_v1, %v12211_v46  ;;  %v5039_v19 = vshra.s32 %v4938_v25, 4  ;;  %v5101_v11 = vmul.f32 8.0, %v5069_v12 }
 0x55c   : > { %v7581_v8 = vpop.eup %7580  ;;  %5559 = vst [vmem:[%s10690_s10 + $0x1b0] sm:$0xff] %v5527_v40  ;;  %v4862_v51 = vmul.f32 %v7061_v54, %v7061_v54  ;;  %v5457_v48 = vmul.f32 1.442695, %v7061_v54  ;;  %5617 = vst [vmem:[%s10690_s10 + $0x218] sm:$0xff] %v7061_v54  ;;  %v5070_v16 = vcvt.s32.f32 %v5006_v15  ;;  %v5007_v60 = vand.u32 15, %v4938_v25  ;;  %v12216_v40 = vld [vmem:[#allocation52_spill] sm:$0xff] }
 0x55d   : > { %v5496_v7 = vmul.f32 %v7581_v8, %v10729_v57  ;;  %5618 = vst [vmem:[%s10690_s10 + $0x220] sm:$0xff] %v7063_v61  ;;  %v4779_v42 = vpop.f32.mrb[14].mxu1  ;;  %v5263_v58 = vsel %vm5237_vm0, %v5197_v21, 0.0  ;;  %v5198_v32 = vmul.f32 8.0, %v5166_v35  ;;  %v5401_v31 = vadd.f32 %v5369_v23, %v10945_v0 }
 0x55e   : > { %v4893_v59 = vadd.f32 %v4892_v39, %v4862_v51  ;;  %7586 = vpow2.f32 %v5457_v48  ;;  %v7065_v30 = vadd.f32 %v4779_v42, %v12212_v9  ;;  %v4781_v4 = vpop.f32.mrb[15].mxu1  ;;  %v5370_v6 = vmul.f32 %v7057_v14, %v10729_v57  ;;  %v11094_v42 = vld [vmem:[%s11228_s6] ss:$0 sm:$0xff] }
 0x55f   : > { %v5528_v55 = vsel %vm5342_vm2, %v5400_v26, %v5496_v7  ;;  %v7067_v52 = vadd.f32 %v4781_v4, %v12213_v49  ;;  %v5167_v53 = vcvt.s32.f32 %v5039_v19  ;;  %v4939_v56 = vadd.s32 224, %v10341_v24 }
 0x560   : > { %v7583_v17 = vpop.eup %7582  ;;  %5560 = vst [vmem:[%s10690_s10 + $0x1c8] sm:$0xff] %v5528_v55  ;;  %v4863_v36 = vmul.f32 %v7065_v30, %v7065_v30  ;;  %v5459_v41 = vmul.f32 1.442695, %v7065_v30  ;;  %5619 = vst [vmem:[%s10690_s10 + $0x230] sm:$0xff] %v7065_v30  ;;  %v5102_v62 = vmul.f32 8.0, %v5070_v16  ;;  %v5071_v5 = vcvt.s32.f32 %v5007_v60  ;;  %v12218_v55 = vld [vmem:[#allocation59_spill] sm:$0xff] }
 0x561   : > { %v5497_v50 = vmul.f32 %v7583_v17, %v10729_v57  ;;  %5620 = vst [vmem:[%s10690_s10 + $0x238] sm:$0xff] %v7067_v52  ;;  %v4786_v47 = vpop.f32.mrb[16].mxu1  ;;  %v5295_v63 = vsel %vm5236_vm1, %v5101_v11, %v5263_v58  ;;  %v5264_v13 = vsel %vm5237_vm0, %v5198_v32, 0.0  ;;  %v5402_v37 = vadd.f32 %v5370_v6, %v10963_v20  ;;  %v12217_v20 = vld [vmem:[#allocation56_spill] sm:$0xff]  ;;  %v12219_v17 = vld [vmem:[#allocation62_spill] sm:$0xff] }
 0x562   : > { %v4894_v28 = vadd.f32 %v4893_v59, %v4863_v36  ;;  %7588 = vpow2.f32 %v5459_v41  ;;  %v7069_v10 = vadd.f32 %v4786_v47, %v12214_v3  ;;  %v4788_v45 = vpop.f32.mrb[17].mxu1  ;;  %v5371_v39 = vmul.f32 %v7061_v54, %v10729_v57 }
 0x563   : > { %v5529_v0 = vsel %vm5342_vm2, %v5401_v31, %v5497_v50  ;;  %v7071_v34 = vadd.f32 %v4788_v45, %v12215_v38  ;;  %v5199_v1 = vmul.f32 8.0, %v5167_v53  ;;  %v5040_v15 = vshra.s32 %v4939_v56, 4 }
 0x564   : > { %v7585_v14 = vpop.eup %7584  ;;  %5561 = vst [vmem:[%s10690_s10 + $0x1e0] sm:$0xff] %v5529_v0  ;;  %v4864_v33 = vmul.f32 %v7069_v10, %v7069_v10  ;;  %v5461_v44 = vmul.f32 1.442695, %v7069_v10  ;;  %5621 = vst [vmem:[%s10690_s10 + $0x248] sm:$0xff] %v7069_v10  ;;  %v5296_v48 = vsel %vm5236_vm1, %v5102_v62, %v5264_v13  ;;  %v5008_v26 = vand.u32 15, %v4939_v56  ;;  %v12220_v56 = vld [vmem:[#allocation64_spill] sm:$0xff] }
 0x565   : > { %v5498_v25 = vmul.f32 %v7585_v14, %v10729_v57  ;;  %5622 = vst [vmem:[%s10690_s10 + $0x250] sm:$0xff] %v7071_v34  ;;  %v4793_v43 = vpop.f32.mrb[18].mxu1  ;;  %v5103_v57 = vmul.f32 8.0, %v5071_v5  ;;  %v11088_v7 = vadd.s32 232, %v10341_v24  ;;  %v5403_v23 = vadd.f32 %v5371_v39, %v11005_v29  ;;  %v12221_v5 = vld [vmem:[#allocation49_spill] sm:$0xff] }
 0x566   : > { %v4895_v12 = vadd.f32 %v4894_v28, %v4864_v33  ;;  %7590 = vpow2.f32 %v5461_v44  ;;  %v7073_v46 = vadd.f32 %v4793_v43, %v12216_v40  ;;  %v4795_v61 = vpop.f32.mrb[19].mxu1  ;;  %v5372_v59 = vmul.f32 %v11094_v42, %v7065_v30 }
 0x567   : > { %v5530_v8 = vsel %vm5342_vm2, %v5402_v37, %v5498_v25  ;;  %v7075_v51 = vadd.f32 %v4795_v61, %v12217_v20  ;;  %v5265_v4 = vsel %vm5237_vm0, %v5199_v1, 0.0  ;;  %v5168_v52 = vcvt.s32.f32 %v5040_v15  ;;  %v12222_v61 = vld [vmem:[#allocation53_spill] sm:$0xff] }
 0x568   : > { %v7587_v54 = vpop.eup %7586  ;;  %5562 = vst [vmem:[%s10690_s10 + $0x1f8] sm:$0xff] %v5530_v8  ;;  %v4865_v21 = vmul.f32 %v7073_v46, %v7073_v46  ;;  %v5463_v35 = vmul.f32 1.442695, %v7073_v46  ;;  %5623 = vst [vmem:[%s10690_s10 + $0x260] sm:$0xff] %v7073_v46  ;;  %v5334_v60 = vadd.f32 %v11002_v27, %v5295_v63  ;;  %v11106_v30 = vadd.f32 %v11002_v27, %v5296_v48 }
 0x569   : > { %v5499_v19 = vmul.f32 %v11094_v42, %v7587_v54  ;;  %5624 = vst [vmem:[%s10690_s10 + $0x268] sm:$0xff] %v7075_v51  ;;  %v4800_v9 = vpop.f32.mrb[20].mxu1  ;;  %v5297_v31 = vsel %vm5236_vm1, %v5103_v57, %v5265_v4  ;;  %v5041_v50 = vshra.s32 %v11088_v7, 4  ;;  %v5404_v6 = vadd.f32 %v5372_v59, %v11028_v22  ;;  %v12223_v51 = vld [vmem:[#allocation57_spill] sm:$0xff] }
 0x56a   : > { %v4896_v11 = vadd.f32 %v4895_v12, %v4865_v21  ;;  %7592 = vpow2.f32 %v5463_v35  ;;  %v7077_v29 = vadd.f32 %v4800_v9, %v12218_v55  ;;  %v4802_v49 = vpop.f32.mrb[21].mxu1  ;;  %v5373_v53 = vmul.f32 %v11094_v42, %v7069_v10  ;;  %v12224_v55 = vld [vmem:[#allocation60_spill] sm:$0xff] }
 0x56b   : > { %v5531_v16 = vsel %vm5342_vm2, %v5403_v23, %v5499_v19  ;;  %v7079_v36 = vadd.f32 %v4802_v49, %v12219_v17  ;;  %v5072_v3 = vcvt.s32.f32 %v5008_v26  ;;  %v5200_v34 = vmul.f32 8.0, %v5168_v52 }
 0x56c   : > { %v7589_v41 = vpop.eup %7588  ;;  %5563 = vst [vmem:[%s10690_s10 + $0x210] sm:$0xff] %v5531_v16  ;;  %v4866_v58 = vmul.f32 %v7077_v29, %v7077_v29  ;;  %v5465_v32 = vmul.f32 1.442695, %v7077_v29  ;;  %5625 = vst [vmem:[%s10690_s10 + $0x278] sm:$0xff] %v7077_v29  ;;  %v11122_v22 = vadd.f32 %v11002_v27, %v5297_v31  ;;  %v4941_v10 = vadd.s32 240, %v10341_v24 }
 0x56d   : > { %v5500_v47 = vmul.f32 %v11094_v42, %v7589_v41  ;;  %5626 = vst [vmem:[%s10690_s10 + $0x280] sm:$0xff] %v7079_v36  ;;  %v4807_v28 = vpop.f32.mrb[22].mxu1  ;;  %v5009_v13 = vand.u32 15, %v11088_v7  ;;  %v5169_v37 = vcvt.s32.f32 %v5041_v50  ;;  %v5405_v25 = vadd.f32 %v5373_v53, %v11044_v2 }
 0x56e   : > { %v4897_v45 = vadd.f32 %v4896_v11, %v4866_v58  ;;  %7594 = vpow2.f32 %v5465_v32  ;;  %v7081_v0 = vadd.f32 %v4807_v28, %v12220_v56  ;;  %v4809_v38 = vpop.f32.mrb[23].mxu1  ;;  %v5374_v43 = vmul.f32 %v11094_v42, %v7073_v46  ;;  %v12226_v56 = vld [vmem:[#allocation65_spill] sm:$0xff] }
 0x56f   : > { %v5532_v62 = vsel %vm5342_vm2, %v5404_v6, %v5500_v47  ;;  %v7083_v14 = vadd.f32 %v4809_v38, %v12221_v5  ;;  %v5104_v12 = vmul.f32 8.0, %v5072_v3  ;;  %v5266_v8 = vsel %vm5237_vm0, %v5200_v34, 0.0 }
 0x570   : > { %v7591_v33 = vpop.eup %7590  ;;  %5564 = vst [vmem:[%s10690_s10 + $0x228] sm:$0xff] %v5532_v62  ;;  %v4867_v44 = vmul.f32 %v7081_v0, %v7081_v0  ;;  %v5467_v63 = vmul.f32 1.442695, %v7081_v0  ;;  %5627 = vst [vmem:[%s10690_s10 + $0x290] sm:$0xff] %v7081_v0  ;;  %v5042_v57 = vshra.s32 %v4941_v10, 4  ;;  %v4942_v46 = vadd.s32 248, %v10341_v24 }
 0x571   : > { %v5501_v39 = vmul.f32 %v11094_v42, %v7591_v33  ;;  %5628 = vst [vmem:[%s10690_s10 + $0x298] sm:$0xff] %v7083_v14  ;;  %v4814_v1 = vpop.f32.mrb[24].mxu1  ;;  %v5073_v26 = vcvt.s32.f32 %v5009_v13  ;;  %v5201_v7 = vmul.f32 8.0, %v5169_v37  ;;  %v5406_v23 = vadd.f32 %v5374_v43, %v5334_v60  ;;  %v12225_v60 = vld [vmem:[#allocation63_spill] sm:$0xff]  ;;  %v12227_v14 = vld [vmem:[#allocation66_spill] sm:$0xff] }
 0x572   : > { %v4898_v40 = vadd.f32 %v4897_v45, %v4867_v44  ;;  %7596 = vpow2.f32 %v5467_v63  ;;  %v7085_v15 = vadd.f32 %v4814_v1, %v12222_v61  ;;  %v4816_v20 = vpop.f32.mrb[25].mxu1  ;;  %v5375_v59 = vmul.f32 %v11094_v42, %v7077_v29  ;;  %v12228_v61 = vld [vmem:[#allocation67_spill] sm:$0xff] }
 0x573   : > { %v5533_v2 = vsel %vm5342_vm2, %v5405_v25, %v5501_v39  ;;  %v7087_v48 = vadd.f32 %v4816_v20, %v12223_v51  ;;  %v5010_v4 = vand.u32 15, %v4941_v10  ;;  %v5298_v24 = vsel %vm5236_vm1, %v5104_v12, %v5266_v8 }
 0x574   : > { %v7593_v54 = vpop.eup %7592  ;;  %5565 = vst [vmem:[%s10690_s10 + $0x240] sm:$0xff] %v5533_v2  ;;  %v4868_v21 = vmul.f32 %v7085_v15, %v7085_v15  ;;  %v5469_v35 = vmul.f32 1.442695, %v7085_v15  ;;  %5629 = vst [vmem:[%s10690_s10 + $0x2a8] sm:$0xff] %v7085_v15  ;;  %v5170_v36 = vcvt.s32.f32 %v5042_v57  ;;  %v5043_v29 = vshra.s32 %v4942_v46, 4  ;;  %v12229_v57 = vld [vmem:[#allocation33_spill] sm:$0xff] }
 0x575   : > { %v5502_v19 = vmul.f32 %v11094_v42, %v7593_v54  ;;  %5630 = vst [vmem:[%s10690_s10 + $0x2b0] sm:$0xff] %v7087_v48  ;;  %v4821_v9 = vpop.f32.mrb[26].mxu1  ;;  %v5105_v32 = vmul.f32 8.0, %v5073_v26  ;;  %v5267_v31 = vsel %vm5237_vm0, %v5201_v7, 0.0  ;;  %v5407_v6 = vadd.f32 %v5375_v59, %v11106_v30 }
 0x576   : > { %v4899_v11 = vadd.f32 %v4898_v40, %v4868_v21  ;;  %7598 = vpow2.f32 %v5469_v35  ;;  %v7089_v49 = vadd.f32 %v4821_v9, %v12224_v55  ;;  %v4823_v52 = vpop.f32.mrb[27].mxu1  ;;  %v5376_v53 = vmul.f32 %v11094_v42, %v7081_v0 }
 0x577   : > { %v5534_v16 = vsel %vm5342_vm2, %v5406_v23, %v5502_v19  ;;  %v7091_v17 = vadd.f32 %v4823_v52, %v12225_v60  ;;  %v5074_v3 = vcvt.s32.f32 %v5010_v4  ;;  %v5011_v62 = vand.u32 15, %v4942_v46 }
 0x578   : > { %v7595_v41 = vpop.eup %7594  ;;  %5566 = vst [vmem:[%s10690_s10 + $0x258] sm:$0xff] %v5534_v16  ;;  %v4869_v58 = vmul.f32 %v7089_v49, %v7089_v49  ;;  %v5471_v50 = vmul.f32 1.442695, %v7089_v49  ;;  %5631 = vst [vmem:[%s10690_s10 + $0x2c0] sm:$0xff] %v7089_v49  ;;  %v5202_v30 = vmul.f32 8.0, %v5170_v36  ;;  %v5171_v33 = vcvt.s32.f32 %v5043_v29 }
 0x579   : > { %v5503_v47 = vmul.f32 %v11094_v42, %v7595_v41  ;;  %5632 = vst [vmem:[%s10690_s10 + $0x2c8] sm:$0xff] %v7091_v17  ;;  %v4828_v28 = vpop.f32.mrb[28].mxu1  ;;  %v5337_v0 = vadd.f32 %v11002_v27, %v5298_v24  ;;  %v5299_v63 = vsel %vm5236_vm1, %v5105_v32, %v5267_v31  ;;  %v5408_v25 = vadd.f32 %v5376_v53, %v11122_v22 }
 0x57a   : > { %v4900_v45 = vadd.f32 %v4899_v11, %v4869_v58  ;;  %7600 = vpow2.f32 %v5471_v50  ;;  %v7093_v38 = vadd.f32 %v4828_v28, %v12226_v56  ;;  %v4830_v34 = vpop.f32.mrb[29].mxu1  ;;  %v5377_v43 = vmul.f32 %v11094_v42, %v7085_v15 }
 0x57b   : > { %v5535_v5 = vsel %vm5342_vm2, %v5407_v6, %v5503_v47  ;;  %v7095_v10 = vadd.f32 %v4830_v34, %v12227_v14  ;;  %v5106_v1 = vmul.f32 8.0, %v5074_v3  ;;  %v5075_v20 = vcvt.s32.f32 %v5011_v62 }
 0x57c   : > { %v7597_v44 = vpop.eup %7596  ;;  %5567 = vst [vmem:[%s10690_s10 + $0x270] sm:$0xff] %v5535_v5  ;;  %v4870_v13 = vmul.f32 %v7093_v38, %v7093_v38  ;;  %v5473_v37 = vmul.f32 1.442695, %v7093_v38  ;;  %5633 = vst [vmem:[%s10690_s10 + $0x2d8] sm:$0xff] %v7093_v38  ;;  %v5268_v22 = vsel %vm5237_vm0, %v5202_v30, 0.0  ;;  %v5203_v48 = vmul.f32 8.0, %v5171_v33 }
 0x57d   : > { %v5504_v39 = vmul.f32 %v11094_v42, %v7597_v44  ;;  %5634 = vst [vmem:[%s10690_s10 + $0x2e0] sm:$0xff] %v7095_v10  ;;  %v4835_v12 = vpop.f32.mrb[30].mxu1  ;;  %v5409_v35 = vadd.f32 %v5377_v43, %v5337_v0  ;;  %v5338_v7 = vadd.f32 %v11002_v27, %v5299_v63  ;;  %v5378_v23 = vmul.f32 %v11094_v42, %v7089_v49 }
 0x57e   : > { %v4901_v40 = vadd.f32 %v4900_v45, %v4870_v13  ;;  %7602 = vpow2.f32 %v5473_v37  ;;  %v7097_v8 = vadd.f32 %v4835_v12, %v12228_v61  ;;  %v4837_v2 = vpop.f32.mrb[31].mxu1  ;;  %v5300_v19 = vsel %vm5236_vm1, %v5106_v1, %v5268_v22 }
 0x57f   : > { %v5536_v51 = vsel %vm5342_vm2, %v5408_v25, %v5504_v39  ;;  %v7099_v15 = vadd.f32 %v4837_v2, %v12229_v57  ;;  %v5107_v9 = vmul.f32 8.0, %v5075_v20  ;;  %v5269_v11 = vsel %vm5237_vm0, %v5203_v48, 0.0 }
 0x580   : > { %v7599_v46 = vpop.eup %7598  ;;  %5568 = vst [vmem:[%s10690_s10 + $0x288] sm:$0xff] %v5536_v51  ;;  %v4871_v54 = vmul.f32 %v7097_v8, %v7097_v8  ;;  %v5475_v21 = vmul.f32 1.442695, %v7097_v8  ;;  %5635 = vst [vmem:[%s10690_s10 + $0x2f0] sm:$0xff] %v7097_v8  ;;  %v5410_v52 = vadd.f32 %v5378_v23, %v5338_v7  ;;  %v5339_v16 = vadd.f32 %v11002_v27, %v5300_v19 }
 0x581   : > { %v5505_v26 = vmul.f32 %v11094_v42, %v7599_v46  ;;  %5636 = vst [vmem:[%s10690_s10 + $0x2f8] sm:$0xff] %v7099_v15  ;;  %v5379_v60 = vmul.f32 %v11094_v42, %v7093_v38  ;;  %v5301_v36 = vsel %vm5236_vm1, %v5107_v9, %v5269_v11  ;;  %v5380_v6 = vmul.f32 %v11094_v42, %v7097_v8 }
 0x582   : > { %v4902_v59 = vadd.f32 %v4901_v40, %v4871_v54  ;;  %7604 = vpow2.f32 %v5475_v21  ;;  %v5340_v50 = vadd.f32 %v11002_v27, %v5301_v36 }
 0x583   : > { %v5537_v4 = vsel %vm5342_vm2, %v5409_v35, %v5505_v26  ;;  %v5411_v32 = vadd.f32 %v5379_v60, %v5339_v16 }
 0x584   : > { %v7601_v24 = vpop.eup %7600  ;;  %5569 = vst [vmem:[%s10690_s10 + $0x2a0] sm:$0xff] %v5537_v4  ;;  %v4903_v55 = vrot.slane %v4902_v59, 4  ;;  %v5412_v45 = vadd.f32 %v5380_v6, %v5340_v50 }
 0x585   : > { %v5506_v49 = vmul.f32 %v11094_v42, %v7601_v24 }
 0x586   : > { %v4904_v17 = vadd.f32 %v4903_v55, %v4902_v59 }
 0x587   : > { %v5538_v29 = vsel %vm5342_vm2, %v5410_v52, %v5506_v49 }
 0x588   : > { %v7603_v41 = vpop.eup %7602  ;;  %5570 = vst [vmem:[%s10690_s10 + $0x2b8] sm:$0xff] %v5538_v29  ;;  %v4905_v58 = vrot.slane %v4904_v17, 2 }
 0x589   : > { %v5507_v31 = vmul.f32 %v11094_v42, %v7603_v41 }
 0x58a   : > { %v4906_v47 = vadd.f32 %v4905_v58, %v4904_v17 }
 0x58b   : > { %v5539_v53 = vsel %vm5342_vm2, %v5411_v32, %v5507_v31 }
 0x58c   : > { %v7605_v28 = vpop.eup %7604  ;;  %5571 = vst [vmem:[%s10690_s10 + $0x2d0] sm:$0xff] %v5539_v53  ;;  %v4907_v3 = vrot.slane %v4906_v47, 1 }
 0x58d   : > { %v5508_v56 = vmul.f32 %v11094_v42, %v7605_v28 }
 0x58e   : > { %v4908_v38 = vadd.f32 %v4907_v3, %v4906_v47 }
 0x58f   : > { %v5540_v27 = vsel %vm5342_vm2, %v5412_v45, %v5508_v56 }
 0x590   : > { %4909 = vst [vmem:[%s359_s19] sm:$0x1] %v4908_v38  ;;  %5572 = vst [vmem:[%s10690_s10 + $0x2e8] sm:$0xff] %v5540_v27 }
 0x591 PF: > { %s19_s29 = sadd.s32 1, %s7630_s29   ;;  %s12230_s27 = smov %s7626_s28 }
 0x592   : > { %p16_p5 = scmp.ge.s32.totalorder %s19_s29, 4   ;;  %s12231_s28 = smov %s12233_s30 }
 0x594   :  { %18 = sbr.rel (!%p16_p5) target bundleno = 2 (0x2), region = 90 }

</bundles_post_ra>
